<compile_context>
chip_gen: v5e
topology: v5e:2x2
jax: 0.10.0
libtpu: 0.0.40
codegen_flags: <defaults>
</compile_context>

<pallas_src>
import functools

import jax
import jax.numpy as jnp
from jax.experimental import pallas as pl
from jax.experimental.pallas import tpu as pltpu


def _round_up(x, m):
    return (x + m - 1) // m * m


def _pick_tile_rows(ho, wo, cout, n, max_m=512, max_acc_bytes=128 * 1024):
    """Pick TH (output rows per grid step): TH | Ho, M=TH*Wo <= max_m and the
    f32 accumulator <= max_acc_bytes.  TH>1 only when Wo%8==0 (layout-free
    reshape).  Keep >= 2 total grid steps so both v7x TensorCores get work."""
    th = 1
    if wo % 8 == 0:
        for cand in range(ho, 0, -1):
            if ho % cand:
                continue
            if cand * wo <= max_m and cand * wo * cout * 4 <= max_acc_bytes:
                th = cand
                break
    if n * (ho // th) < 2 and th > 1:
        for cand in range(th - 1, 0, -1):
            if ho % cand == 0:
                th = cand
                break
    return th


# ----------------- Fused conv (+BN / ReLU / PACT / residual) kernel -----------

def _conv_kernel(x_ref, w_ref, *rest, taps, th, wo, epilogue, alpha, levels):
    # rest layout (inputs then outputs):
    #   bn / bn_relu / bn_pact : [scale, shift]                 -> o
    #   res                    : [res]                          -> o
    #   res_bnpact             : [res, next_scale, next_shift]  -> o, a
    i = 0
    s_ref = b_ref = res_ref = ns_ref = nb_ref = None
    if epilogue in ("bn", "bn_relu", "bn_pact"):
        s_ref, b_ref = rest[0], rest[1]
        i = 2
    if epilogue in ("res", "res_bnpact"):
        res_ref = rest[i]
        i += 1
    if epilogue == "res_bnpact":
        ns_ref, nb_ref = rest[i], rest[i + 1]
        i += 2
    o_ref = rest[i]
    a_ref = rest[i + 1] if epilogue == "res_bnpact" else None

    t = pl.program_id(1)
    cout = o_ref.shape[-1]
    m = th * wo

    acc = jnp.zeros((m, cout), jnp.float32)
    for widx, ph, roff, coff in taps:           # static unrolled tap loop
        r0 = t * th + roff
        tap = x_ref[ph, pl.ds(r0, th), pl.ds(coff, wo), :]   # (th, wo, cin)
        tap = tap.reshape(m, tap.shape[-1])                  # leading collapse
        acc = acc + jnp.dot(tap, w_ref[widx],
                            preferred_element_type=jnp.float32)

    y = acc
    if epilogue in ("bn", "bn_relu", "bn_pact"):
        y = y * s_ref[...] + b_ref[...]
        if epilogue == "bn_relu":
            y = jnp.maximum(y, 0.0)
        elif epilogue == "bn_pact":
            y = jnp.clip(y, 0.0, alpha)
            y = jnp.round(y * (levels / alpha)) * (alpha / levels)
    else:  # "res" / "res_bnpact"
        y = y + res_ref[...].reshape(m, cout).astype(jnp.float32)

    o_ref[...] = y.reshape(o_ref.shape).astype(o_ref.dtype)
    if a_ref is not None:
        # fused next-block bn1 + PACT on the freshly produced f32 activation
        a = y * ns_ref[...] + nb_ref[...]
        a = jnp.clip(a, 0.0, alpha)
        a = jnp.round(a * (levels / alpha)) * (alpha / levels)
        a_ref[...] = a.reshape(a_ref.shape).astype(a_ref.dtype)


def conv2d_fused(x_nhwc, w_taps, *, kh, kw, stride, pad, epilogue,
                 scale=None, shift=None, residual=None,
                 next_scale=None, next_shift=None,
                 alpha=10.0, levels=255.0, out_dtype=jnp.bfloat16):
    """Conv with taps accumulated in-VMEM and a fused epilogue.

    w_taps: (kh*kw, Cin_padded, Cout_padded) bf16 (built once in make_params).
    epilogue: "bn" | "bn_relu" | "bn_pact" | "res" | "res_bnpact".
    "res_bnpact" returns (x_out, a_out) where a_out = PACT(BN_next(x_out)).
    """
    N, H, W, Cin = x_nhwc.shape
    T, cin_p, cout_p = w_taps.shape
    assert T == kh * kw
    Ho = (H + 2 * pad - kh) // stride + 1
    Wo = (W + 2 * pad - kw) // stride + 1

    xp = x_nhwc.astype(jnp.bfloat16)
    if pad or cin_p != Cin:
        xp = jnp.pad(xp, ((0, 0), (pad, pad), (pad, pad), (0, cin_p - Cin)))

    if stride == 1:
        phases = xp[:, None]                      # (N, 1, Hp, Wp, Cin_p)
        taps = [(di * kw + dj, 0, di, dj)
                for di in range(kh) for dj in range(kw)]
    elif stride == 2:
        # Deinterleave even/odd rows & cols once in the wrapper so every
        # in-kernel tap load is a contiguous (unit-stride) slice.
        Hp, Wp = xp.shape[1], xp.shape[2]
        He, We = _round_up(Hp, 2), _round_up(Wp, 2)
        if (He, We) != (Hp, Wp):
            xp = jnp.pad(xp, ((0, 0), (0, He - Hp), (0, We - Wp), (0, 0)))
        sub = [xp[:, rp::2, cp::2, :] for rp in (0, 1) for cp in (0, 1)]
        raw = [(di * kw + dj, (di % 2) * 2 + (dj % 2), di // 2, dj // 2)
               for di in range(kh) for dj in range(kw)]
        used = sorted({p for _, p, _, _ in raw})
        remap = {p: i for i, p in enumerate(used)}
        phases = jnp.stack([sub[p] for p in used], axis=1)  # (N, P, Hh, Wh, C)
        taps = [(w, remap[p], r, c) for (w, p, r, c) in raw]
    else:
        raise NotImplementedError("stride must be 1 or 2")

    # sublane-align the W axis (second-to-minor of the kernel block)
    Wr = phases.shape[3]
    W8 = _round_up(Wr, 8)
    if W8 != Wr:
        phases = jnp.pad(phases, ((0, 0), (0, 0), (0, 0), (0, W8 - Wr), (0, 0)))
    P, Hr = phases.shape[1], phases.shape[2]

    th = _pick_tile_rows(Ho, Wo, cout_p, N)
    grid = (N, Ho // th)

    in_specs = [
        pl.BlockSpec((None, P, Hr, W8, cin_p), lambda n, t: (n, 0, 0, 0, 0)),
        pl.BlockSpec((T, cin_p, cout_p), lambda n, t: (0, 0, 0)),
    ]
    args = [phases, w_taps]
    if epilogue in ("bn", "bn_relu", "bn_pact"):
        in_specs += [pl.BlockSpec((1, cout_p), lambda n, t: (0, 0))] * 2
        args += [scale.reshape(1, cout_p).astype(jnp.float32),
                 shift.reshape(1, cout_p).astype(jnp.float32)]
    if epilogue in ("res", "res_bnpact"):
        in_specs.append(
            pl.BlockSpec((None, th, Wo, cout_p), lambda n, t: (n, t, 0, 0)))
        args.append(residual)
    if epilogue == "res_bnpact":
        in_specs += [pl.BlockSpec((1, cout_p), lambda n, t: (0, 0))] * 2
        args += [next_scale.reshape(1, cout_p).astype(jnp.float32),
                 next_shift.reshape(1, cout_p).astype(jnp.float32)]

    out_spec = pl.BlockSpec((None, th, Wo, cout_p), lambda n, t: (n, t, 0, 0))
    if epilogue == "res_bnpact":
        out_shape = (jax.ShapeDtypeStruct((N, Ho, Wo, cout_p), out_dtype),
                     jax.ShapeDtypeStruct((N, Ho, Wo, cout_p), jnp.bfloat16))
        out_specs = (out_spec, out_spec)
    else:
        out_shape = jax.ShapeDtypeStruct((N, Ho, Wo, cout_p), out_dtype)
        out_specs = out_spec

    flops = int(2 * N * Ho * Wo * T * cin_p * cout_p)
    bytes_accessed = int(phases.size * 2 + w_taps.size * 2
                         + N * Ho * Wo * cout_p * 2)

    kernel = functools.partial(_conv_kernel, taps=tuple(taps), th=th, wo=Wo,
                               epilogue=epilogue, alpha=float(alpha),
                               levels=float(levels))
    return pl.pallas_call(
        kernel,
        out_shape=out_shape,
        grid=grid,
        in_specs=in_specs,
        out_specs=out_specs,
        compiler_params=pltpu.CompilerParams(
            dimension_semantics=("parallel", "parallel")),
        cost_estimate=pl.CostEstimate(flops=flops, transcendentals=0,
                                      bytes_accessed=bytes_accessed),
    )(*args)


# -------------------- Standalone BN + PACT (first block only) -----------------

def _bn_act_kernel(x_ref, s_ref, b_ref, o_ref, *, alpha, levels):
    y = x_ref[...].astype(jnp.float32) * s_ref[...] + b_ref[...]
    y = jnp.clip(y, 0.0, alpha)
    y = jnp.round(y * (levels / alpha)) * (alpha / levels)
    o_ref[...] = y.astype(o_ref.dtype)


def bn_act_pact(x_nhwc, scale, shift, alpha=10.0, levels=255.0):
    """Eval-mode BN (fresh stats) followed by PACT quantization; output bf16."""
    N, H, W, C = x_nhwc.shape
    R = N * H * W
    tr = min(512, _round_up(R, 8))
    Rp = _round_up(R, tr)
    x2 = x_nhwc.reshape(R, C)
    if Rp != R:
        x2 = jnp.pad(x2, ((0, Rp - R), (0, 0)))
    out = pl.pallas_call(
        functools.partial(_bn_act_kernel, alpha=float(alpha),
                          levels=float(levels)),
        out_shape=jax.ShapeDtypeStruct((Rp, C), jnp.bfloat16),
        grid=(Rp // tr,),
        in_specs=[pl.BlockSpec((tr, C), lambda i: (i, 0)),
                  pl.BlockSpec((1, C), lambda i: (0, 0)),
                  pl.BlockSpec((1, C), lambda i: (0, 0))],
        out_specs=pl.BlockSpec((tr, C), lambda i: (i, 0)),
        compiler_params=pltpu.CompilerParams(
            dimension_semantics=("parallel",)),
    )(x2, scale.reshape(1, C).astype(jnp.float32),
      shift.reshape(1, C).astype(jnp.float32))
    return out[:R].reshape(N, H, W, C)


# ------------------------------ FC (matmul + bias) -----------------------------

def _fc_kernel(a_ref, w_ref, b_ref, o_ref):
    o_ref[...] = (jnp.dot(a_ref[...], w_ref[...],
                          preferred_element_type=jnp.float32) + b_ref[...])


def fc_pallas(feat, w_kn, bias):
    Nn, K = feat.shape
    _, M = w_kn.shape
    return pl.pallas_call(
        _fc_kernel,
        out_shape=jax.ShapeDtypeStruct((Nn, M), jnp.float32),
        grid=(1,),
        in_specs=[pl.BlockSpec((Nn, K), lambda i: (0, 0)),
                  pl.BlockSpec((K, M), lambda i: (0, 0)),
                  pl.BlockSpec((1, M), lambda i: (0, 0))],
        out_specs=pl.BlockSpec((Nn, M), lambda i: (0, 0)),
    )(feat.astype(jnp.float32), w_kn, bias.reshape(1, M).astype(jnp.float32))


# --------------------------------- Pool (glue) --------------------------------
# TODO(synk): maxpool / avgpool / layout transposes / phase-deinterleave are
# kept as plain XLA glue ops (cheap relative to the fused convs).

def maxpool3x3s2p1(x):
    N, H, W, C = x.shape
    xp = jnp.pad(x, ((0, 0), (1, 1), (1, 1), (0, 0)),
                 constant_values=-jnp.inf)
    Ho = (H + 2 - 3) // 2 + 1
    Wo = (W + 2 - 3) // 2 + 1
    out = None
    for i in range(3):
        for j in range(3):
            s = xp[:, i:i + Ho * 2:2, j:j + Wo * 2:2, :]
            out = s if out is None else jnp.maximum(out, s)
    return out


# ----------------------------- ResNet forward pass ----------------------------

def resnet_forward(params, x_nchw, k_bits=8, alpha=10.0):
    levels = float(2 ** k_bits - 1)
    x = jnp.transpose(x_nchw, (0, 2, 3, 1))                     # NCHW -> NHWC

    # stem: conv3x3 s1 p1 with fused BN + ReLU epilogue (bf16, 128-lane padded)
    x = conv2d_fused(x, params["conv1_w"], kh=3, kw=3, stride=1, pad=1,
                     epilogue="bn_relu",
                     scale=params["bn1_s"], shift=params["bn1_b"])
    x = maxpool3x3s2p1(x)

    blocks = [bp for lp in params["layers"] for bp in lp["blocks"]]

    # a = relu1(bn1(x)) for the first block only (later blocks get it fused
    # into the previous block's conv2 epilogue).
    a = bn_act_pact(x, blocks[0]["bn1_s"], blocks[0]["bn1_b"],
                    alpha=alpha, levels=levels)

    for i, bp in enumerate(blocks):
        s = bp["stride"]
        if "down_w" in bp:
            sc = conv2d_fused(a, bp["down_w"], kh=1, kw=1, stride=s, pad=0,
                              epilogue="bn", scale=bp["dbn_s"],
                              shift=bp["dbn_b"])
        else:
            sc = x
        # conv1 with fused bn2 + PACT epilogue
        t = conv2d_fused(a, bp["conv1_w"], kh=3, kw=3, stride=s, pad=1,
                         epilogue="bn_pact", scale=bp["bn2_s"],
                         shift=bp["bn2_b"], alpha=alpha, levels=levels)
        nxt = blocks[i + 1] if i + 1 < len(blocks) else None
        if nxt is not None:
            # conv2 + residual, plus fused next-block bn1+PACT second output
            x, a = conv2d_fused(t, bp["conv2_w"], kh=3, kw=3, stride=1, pad=1,
                                epilogue="res_bnpact", residual=sc,
                                next_scale=nxt["bn1_s"],
                                next_shift=nxt["bn1_b"],
                                alpha=alpha, levels=levels)
        else:
            x = conv2d_fused(t, bp["conv2_w"], kh=3, kw=3, stride=1, pad=1,
                             epilogue="res", residual=sc)

    feat = jnp.mean(x.astype(jnp.float32), axis=(1, 2))          # avgpool (1,1)
    logits = fc_pallas(feat, params["fc_w"], params["fc_b"])
    return logits[:, :params["num_classes"]]


# ------------------------------- Parameter setup -------------------------------

def _kaiming(key, shape):
    # kaiming_normal_ with mode='fan_out', nonlinearity='relu'
    cout, cin, kh, kw = shape
    fan_out = cout * kh * kw
    std = (2.0 / fan_out) ** 0.5
    return std * jax.random.normal(key, shape, dtype=jnp.float32)


def _conv_taps(w_oihw, cin_pad, cout_pad):
    """(Cout, Cin, kh, kw) -> (kh*kw, cin_pad, cout_pad) bf16, zero-padded."""
    cout, cin, kh, kw = w_oihw.shape
    w = jnp.transpose(w_oihw, (2, 3, 1, 0)).reshape(kh * kw, cin, cout)
    w = jnp.pad(w, ((0, 0), (0, cin_pad - cin), (0, cout_pad - cout)))
    return w.astype(jnp.bfloat16)


def _bn_params(c, c_pad, eps=1e-5):
    # eval-mode BN with fresh stats: y = x * gamma/sqrt(1+eps) + beta
    scale = jnp.full((c,), 1.0 / (1.0 + eps) ** 0.5, jnp.float32)
    scale = jnp.pad(scale, (0, c_pad - c))       # padded channels stay 0
    shift = jnp.zeros((c_pad,), jnp.float32)
    return scale, shift


def make_params(key, layers=(1, 1, 1, 1), num_classes=200):
    keys = iter(jax.random.split(key, 64))
    cpad = lambda c: _round_up(c, 128)
    p = {"num_classes": num_classes}

    p["conv1_w"] = _conv_taps(_kaiming(next(keys), (64, 3, 3, 3)),
                              cin_pad=8, cout_pad=cpad(64))
    p["bn1_s"], p["bn1_b"] = _bn_params(64, cpad(64))

    inplanes = 64
    p["layers"] = []
    for planes, nblocks, stride in zip((64, 128, 256, 512), layers,
                                       (1, 2, 2, 2)):
        blocks = []
        for bi in range(nblocks):
            s = stride if bi == 0 else 1
            bp = {"stride": s}
            bp["bn1_s"], bp["bn1_b"] = _bn_params(inplanes, cpad(inplanes))
            bp["conv1_w"] = _conv_taps(
                _kaiming(next(keys), (planes, inplanes, 3, 3)),
                cin_pad=cpad(inplanes), cout_pad=cpad(planes))
            bp["bn2_s"], bp["bn2_b"] = _bn_params(planes, cpad(planes))
            bp["conv2_w"] = _conv_taps(
                _kaiming(next(keys), (planes, planes, 3, 3)),
                cin_pad=cpad(planes), cout_pad=cpad(planes))
            if s != 1 or inplanes != planes:
                bp["down_w"] = _conv_taps(
                    _kaiming(next(keys), (planes, inplanes, 1, 1)),
                    cin_pad=cpad(inplanes), cout_pad=cpad(planes))
                bp["dbn_s"], bp["dbn_b"] = _bn_params(planes, cpad(planes))
            blocks.append(bp)
            inplanes = planes
        p["layers"].append({"blocks": blocks})

    # FC head: pad classes to 128-lane multiple (sliced off after the kernel).
    feat_dim = cpad(512)
    ncls_p = _round_up(num_classes, 128)
    fan_in = 512
    bound = 1.0 / (fan_in ** 0.5)
    fc_w = jax.random.uniform(next(keys), (num_classes, 512),
                              minval=-bound, maxval=bound, dtype=jnp.float32)
    w_kn = jnp.zeros((feat_dim, ncls_p), jnp.float32)
    w_kn = w_kn.at[:512, :num_classes].set(jnp.transpose(fc_w))
    fc_b = jax.random.uniform(next(keys), (num_classes,),
                              minval=-bound, maxval=bound, dtype=jnp.float32)
    p["fc_w"] = w_kn
    p["fc_b"] = jnp.pad(fc_b, (0, ncls_p - num_classes))
    return p


if __name__ == "__main__":
    key = jax.random.PRNGKey(0)
    pkey, xkey = jax.random.split(key)
    # Small ResNet (one QuantBasicBlock per stage), TinyImageNet-style head.
    params = make_params(pkey, layers=(1, 1, 1, 1), num_classes=200)
    x = jax.random.normal(xkey, (2, 3, 16, 16), dtype=jnp.float32)  # NCHW input
    logits = resnet_forward(params, x, k_bits=8)
    jax.block_until_ready(logits)
    assert logits.shape == (2, 200)
    print("KERNEL_OK")
</pallas_src>

<mosaic_0001>
module attributes {stable_mosaic.version = 11 : i64} {
  func.func @_conv_kernel(%arg0: i32, %arg1: i32, %arg2: memref<1x1x18x24x8xbf16, #tpu.memory_space<vmem>>, %arg3: memref<9x8x128xbf16, #tpu.memory_space<vmem>>, %arg4: memref<1x128xf32, #tpu.memory_space<vmem>>, %arg5: memref<1x128xf32, #tpu.memory_space<vmem>>, %arg6: memref<1x16x16x128xbf16, #tpu.memory_space<vmem>>) attributes {dimension_semantics = [#tpu.dimension_semantics<parallel>, #tpu.dimension_semantics<parallel>], iteration_bounds = array<i64: 2, 1>, scalar_prefetch = 0 : i64, scratch_operands = 0 : i64, tpu.core_type = #tpu.core_type<tc>, window_params = [{transform_indices = @transform_0, window_bounds = array<i64: 1, 1, 18, 24, 8>}, {pipeline_mode = #tpu.pipeline_mode<synchronous>, transform_indices = @transform_1, window_bounds = array<i64: 9, 8, 128>}, {pipeline_mode = #tpu.pipeline_mode<synchronous>, transform_indices = @transform_2, window_bounds = array<i64: 1, 128>}, {pipeline_mode = #tpu.pipeline_mode<synchronous>, transform_indices = @transform_3, window_bounds = array<i64: 1, 128>}, {transform_indices = @transform_4, window_bounds = array<i64: 1, 16, 16, 128>}]} {
    %cst = arith.constant 0.000000e+00 : f32
    %0 = vector.broadcast %cst : f32 to vector<256x128xf32>
    %c16_i32 = arith.constant 16 : i32
    %1 = arith.muli %arg1, %c16_i32 : i32
    %c0_i32 = arith.constant 0 : i32
    %2 = arith.addi %1, %c0_i32 : i32
    %c0 = arith.constant 0 : index
    %c0_0 = arith.constant 0 : index
    %3 = arith.index_cast %2 : i32 to index
    %c0_1 = arith.constant 0 : index
    %c0_2 = arith.constant 0 : index
    %4 = vector.load %arg2[%c0, %c0_0, %3, %c0_1, %c0_2] : memref<1x1x18x24x8xbf16, #tpu.memory_space<vmem>>, vector<1x1x16x16x8xbf16>
    %5 = vector.shape_cast %4 : vector<1x1x16x16x8xbf16> to vector<16x16x8xbf16>
    %6 = vector.shape_cast %5 : vector<16x16x8xbf16> to vector<256x8xbf16>
    %c0_3 = arith.constant 0 : index
    %c0_4 = arith.constant 0 : index
    %c0_5 = arith.constant 0 : index
    %7 = vector.load %arg3[%c0_3, %c0_4, %c0_5] : memref<9x8x128xbf16, #tpu.memory_space<vmem>>, vector<1x8x128xbf16>
    %8 = vector.shape_cast %7 : vector<1x8x128xbf16> to vector<8x128xbf16>
    %cst_6 = arith.constant dense<0.000000e+00> : vector<256x128xf32>
    %9 = tpu.matmul %6, %8, %cst_6 {dimension_numbers = #tpu.dot_dimension_numbers<[1], [0], [0], [1], [0, 0, 1, 1], [], []>} : vector<256x8xbf16>, vector<8x128xbf16>, vector<256x128xf32> -> vector<256x128xf32>
    %10 = arith.addf %0, %9 : vector<256x128xf32>
    %c16_i32_7 = arith.constant 16 : i32
    %11 = arith.muli %arg1, %c16_i32_7 : i32
    %c0_i32_8 = arith.constant 0 : i32
    %12 = arith.addi %11, %c0_i32_8 : i32
    %c0_9 = arith.constant 0 : index
    %c0_10 = arith.constant 0 : index
    %13 = arith.index_cast %12 : i32 to index
    %c1 = arith.constant 1 : index
    %c0_11 = arith.constant 0 : index
    %14 = vector.load %arg2[%c0_9, %c0_10, %13, %c1, %c0_11] : memref<1x1x18x24x8xbf16, #tpu.memory_space<vmem>>, vector<1x1x16x16x8xbf16>
    %15 = vector.shape_cast %14 : vector<1x1x16x16x8xbf16> to vector<16x16x8xbf16>
    %16 = vector.shape_cast %15 : vector<16x16x8xbf16> to vector<256x8xbf16>
    %c1_12 = arith.constant 1 : index
    %c0_13 = arith.constant 0 : index
    %c0_14 = arith.constant 0 : index
    %17 = vector.load %arg3[%c1_12, %c0_13, %c0_14] : memref<9x8x128xbf16, #tpu.memory_space<vmem>>, vector<1x8x128xbf16>
    %18 = vector.shape_cast %17 : vector<1x8x128xbf16> to vector<8x128xbf16>
    %cst_15 = arith.constant dense<0.000000e+00> : vector<256x128xf32>
    %19 = tpu.matmul %16, %18, %cst_15 {dimension_numbers = #tpu.dot_dimension_numbers<[1], [0], [0], [1], [0, 0, 1, 1], [], []>} : vector<256x8xbf16>, vector<8x128xbf16>, vector<256x128xf32> -> vector<256x128xf32>
    %20 = arith.addf %10, %19 : vector<256x128xf32>
    %c16_i32_16 = arith.constant 16 : i32
    %21 = arith.muli %arg1, %c16_i32_16 : i32
    %c0_i32_17 = arith.constant 0 : i32
    %22 = arith.addi %21, %c0_i32_17 : i32
    %c0_18 = arith.constant 0 : index
    %c0_19 = arith.constant 0 : index
    %23 = arith.index_cast %22 : i32 to index
    %c2 = arith.constant 2 : index
    %c0_20 = arith.constant 0 : index
    %24 = vector.load %arg2[%c0_18, %c0_19, %23, %c2, %c0_20] : memref<1x1x18x24x8xbf16, #tpu.memory_space<vmem>>, vector<1x1x16x16x8xbf16>
    %25 = vector.shape_cast %24 : vector<1x1x16x16x8xbf16> to vector<16x16x8xbf16>
    %26 = vector.shape_cast %25 : vector<16x16x8xbf16> to vector<256x8xbf16>
    %c2_21 = arith.constant 2 : index
    %c0_22 = arith.constant 0 : index
    %c0_23 = arith.constant 0 : index
    %27 = vector.load %arg3[%c2_21, %c0_22, %c0_23] : memref<9x8x128xbf16, #tpu.memory_space<vmem>>, vector<1x8x128xbf16>
    %28 = vector.shape_cast %27 : vector<1x8x128xbf16> to vector<8x128xbf16>
    %cst_24 = arith.constant dense<0.000000e+00> : vector<256x128xf32>
    %29 = tpu.matmul %26, %28, %cst_24 {dimension_numbers = #tpu.dot_dimension_numbers<[1], [0], [0], [1], [0, 0, 1, 1], [], []>} : vector<256x8xbf16>, vector<8x128xbf16>, vector<256x128xf32> -> vector<256x128xf32>
    %30 = arith.addf %20, %29 : vector<256x128xf32>
    %c16_i32_25 = arith.constant 16 : i32
    %31 = arith.muli %arg1, %c16_i32_25 : i32
    %c1_i32 = arith.constant 1 : i32
    %32 = arith.addi %31, %c1_i32 : i32
    %c0_26 = arith.constant 0 : index
    %c0_27 = arith.constant 0 : index
    %33 = arith.index_cast %32 : i32 to index
    %c0_28 = arith.constant 0 : index
    %c0_29 = arith.constant 0 : index
    %34 = vector.load %arg2[%c0_26, %c0_27, %33, %c0_28, %c0_29] : memref<1x1x18x24x8xbf16, #tpu.memory_space<vmem>>, vector<1x1x16x16x8xbf16>
    %35 = vector.shape_cast %34 : vector<1x1x16x16x8xbf16> to vector<16x16x8xbf16>
    %36 = vector.shape_cast %35 : vector<16x16x8xbf16> to vector<256x8xbf16>
    %c3 = arith.constant 3 : index
    %c0_30 = arith.constant 0 : index
    %c0_31 = arith.constant 0 : index
    %37 = vector.load %arg3[%c3, %c0_30, %c0_31] : memref<9x8x128xbf16, #tpu.memory_space<vmem>>, vector<1x8x128xbf16>
    %38 = vector.shape_cast %37 : vector<1x8x128xbf16> to vector<8x128xbf16>
    %cst_32 = arith.constant dense<0.000000e+00> : vector<256x128xf32>
    %39 = tpu.matmul %36, %38, %cst_32 {dimension_numbers = #tpu.dot_dimension_numbers<[1], [0], [0], [1], [0, 0, 1, 1], [], []>} : vector<256x8xbf16>, vector<8x128xbf16>, vector<256x128xf32> -> vector<256x128xf32>
    %40 = arith.addf %30, %39 : vector<256x128xf32>
    %c16_i32_33 = arith.constant 16 : i32
    %41 = arith.muli %arg1, %c16_i32_33 : i32
    %c1_i32_34 = arith.constant 1 : i32
    %42 = arith.addi %41, %c1_i32_34 : i32
    %c0_35 = arith.constant 0 : index
    %c0_36 = arith.constant 0 : index
    %43 = arith.index_cast %42 : i32 to index
    %c1_37 = arith.constant 1 : index
    %c0_38 = arith.constant 0 : index
    %44 = vector.load %arg2[%c0_35, %c0_36, %43, %c1_37, %c0_38] : memref<1x1x18x24x8xbf16, #tpu.memory_space<vmem>>, vector<1x1x16x16x8xbf16>
    %45 = vector.shape_cast %44 : vector<1x1x16x16x8xbf16> to vector<16x16x8xbf16>
    %46 = vector.shape_cast %45 : vector<16x16x8xbf16> to vector<256x8xbf16>
    %c4 = arith.constant 4 : index
    %c0_39 = arith.constant 0 : index
    %c0_40 = arith.constant 0 : index
    %47 = vector.load %arg3[%c4, %c0_39, %c0_40] : memref<9x8x128xbf16, #tpu.memory_space<vmem>>, vector<1x8x128xbf16>
    %48 = vector.shape_cast %47 : vector<1x8x128xbf16> to vector<8x128xbf16>
    %cst_41 = arith.constant dense<0.000000e+00> : vector<256x128xf32>
    %49 = tpu.matmul %46, %48, %cst_41 {dimension_numbers = #tpu.dot_dimension_numbers<[1], [0], [0], [1], [0, 0, 1, 1], [], []>} : vector<256x8xbf16>, vector<8x128xbf16>, vector<256x128xf32> -> vector<256x128xf32>
    %50 = arith.addf %40, %49 : vector<256x128xf32>
    %c16_i32_42 = arith.constant 16 : i32
    %51 = arith.muli %arg1, %c16_i32_42 : i32
    %c1_i32_43 = arith.constant 1 : i32
    %52 = arith.addi %51, %c1_i32_43 : i32
    %c0_44 = arith.constant 0 : index
    %c0_45 = arith.constant 0 : index
    %53 = arith.index_cast %52 : i32 to index
    %c2_46 = arith.constant 2 : index
    %c0_47 = arith.constant 0 : index
    %54 = vector.load %arg2[%c0_44, %c0_45, %53, %c2_46, %c0_47] : memref<1x1x18x24x8xbf16, #tpu.memory_space<vmem>>, vector<1x1x16x16x8xbf16>
    %55 = vector.shape_cast %54 : vector<1x1x16x16x8xbf16> to vector<16x16x8xbf16>
    %56 = vector.shape_cast %55 : vector<16x16x8xbf16> to vector<256x8xbf16>
    %c5 = arith.constant 5 : index
    %c0_48 = arith.constant 0 : index
    %c0_49 = arith.constant 0 : index
    %57 = vector.load %arg3[%c5, %c0_48, %c0_49] : memref<9x8x128xbf16, #tpu.memory_space<vmem>>, vector<1x8x128xbf16>
    %58 = vector.shape_cast %57 : vector<1x8x128xbf16> to vector<8x128xbf16>
    %cst_50 = arith.constant dense<0.000000e+00> : vector<256x128xf32>
    %59 = tpu.matmul %56, %58, %cst_50 {dimension_numbers = #tpu.dot_dimension_numbers<[1], [0], [0], [1], [0, 0, 1, 1], [], []>} : vector<256x8xbf16>, vector<8x128xbf16>, vector<256x128xf32> -> vector<256x128xf32>
    %60 = arith.addf %50, %59 : vector<256x128xf32>
    %c16_i32_51 = arith.constant 16 : i32
    %61 = arith.muli %arg1, %c16_i32_51 : i32
    %c2_i32 = arith.constant 2 : i32
    %62 = arith.addi %61, %c2_i32 : i32
    %c0_52 = arith.constant 0 : index
    %c0_53 = arith.constant 0 : index
    %63 = arith.index_cast %62 : i32 to index
    %c0_54 = arith.constant 0 : index
    %c0_55 = arith.constant 0 : index
    %64 = vector.load %arg2[%c0_52, %c0_53, %63, %c0_54, %c0_55] : memref<1x1x18x24x8xbf16, #tpu.memory_space<vmem>>, vector<1x1x16x16x8xbf16>
    %65 = vector.shape_cast %64 : vector<1x1x16x16x8xbf16> to vector<16x16x8xbf16>
    %66 = vector.shape_cast %65 : vector<16x16x8xbf16> to vector<256x8xbf16>
    %c6 = arith.constant 6 : index
    %c0_56 = arith.constant 0 : index
    %c0_57 = arith.constant 0 : index
    %67 = vector.load %arg3[%c6, %c0_56, %c0_57] : memref<9x8x128xbf16, #tpu.memory_space<vmem>>, vector<1x8x128xbf16>
    %68 = vector.shape_cast %67 : vector<1x8x128xbf16> to vector<8x128xbf16>
    %cst_58 = arith.constant dense<0.000000e+00> : vector<256x128xf32>
    %69 = tpu.matmul %66, %68, %cst_58 {dimension_numbers = #tpu.dot_dimension_numbers<[1], [0], [0], [1], [0, 0, 1, 1], [], []>} : vector<256x8xbf16>, vector<8x128xbf16>, vector<256x128xf32> -> vector<256x128xf32>
    %70 = arith.addf %60, %69 : vector<256x128xf32>
    %c16_i32_59 = arith.constant 16 : i32
    %71 = arith.muli %arg1, %c16_i32_59 : i32
    %c2_i32_60 = arith.constant 2 : i32
    %72 = arith.addi %71, %c2_i32_60 : i32
    %c0_61 = arith.constant 0 : index
    %c0_62 = arith.constant 0 : index
    %73 = arith.index_cast %72 : i32 to index
    %c1_63 = arith.constant 1 : index
    %c0_64 = arith.constant 0 : index
    %74 = vector.load %arg2[%c0_61, %c0_62, %73, %c1_63, %c0_64] : memref<1x1x18x24x8xbf16, #tpu.memory_space<vmem>>, vector<1x1x16x16x8xbf16>
    %75 = vector.shape_cast %74 : vector<1x1x16x16x8xbf16> to vector<16x16x8xbf16>
    %76 = vector.shape_cast %75 : vector<16x16x8xbf16> to vector<256x8xbf16>
    %c7 = arith.constant 7 : index
    %c0_65 = arith.constant 0 : index
    %c0_66 = arith.constant 0 : index
    %77 = vector.load %arg3[%c7, %c0_65, %c0_66] : memref<9x8x128xbf16, #tpu.memory_space<vmem>>, vector<1x8x128xbf16>
    %78 = vector.shape_cast %77 : vector<1x8x128xbf16> to vector<8x128xbf16>
    %cst_67 = arith.constant dense<0.000000e+00> : vector<256x128xf32>
    %79 = tpu.matmul %76, %78, %cst_67 {dimension_numbers = #tpu.dot_dimension_numbers<[1], [0], [0], [1], [0, 0, 1, 1], [], []>} : vector<256x8xbf16>, vector<8x128xbf16>, vector<256x128xf32> -> vector<256x128xf32>
    %80 = arith.addf %70, %79 : vector<256x128xf32>
    %c16_i32_68 = arith.constant 16 : i32
    %81 = arith.muli %arg1, %c16_i32_68 : i32
    %c2_i32_69 = arith.constant 2 : i32
    %82 = arith.addi %81, %c2_i32_69 : i32
    %c0_70 = arith.constant 0 : index
    %c0_71 = arith.constant 0 : index
    %83 = arith.index_cast %82 : i32 to index
    %c2_72 = arith.constant 2 : index
    %c0_73 = arith.constant 0 : index
    %84 = vector.load %arg2[%c0_70, %c0_71, %83, %c2_72, %c0_73] : memref<1x1x18x24x8xbf16, #tpu.memory_space<vmem>>, vector<1x1x16x16x8xbf16>
    %85 = vector.shape_cast %84 : vector<1x1x16x16x8xbf16> to vector<16x16x8xbf16>
    %86 = vector.shape_cast %85 : vector<16x16x8xbf16> to vector<256x8xbf16>
    %c8 = arith.constant 8 : index
    %c0_74 = arith.constant 0 : index
    %c0_75 = arith.constant 0 : index
    %87 = vector.load %arg3[%c8, %c0_74, %c0_75] : memref<9x8x128xbf16, #tpu.memory_space<vmem>>, vector<1x8x128xbf16>
    %88 = vector.shape_cast %87 : vector<1x8x128xbf16> to vector<8x128xbf16>
    %cst_76 = arith.constant dense<0.000000e+00> : vector<256x128xf32>
    %89 = tpu.matmul %86, %88, %cst_76 {dimension_numbers = #tpu.dot_dimension_numbers<[1], [0], [0], [1], [0, 0, 1, 1], [], []>} : vector<256x8xbf16>, vector<8x128xbf16>, vector<256x128xf32> -> vector<256x128xf32>
    %90 = arith.addf %80, %89 : vector<256x128xf32>
    %c0_77 = arith.constant 0 : index
    %c0_78 = arith.constant 0 : index
    %91 = vector.load %arg4[%c0_77, %c0_78] : memref<1x128xf32, #tpu.memory_space<vmem>>, vector<1x128xf32>
    %92 = vector.broadcast %91 : vector<1x128xf32> to vector<256x128xf32>
    %93 = arith.mulf %90, %92 : vector<256x128xf32>
    %c0_79 = arith.constant 0 : index
    %c0_80 = arith.constant 0 : index
    %94 = vector.load %arg5[%c0_79, %c0_80] : memref<1x128xf32, #tpu.memory_space<vmem>>, vector<1x128xf32>
    %95 = vector.broadcast %94 : vector<1x128xf32> to vector<256x128xf32>
    %96 = arith.addf %93, %95 : vector<256x128xf32>
    %cst_81 = arith.constant 0.000000e+00 : f32
    %97 = vector.broadcast %cst_81 : f32 to vector<256x128xf32>
    %98 = arith.maximumf %96, %97 : vector<256x128xf32>
    %99 = vector.shape_cast %98 : vector<256x128xf32> to vector<16x16x128xf32>
    %100 = arith.truncf %99 : vector<16x16x128xf32> to vector<16x16x128xbf16>
    %c0_82 = arith.constant 0 : index
    %c0_83 = arith.constant 0 : index
    %c0_84 = arith.constant 0 : index
    %c0_85 = arith.constant 0 : index
    %101 = vector.load %arg6[%c0_82, %c0_83, %c0_84, %c0_85] : memref<1x16x16x128xbf16, #tpu.memory_space<vmem>>, vector<1x16x16x128xbf16>
    %102 = vector.shape_cast %101 : vector<1x16x16x128xbf16> to vector<16x16x128xbf16>
    %103 = vector.shape_cast %100 : vector<16x16x128xbf16> to vector<1x16x16x128xbf16>
    tpu.vector_store %arg6[%c0_82, %c0_83, %c0_84, %c0_85], %103 {strides = array<i32>} : memref<1x16x16x128xbf16, #tpu.memory_space<vmem>>, vector<1x16x16x128xbf16>,
    return
  }
  func.func @transform_0(%arg0: i32, %arg1: i32) -> (i32, i32, i32, i32, i32) {
    %c0_i32 = arith.constant 0 : i32
    %c0_i32_0 = arith.constant 0 : i32
    %c0_i32_1 = arith.constant 0 : i32
    %c0_i32_2 = arith.constant 0 : i32
    %c0_i32_3 = arith.constant 0 : i32
    return %arg0, %c0_i32, %c0_i32_0, %c0_i32_1, %c0_i32_2 : i32, i32, i32, i32, i32
  }
  func.func @transform_1(%arg0: i32, %arg1: i32) -> (i32, i32, i32) {
    %c0_i32 = arith.constant 0 : i32
    %c0_i32_0 = arith.constant 0 : i32
    %c0_i32_1 = arith.constant 0 : i32
    %c0_i32_2 = arith.constant 0 : i32
    return %c0_i32, %c0_i32_0, %c0_i32_1 : i32, i32, i32
  }
  func.func @transform_2(%arg0: i32, %arg1: i32) -> (i32, i32) {
    %c0_i32 = arith.constant 0 : i32
    %c0_i32_0 = arith.constant 0 : i32
    %c0_i32_1 = arith.constant 0 : i32
    return %c0_i32, %c0_i32_0 : i32, i32
  }
  func.func @transform_3(%arg0: i32, %arg1: i32) -> (i32, i32) {
    %c0_i32 = arith.constant 0 : i32
    %c0_i32_0 = arith.constant 0 : i32
    %c0_i32_1 = arith.constant 0 : i32
    return %c0_i32, %c0_i32_0 : i32, i32
  }
  func.func @transform_4(%arg0: i32, %arg1: i32) -> (i32, i32, i32, i32) {
    %c0_i32 = arith.constant 0 : i32
    %c0_i32_0 = arith.constant 0 : i32
    %c0_i32_1 = arith.constant 0 : i32
    return %arg0, %arg1, %c0_i32, %c0_i32_0 : i32, i32, i32, i32
  }
}

</mosaic_0001>

<bundles_post_ra>
// kernel: tpu_custom_call.1
= control target key start
LH: loop header
LB: loop body
LE: loop exit
PB: predicated region body
PF: predicated region fallthrough
CT: control target
= control target key end

     0   :  { %9 = vsyncpa [#allocation3], 0  ;;  %s6876_s0 = inlined_call_operand.vmem [shape: bf16[2,1,18,24,8], index: 0, kind: input, shape index: {}]   ;;  %s6877_s1 = inlined_call_operand.vmem [shape: bf16[9,8,128], index: 1, kind: input, shape index: {}]   ;;  %s6878_s2 = inlined_call_operand.vmem [shape: f32[1,128], index: 2, kind: input, shape index: {}]   ;;  %s6879_s3 = inlined_call_operand.vmem [shape: f32[1,128], index: 3, kind: input, shape index: {}]   ;;  %s6880_s4 = inlined_call_operand.hbm [shape: bf16[2,16,16,128], index: 4, kind: output, shape index: {}]  }
   0x1   :  { %11 = vsyncpa [#allocation3 + $0x1], 0  ;;  %s5365_s15 = smov 0   ;;  %s5367_s16 = smov 0  }
   0x2   :  { %s5369_s17 = smov 0   ;;  %s5371_s18 = smov 0  }
   0x3   :  { %s5373_s19 = smov 0   ;;  %s5375_s20 = smov 0  }
   0x4 LB: > { %s4403_s21 = sadd.s32 4294967295, %s5336_s20   ;;  %s4404_s22 = sadd.s32 4294967294, %s5336_s20   ;;  %s5336_s20 = sphi %s5375_s20, %s17_s20   ;;  %s5332_s19 = sphi %s5373_s19, %s6895_s19   ;;  %s5328_s18 = sphi %s5371_s18, %s6894_s18   ;;  %s5324_s17 = sphi %s5369_s17, %s6893_s17   ;;  %s5320_s16 = sphi %s5367_s16, %s6892_s16   ;;  %s5316_s15 = sphi %s5365_s15, %s6891_s15  }
   0x5   : > { %s29_s23 = sadd.s32 1, %s5332_s19  ;;  %s127_s24 = sadd.s32 1, %s5324_s17 }
   0x6   : > { %p31_p0 = scmp.ge.s32.totalorder %s29_s23, 2  ;;  %p137_p1 = scmp.ne.s32.totalorder %s5324_s17, %s5320_s16 }
   0x7   : > { %p138_p2 = scmp.eq.s32.totalorder %s4403_s21, 1  ;;  %p143_p3 = scmp.ne.s32.totalorder %s5320_s16, %s5316_s15 }
   0x8   : > { %s6897_s23 = smov (%p31_p0, %s29_s23), 0  ;;  %p144_p5 = scmp.eq.s32.totalorder %s4404_s22, 1 }
   0x9   : > { %p5405_p4 = por %p138_p2, %p137_p1  ;;  %s122_s26 = ssub.s32 %s5332_s19, %s6897_s23 }
   0xa   : > { %p4407_p6 = scmp.ge.s32.totalorder %s5336_s20, 1  ;;  %p125_p7 = scmp.eq.s32.totalorder %s122_s26, 0 }
   0xb   : > { %p5412_p8 = por %p144_p5, %p143_p3  ;;  %p179_p9 = scmp.lt.s32.totalorder %s5336_s20, 3 }
   0xc   : > { %s5418_s28 = scalar_select %p125_p7, %s5324_s17, %s127_s24  }
   0xd   : > { %p180_p10 = pnand %p4407_p6, %p179_p9 }
   0xf   : > { %183 = sbr.rel (%p180_p10) target bundleno = 775 (0x307), region = 36 }
  0x14   : > { %v4410_v0 = vld [vmem:[%s6877_s1 + $0x4] sm:$0xf]  ;;  %vm751_vm0 = vcmask 1043456   ;;  %p205_p11 = scmp.lt.s32.totalorder %s5328_s18, 1  ;;  %v4523_v2 = vld [vmem:[%s6877_s1 + $0x8] sm:$0xf] }
  0x15   : > { %v753_v1 = vsel %vm751_vm0, %v4410_v0, 0  ;;  %v1326_v3 = vsel %vm751_vm0, %v4523_v2, 0  ;;  %v4572_v4 = vld [vmem:[%s6877_s1 + $0xc] sm:$0xf]  ;;  %v248_v5 = vld [vmem:[%s6877_s1] sm:$0xf] }
  0x16   : > { %5143 = vmatpush.bf16.msra.mxu1 %v753_v1  ;;  %5144 = vmatpush.bf16.msra.mxu2 %v753_v1  ;;  %s206_s7 = scalar_select %p205_p11, %s5328_s18, 1  ;;  %v4701_v6 = vld [vmem:[%s6877_s1 + $0x10] sm:$0xf]  ;;  %v1616_v7 = vsel %vm751_vm0, %v4572_v4, 0  ;;  %v973_v8 = vsel %vm751_vm0, %v248_v5, 0  ;;  %vm702_vm4 = vcmask 64512  }
  0x17   : > { %5145 = vmatpush.bf16.msra.mxu3 %v753_v1  ;;  %762 = vmatpush.bf16.msra.mxu0 %v753_v1  ;;  %v2270_v9 = vsel %vm751_vm0, %v4701_v6, 0  ;;  %vm265_vm1 = vsmask.f32 3328  ;;  %vm266_vm2 = vsmask.f32 7440  ;;  %vm1112_vm5 = vcmask 1042432  }
  0x18   : > { %s5146_s14 = smul.u32 216, %s206_s7  ;;  %vm5457_vm3 = vmor %vm265_vm1, %vm266_vm2  ;;  %vm1113_vm6 = vcmask 1046532   ;;  %s5047_s5 = sshll.u32 %s5328_s18, 7 }
  0x19   : > { %vm5631_vm7 = vmor %vm1112_vm5, %vm1113_vm6  ;;  %s4316_s8 = scalar_lea.hbm %s6880_s4, %s5047_s5 }
  0x1a   : > { %1335 = vmatpush.bf16.msrb.mxu2 %v1326_v3  ;;  %982 = vmatpush.bf16.msrb.mxu1 %v973_v8  ;;  %s5445_s24 = scalar_lea.vmem %s6876_s0, %s5146_s14  ;;  %s202_s14 = sand.u32 1, %s5320_s16  }
  0x1b   : > { %1625 = vmatpush.bf16.msrb.mxu3 %v1616_v7  ;;  %2279 = vmatpush.bf16.msrb.mxu0 %v2270_v9  ;;  %v224_v10 = vld [vmem:[%s5445_s24 + $0x30] sm:$0xf]  ;;  %v225_v11 = vld [vmem:[%s5445_s24 + $0x34] sm:$0xf]  ;;  %v253_v12 = vld [vmem:[%s5445_s24 + $0x38] sm:$0x1] }
  0x1c   : > { %v365_v13 = vshrl.u32 %v224_v10, 16  ;;  %v368_v14 = vshll.u32 %v224_v10, 16  ;;  %v374_v15 = vshll.u32 %v225_v11, 16  ;;  %v378_v16 = vshrl.u32 %v225_v11, 16  ;;  %v232_v17 = vld [vmem:[%s5445_s24 + $0x60] sm:$0xf] }
  0x1d   : > { %v384_v18 = vshll.u32 %v253_v12, 16  ;;  %v233_v19 = vld [vmem:[%s5445_s24 + $0x64] sm:$0xf]  ;;  %v257_v20 = vld [vmem:[%s5445_s24 + $0x68] sm:$0x1]  ;;  %v461_v21 = vshrl.u32 %v232_v17, 16 }
  0x1e   : > { %v367_v22 = vrot.slane %v365_v13, 4  ;;  %v370_v23 = vrot.slane %v368_v14, 5  ;;  %v376_v24 = vrot.slane %v374_v15, 5  ;;  %v380_v25 = vrot.slane %v378_v16, 4  ;;  %v240_v26 = vld [vmem:[%s5445_s24 + $0x90] sm:$0xf] }
  0x1f   : > { %v386_v27 = vrot.slane %v384_v18, 5  ;;  %v463_v28 = vrot.slane %v461_v21, 4  ;;  %v464_v29 = vshll.u32 %v232_v17, 16  ;;  %v470_v30 = vshll.u32 %v233_v19, 16  ;;  %v241_v35 = vld [vmem:[%s5445_s24 + $0x94] sm:$0xf] }
  0x20   : > { %v371_v31 = vor.u32 %v370_v23, %v367_v22  ;;  %v381_v32 = vor.u32 %v380_v25, %v376_v24  ;;  %v474_v33 = vshrl.u32 %v233_v19, 16  ;;  %v480_v34 = vshll.u32 %v257_v20, 16  ;;  %v261_v45 = vld [vmem:[%s5445_s24 + $0x98] sm:$0x1]  ;;  %v216_v61 = vld [vmem:[%s5445_s24] sm:$0xf] }
  0x21   : > { %v466_v37 = vrot.slane %v464_v29, 5  ;;  %v472_v38 = vrot.slane %v470_v30, 5  ;;  %v557_v39 = vshrl.u32 %v240_v26, 16  ;;  %v560_v47 = vshll.u32 %v240_v26, 16  ;;  %v5470_v1 = vld [vmem:[%s5445_s24 + $0x4] sm:$0xf] }
  0x22   : > { %v372_v40 = vrot.slane %v371_v31, 4  ;;  %v382_v41 = vrot.slane %v381_v32, 4  ;;  %v476_v42 = vrot.slane %v474_v33, 4  ;;  %v482_v43 = vrot.slane %v480_v34, 5  ;;  %v5473_v2 = vld [vmem:[%s5445_s24 + $0x8] sm:$0x1] }
  0x23   : > { %v467_v44 = vor.u32 %v466_v37, %v463_v28  ;;  %v559_v46 = vrot.slane %v557_v39, 4  ;;  %v566_v48 = vshll.u32 %v241_v35, 16  ;;  %v570_v52 = vshrl.u32 %v241_v35, 16  ;;  %v226_v19 = vld [vmem:[%s5445_s24 + $0x3c] sm:$0xf]  ;;  %s6528_s21 = sshll.u32 %s202_s14, 7 }
  0x24   : > { %v377_v49 = vsel %vm5457_vm3, %v372_v40, %v376_v24  ;;  %v387_v50 = vsel %vm5457_vm3, %v382_v41, %v386_v27  ;;  %v477_v51 = vor.u32 %v476_v42, %v472_v38  ;;  %v562_v56 = vrot.slane %v560_v47, 5  ;;  %v5485_v20 = vld [vmem:[%s5445_s24 + $0x40] sm:$0xf]  ;;  %v5490_v25 = vld [vmem:[%s5445_s24 + $0x44] sm:$0x1]  ;;  %s6552_s22 = scalar_lea.vmem [#allocation2], %s6528_s21 }
  0x25   : > { %v662_v53 = vunpack.c.l.b16 %v377_v49  ;;  %v663_v54 = vunpack.c.l.b16 %v387_v50  ;;  %v468_v55 = vrot.slane %v467_v44, 4  ;;  %v568_v58 = vrot.slane %v566_v48, 5  ;;  %v234_v33 = vld [vmem:[%s5445_s24 + $0x6c] sm:$0xf]  ;;  %v258_v47 = vld [vmem:[%s5445_s24 + $0x74] sm:$0x1] }
  0x26   : > { %v478_v57 = vrot.slane %v477_v51, 4  ;;  %v572_v59 = vrot.slane %v570_v52, 4  ;;  %v576_v60 = vshll.u32 %v261_v45, 16  ;;  %v563_v0 = vor.u32 %v562_v56, %v559_v46  ;;  %s4317_s9 = sshll.u32 %s6552_s22, 4  ;;  %s4319_s10 = sshll.u32 %s4316_s8, 4  ;;  %s4318_s9 = int_to_ptr.vmem [resolvable:$true] %s4317_s9  ;;  %s4320_s10 = int_to_ptr.hbm [resolvable:$true] %s4319_s10 }
  0x27   : > { %v690_v62 = vpack.c.b16 %v663_v54, %v662_v53  ;;  %v473_v63 = vsel %vm5457_vm3, %v468_v55, %v472_v38  ;;  %v269_v9 = vshrl.u32 %v216_v61, 16  ;;  %v272_v10 = vshll.u32 %v216_v61, 16  ;;  %v242_v61 = vld [vmem:[%s5445_s24 + $0x9c] sm:$0xf]  ;;  %s4302_s18 = scalar_lea.sflag [#allocation3], %s202_s14  ;;  %s5272_s11 = sshra.s32 %s4320_s10, 4  ;;  %s5273_s11 = int_to_ptr.hbm [resolvable:$true] %s5272_s11 }
  0x28   : > { %v483_v3 = vsel %vm5457_vm3, %v478_v57, %v482_v43  ;;  %v670_v4 = vunpack.c.l.b16 %v473_v63  ;;  %v573_v5 = vor.u32 %v572_v59, %v568_v58  ;;  %v578_v6 = vrot.slane %v576_v60, 5  ;;  %v235_v43 = vld [vmem:[%s5445_s24 + $0x70] sm:$0xf]  ;;  %s5274_s12 = scalar_lea.hbm %s5273_s11, 128  ;;  %p5279_p1 = scmp.lt.s32.totalorder %s5273_s11, %s6880_s4 }
  0x29   : > { %4415 = vmatmul.msk.bf16.vlgmr.msra.gmra.mxu1 %vm702_vm4, %v690_v62  ;;  %v671_v7 = vunpack.c.l.b16 %v483_v3  ;;  %v564_v8 = vrot.slane %v563_v0, 4  ;;  %v278_v12 = vshll.u32 %v5470_v1, 16  ;;  %v282_v13 = vshrl.u32 %v5470_v1, 16  ;;  %v243_v3 = vld [vmem:[%s5445_s24 + $0xa0] sm:$0xf]  ;;  %p5275_p12 = scmp.ne.s32.totalorder %s5273_s11, %s5274_s12 }
  0x2a   : > { %v574_v11 = vrot.slane %v573_v5, 4  ;;  %v288_v14 = vshll.u32 %v5473_v2, 16  ;;  %v271_v17 = vrot.slane %v269_v9, 4  ;;  %v274_v18 = vrot.slane %v272_v10, 5 }
  0x2b   : > { %v694_v15 = vpack.c.b16 %v671_v7, %v670_v4  ;;  %v569_v16 = vsel %vm5457_vm3, %v564_v8, %v568_v58  ;;  %v280_v23 = vrot.slane %v278_v12, 5  ;;  %v284_v24 = vrot.slane %v282_v13, 4  ;;  %v262_v8 = vld [vmem:[%s5445_s24 + $0xa4] sm:$0x1]  ;;  %p5276_p13 = pnand %p5275_p12, %p5405_p4 }
  0x2c   : > { %v579_v21 = vsel %vm5457_vm3, %v574_v11, %v578_v6  ;;  %v678_v22 = vunpack.c.l.b16 %v569_v16  ;;  %v275_v27 = vor.u32 %v274_v18, %v271_v17  ;;  %v290_v28 = vrot.slane %v288_v14, 5 }
  0x2d   : > { %4419 = vmatmul.msk.bf16.vlgmr.msra.gmra.mxu2 %vm702_vm4, %v694_v15  ;;  %v679_v26 = vunpack.c.l.b16 %v579_v21  ;;  %v285_v29 = vor.u32 %v284_v24, %v280_v23  ;;  %v389_v30 = vshrl.u32 %v226_v19, 16  ;;  %v392_v31 = vshll.u32 %v226_v19, 16  ;;  %p5277_p0 = pneg %p5276_p13 }
  0x2e   : > { %v398_v32 = vshll.u32 %v5485_v20, 16  ;;  %v276_v35 = vrot.slane %v275_v27, 4  ;;  %v402_v37 = vshrl.u32 %v5485_v20, 16  ;;  %v408_v38 = vshll.u32 %v5490_v25, 16 }
  0x2f   : > { %v698_v34 = vpack.c.b16 %v679_v26, %v678_v22  ;;  %v286_v39 = vrot.slane %v285_v29, 4  ;;  %v391_v40 = vrot.slane %v389_v30, 4  ;;  %v394_v41 = vrot.slane %v392_v31, 5  ;;  %v218_v22 = vld [vmem:[%s5445_s24 + $0xc] sm:$0xf] }
  0x30   : > { %v400_v42 = vrot.slane %v398_v32, 5  ;;  %v281_v44 = vsel %vm5457_vm3, %v276_v35, %v280_v23  ;;  %v404_v45 = vrot.slane %v402_v37, 4  ;;  %v410_v46 = vrot.slane %v408_v38, 5  ;;  %v5519_v32 = vld [vmem:[%s5445_s24 + $0x14] sm:$0x1] }
  0x31   : > { %4423 = vmatmul.msk.bf16.vlgmr.msra.gmra.mxu3 %vm702_vm4, %v698_v34  ;;  %v485_v48 = vshrl.u32 %v234_v33, 16  ;;  %v291_v49 = vsel %vm5457_vm3, %v286_v39, %v290_v28  ;;  %v654_v50 = vunpack.c.l.b16 %v281_v44  ;;  %v395_v51 = vor.u32 %v394_v41, %v391_v40  ;;  %v5516_v28 = vld [vmem:[%s5445_s24 + $0x10] sm:$0xf] }
  0x32   : > { %v488_v52 = vshll.u32 %v234_v33, 16  ;;  %v655_v53 = vunpack.c.l.b16 %v291_v49  ;;  %v405_v54 = vor.u32 %v404_v45, %v400_v42  ;;  %v494_v56 = vshll.u32 %v235_v43, 16 }
  0x33   : > { %v487_v55 = vrot.slane %v485_v48, 4  ;;  %v396_v57 = vrot.slane %v395_v51, 4  ;;  %v498_v59 = vshrl.u32 %v235_v43, 16  ;;  %v504_v60 = vshll.u32 %v258_v47, 16  ;;  %v5529_v47 = vld [vmem:[%s5445_s24 + $0x4c] sm:$0xf] }
  0x34   : > { %v490_v58 = vrot.slane %v488_v52, 5  ;;  %v686_v62 = vpack.c.b16 %v655_v53, %v654_v50  ;;  %v406_v63 = vrot.slane %v405_v54, 4  ;;  %v496_v0 = vrot.slane %v494_v56, 5  ;;  %v5534_v56 = vld [vmem:[%s5445_s24 + $0x50] sm:$0x1] }
  0x35   : > { %v401_v4 = vsel %vm5457_vm3, %v396_v57, %v400_v42  ;;  %v500_v6 = vrot.slane %v498_v59, 4  ;;  %v506_v7 = vrot.slane %v504_v60, 5  ;;  %v581_v11 = vshrl.u32 %v242_v61, 16  ;;  %v228_v42 = vld [vmem:[%s5445_s24 + $0x48] sm:$0xf] }
  0x36   : > { %v491_v5 = vor.u32 %v490_v58, %v487_v55  ;;  %4411 = vmatmul.msk.bf16.vlgmr.msra.gmra.mxu0 %vm702_vm4, %v686_v62  ;;  %v411_v9 = vsel %vm5457_vm3, %v406_v63, %v410_v46  ;;  %v664_v10 = vunpack.c.l.b16 %v401_v4  ;;  %v584_v12 = vshll.u32 %v242_v61, 16 }
  0x37   : > { %v665_v13 = vunpack.c.l.b16 %v411_v9  ;;  %v501_v15 = vor.u32 %v500_v6, %v496_v0  ;;  %v590_v16 = vshll.u32 %v243_v3, 16  ;;  %v583_v17 = vrot.slane %v581_v11, 4 }
  0x38   : > { %v492_v14 = vrot.slane %v491_v5, 4  ;;  %v586_v18 = vrot.slane %v584_v12, 5  ;;  %v594_v19 = vshrl.u32 %v243_v3, 16  ;;  %v600_v21 = vshll.u32 %v262_v8, 16  ;;  %v236_v3 = vld [vmem:[%s5445_s24 + $0x78] sm:$0xf] }
  0x39   : > { %v691_v23 = vpack.c.b16 %v665_v13, %v664_v10  ;;  %v502_v26 = vrot.slane %v501_v15, 4  ;;  %v592_v27 = vrot.slane %v590_v16, 5  ;;  %v293_v35 = vshrl.u32 %v218_v22, 16  ;;  %v237_v8 = vld [vmem:[%s5445_s24 + $0x7c] sm:$0xf] }
  0x3a   : > { %v497_v24 = vsel %vm5457_vm3, %v492_v14, %v496_v0  ;;  %v587_v30 = vor.u32 %v586_v18, %v583_v17  ;;  %v596_v31 = vrot.slane %v594_v19, 4  ;;  %v602_v34 = vrot.slane %v600_v21, 5  ;;  %v259_v16 = vld [vmem:[%s5445_s24 + $0x80] sm:$0x1] }
  0x3b   : > { %v672_v29 = vunpack.c.l.b16 %v497_v24  ;;  %4416 = vmatmul.msk.bf16.gmra.mxu1 %vm702_vm4, %v691_v23  ;;  %v507_v33 = vsel %vm5457_vm3, %v502_v26, %v506_v7  ;;  %v296_v37 = vshll.u32 %v218_v22, 16  ;;  %v302_v41 = vshll.u32 %v5516_v28, 16 }
  0x3c   : > { %v673_v38 = vunpack.c.l.b16 %v507_v33  ;;  %v588_v39 = vrot.slane %v587_v30, 4  ;;  %v597_v40 = vor.u32 %v596_v31, %v592_v27  ;;  %v295_v43 = vrot.slane %v293_v35, 4 }
  0x3d   : > { %v298_v44 = vrot.slane %v296_v37, 5  ;;  %v306_v45 = vshrl.u32 %v5516_v28, 16  ;;  %v312_v46 = vshll.u32 %v5519_v32, 16  ;;  %v304_v51 = vrot.slane %v302_v41, 5 }
  0x3e   : > { %v695_v48 = vpack.c.b16 %v673_v38, %v672_v29  ;;  %v593_v49 = vsel %vm5457_vm3, %v588_v39, %v592_v27  ;;  %v598_v50 = vrot.slane %v597_v40, 4  ;;  %v413_v58 = vshrl.u32 %v228_v42, 16  ;;  %v245_v39 = vld [vmem:[%s5445_s24 + $0xac] sm:$0xf]  ;;  %v263_v40 = vld [vmem:[%s5445_s24 + $0xb0] sm:$0x1] }
  0x3f   : > { %v680_v52 = vunpack.c.l.b16 %v593_v49  ;;  %v299_v53 = vor.u32 %v298_v44, %v295_v43  ;;  %v308_v54 = vrot.slane %v306_v45, 4  ;;  %v314_v55 = vrot.slane %v312_v46, 5 }
  0x40   : > { %4420 = vmatmul.msk.bf16.gmra.mxu2 %vm702_vm4, %v695_v48  ;;  %v603_v57 = vsel %vm5457_vm3, %v598_v50, %v602_v34  ;;  %v416_v59 = vshll.u32 %v228_v42, 16  ;;  %v422_v60 = vshll.u32 %v5529_v47, 16  ;;  %v426_v0 = vshrl.u32 %v5529_v47, 16  ;;  %v244_v34 = vld [vmem:[%s5445_s24 + $0xa8] sm:$0xf] }
  0x41   : > { %v681_v61 = vunpack.c.l.b16 %v603_v57  ;;  %v300_v62 = vrot.slane %v299_v53, 4  ;;  %v309_v63 = vor.u32 %v308_v54, %v304_v51  ;;  %v415_v4 = vrot.slane %v413_v58, 4 }
  0x42   : > { %v418_v5 = vrot.slane %v416_v59, 5  ;;  %v424_v6 = vrot.slane %v422_v60, 5  ;;  %v432_v7 = vshll.u32 %v5534_v56, 16  ;;  %v428_v12 = vrot.slane %v426_v0, 4  ;;  %v220_v59 = vld [vmem:[%s5445_s24 + $0x18] sm:$0xf] }
  0x43   : > { %v699_v9 = vpack.c.b16 %v681_v61, %v680_v52  ;;  %v305_v10 = vsel %vm5457_vm3, %v300_v62, %v304_v51  ;;  %v310_v11 = vrot.slane %v309_v63, 4  ;;  %v509_v17 = vshrl.u32 %v236_v3, 16  ;;  %v5562_v63 = vld [vmem:[%s5445_s24 + $0x1c] sm:$0xf]  ;;  %v5565_v0 = vld [vmem:[%s5445_s24 + $0x20] sm:$0x1] }
  0x44   : > { %v656_v13 = vunpack.c.l.b16 %v305_v10  ;;  %v419_v14 = vor.u32 %v418_v5, %v415_v4  ;;  %v434_v15 = vrot.slane %v432_v7, 5  ;;  %v429_v19 = vor.u32 %v428_v12, %v424_v6 }
  0x45   : > { %4424 = vmatmul.msk.bf16.gmra.mxu3 %vm702_vm4, %v699_v9  ;;  %v315_v18 = vsel %vm5457_vm3, %v310_v11, %v314_v55  ;;  %v512_v21 = vshll.u32 %v236_v3, 16  ;;  %v518_v22 = vshll.u32 %v237_v8, 16  ;;  %v511_v26 = vrot.slane %v509_v17, 4 }
  0x46   : > { %v657_v23 = vunpack.c.l.b16 %v315_v18  ;;  %v420_v24 = vrot.slane %v419_v14, 4  ;;  %v522_v27 = vshrl.u32 %v237_v8, 16  ;;  %v430_v29 = vrot.slane %v429_v19, 4 }
  0x47   : > { %v514_v30 = vrot.slane %v512_v21, 5  ;;  %v520_v31 = vrot.slane %v518_v22, 5  ;;  %v528_v33 = vshll.u32 %v259_v16, 16  ;;  %v605_v48 = vshrl.u32 %v244_v34, 16  ;;  %v5575_v21 = vld [vmem:[%s5445_s24 + $0x58] sm:$0xf] }
  0x48   : > { %v687_v35 = vpack.c.b16 %v657_v23, %v656_v13  ;;  %v425_v37 = vsel %vm5457_vm3, %v420_v24, %v424_v6  ;;  %v524_v38 = vrot.slane %v522_v27, 4  ;;  %v435_v41 = vsel %vm5457_vm3, %v430_v29, %v434_v15  ;;  %v230_v15 = vld [vmem:[%s5445_s24 + $0x54] sm:$0xf]  ;;  %v5580_v27 = vld [vmem:[%s5445_s24 + $0x5c] sm:$0x1] }
  0x49   : > { %v666_v42 = vunpack.c.l.b16 %v425_v37  ;;  %v515_v43 = vor.u32 %v514_v30, %v511_v26  ;;  %v530_v44 = vrot.slane %v528_v33, 5  ;;  %v667_v45 = vunpack.c.l.b16 %v435_v41 }
  0x4a   : > { %4412 = vmatmul.msk.bf16.gmra.mxu0 %vm702_vm4, %v687_v35  ;;  %v525_v46 = vor.u32 %v524_v38, %v520_v31  ;;  %v608_v49 = vshll.u32 %v244_v34, 16  ;;  %v614_v51 = vshll.u32 %v245_v39, 16  ;;  %v618_v52 = vshrl.u32 %v245_v39, 16  ;;  %v238_v39 = vld [vmem:[%s5445_s24 + $0x84] sm:$0xf] }
  0x4b   : > { %v516_v50 = vrot.slane %v515_v43, 4  ;;  %v624_v53 = vshll.u32 %v263_v40, 16  ;;  %v692_v54 = vpack.c.b16 %v667_v45, %v666_v42  ;;  %v607_v57 = vrot.slane %v605_v48, 4 }
  0x4c   : > { %v526_v55 = vrot.slane %v525_v46, 4  ;;  %v610_v58 = vrot.slane %v608_v49, 5  ;;  %v616_v61 = vrot.slane %v614_v51, 5  ;;  %v620_v62 = vrot.slane %v618_v52, 4  ;;  %v239_v49 = vld [vmem:[%s5445_s24 + $0x88] sm:$0xf] }
  0x4d   : > { %v521_v60 = vsel %vm5457_vm3, %v516_v50, %v520_v31  ;;  %4417 = vmatmul.msk.bf16.gmra.mxu1 %vm702_vm4, %v692_v54  ;;  %v626_v6 = vrot.slane %v624_v53, 5  ;;  %v317_v9 = vshrl.u32 %v220_v59, 16  ;;  %v320_v10 = vshll.u32 %v220_v59, 16  ;;  %v260_v53 = vld [vmem:[%s5445_s24 + $0x8c] sm:$0x1] }
  0x4e   : > { %v531_v3 = vsel %vm5457_vm3, %v526_v55, %v530_v44  ;;  %v674_v4 = vunpack.c.l.b16 %v521_v60  ;;  %v611_v5 = vor.u32 %v610_v58, %v607_v57  ;;  %v621_v8 = vor.u32 %v620_v62, %v616_v61 }
  0x4f   : > { %v675_v7 = vunpack.c.l.b16 %v531_v3  ;;  %v326_v12 = vshll.u32 %v5562_v63, 16  ;;  %v330_v13 = vshrl.u32 %v5562_v63, 16  ;;  %v336_v14 = vshll.u32 %v5565_v0, 16 }
  0x50   : > { %v612_v11 = vrot.slane %v611_v5, 4  ;;  %v622_v17 = vrot.slane %v621_v8, 4  ;;  %v319_v18 = vrot.slane %v317_v9, 4  ;;  %v322_v19 = vrot.slane %v320_v10, 5  ;;  %v246_v8 = vld [vmem:[%s5445_s24 + $0xb4] sm:$0xf] }
  0x51   : > { %v696_v16 = vpack.c.b16 %v675_v7, %v674_v4  ;;  %v328_v23 = vrot.slane %v326_v12, 5  ;;  %v332_v24 = vrot.slane %v330_v13, 4  ;;  %v338_v26 = vrot.slane %v336_v14, 5  ;;  %v247_v12 = vld [vmem:[%s5445_s24 + $0xb8] sm:$0xf] }
  0x52   : > { %v617_v22 = vsel %vm5457_vm3, %v612_v11, %v616_v61  ;;  %v627_v29 = vsel %vm5457_vm3, %v622_v17, %v626_v6  ;;  %v323_v31 = vor.u32 %v322_v19, %v319_v18  ;;  %v437_v33 = vshrl.u32 %v230_v15, 16  ;;  %v264_v17 = vld [vmem:[%s5445_s24 + $0xbc] sm:$0x1] }
  0x53   : > { %4421 = vmatmul.msk.bf16.gmra.mxu2 %vm702_vm4, %v696_v16  ;;  %v682_v30 = vunpack.c.l.b16 %v617_v22  ;;  %v683_v34 = vunpack.c.l.b16 %v627_v29  ;;  %v333_v35 = vor.u32 %v332_v24, %v328_v23  ;;  %v440_v37 = vshll.u32 %v230_v15, 16 }
  0x54   : > { %v446_v38 = vshll.u32 %v5575_v21, 16  ;;  %v324_v40 = vrot.slane %v323_v31, 4  ;;  %v439_v41 = vrot.slane %v437_v33, 4  ;;  %v450_v42 = vshrl.u32 %v5575_v21, 16 }
  0x55   : > { %v456_v43 = vshll.u32 %v5580_v27, 16  ;;  %v700_v44 = vpack.c.b16 %v683_v34, %v682_v30  ;;  %v334_v45 = vrot.slane %v333_v35, 4  ;;  %v442_v46 = vrot.slane %v440_v37, 5  ;;  %v222_v37 = vld [vmem:[%s5445_s24 + $0x24] sm:$0xf] }
  0x56   : > { %v448_v48 = vrot.slane %v446_v38, 5  ;;  %v329_v50 = vsel %vm5457_vm3, %v324_v40, %v328_v23  ;;  %v452_v51 = vrot.slane %v450_v42, 4  ;;  %v533_v54 = vshrl.u32 %v238_v39, 16  ;;  %v5608_v42 = vld [vmem:[%s5445_s24 + $0x28] sm:$0xf] }
  0x57   : > { %v458_v52 = vrot.slane %v456_v43, 5  ;;  %4425 = vmatmul.msk.bf16.gmra.mxu3 %vm702_vm4, %v700_v44  ;;  %v339_v55 = vsel %vm5457_vm3, %v334_v45, %v338_v26  ;;  %v658_v57 = vunpack.c.l.b16 %v329_v50  ;;  %v443_v58 = vor.u32 %v442_v46, %v439_v41 }
  0x58   : > { %v536_v59 = vshll.u32 %v238_v39, 16  ;;  %v659_v60 = vunpack.c.l.b16 %v339_v55  ;;  %v453_v61 = vor.u32 %v452_v51, %v448_v48  ;;  %v535_v62 = vrot.slane %v533_v54, 4 }
  0x59   : > { %v542_v3 = vshll.u32 %v239_v49, 16  ;;  %v444_v4 = vrot.slane %v443_v58, 4  ;;  %v546_v6 = vshrl.u32 %v239_v49, 16  ;;  %v552_v7 = vshll.u32 %v260_v53, 16 }
  0x5a   : > { %v538_v5 = vrot.slane %v536_v59, 5  ;;  %v688_v9 = vpack.c.b16 %v659_v60, %v658_v57  ;;  %v454_v10 = vrot.slane %v453_v61, 4  ;;  %v629_v22 = vshrl.u32 %v246_v8, 16  ;;  %v1064_v61 = vld [vmem:[%s5445_s24] sm:$0xe] }
  0x5b   : > { %v544_v11 = vrot.slane %v542_v3, 5  ;;  %v449_v13 = vsel %vm5457_vm3, %v444_v4, %v448_v48  ;;  %v548_v15 = vrot.slane %v546_v6, 4  ;;  %v554_v16 = vrot.slane %v552_v7, 5  ;;  %v5612_v48 = vld [vmem:[%s5445_s24 + $0x2c] sm:$0x1] }
  0x5c   : > { %v539_v14 = vor.u32 %v538_v5, %v535_v62  ;;  %4413 = vmatmul.msk.bf16.gmra.mxu0 %vm702_vm4, %v688_v9  ;;  %v459_v18 = vsel %vm5457_vm3, %v454_v10, %v458_v52  ;;  %v668_v19 = vunpack.c.l.b16 %v449_v13  ;;  %v632_v23 = vshll.u32 %v246_v8, 16  ;;  %v4653_v6 = vld [vmem:[%s5445_s24 + $0xc] sm:$0xf] }
  0x5d   : > { %v669_v24 = vunpack.c.l.b16 %v459_v18  ;;  %v549_v29 = vor.u32 %v548_v15, %v544_v11  ;;  %v638_v30 = vshll.u32 %v247_v12, 16  ;;  %v631_v31 = vrot.slane %v629_v22, 4 }
  0x5e   : > { %v540_v26 = vrot.slane %v539_v14, 4  ;;  %v634_v33 = vrot.slane %v632_v23, 5  ;;  %v642_v34 = vshrl.u32 %v247_v12, 16  ;;  %v648_v35 = vshll.u32 %v264_v17, 16  ;;  %v4654_v12 = vld [vmem:[%s5445_s24 + $0x10] sm:$0xf] }
  0x5f   : > { %v693_v38 = vpack.c.b16 %v669_v24, %v668_v19  ;;  %v550_v40 = vrot.slane %v549_v29, 4  ;;  %v640_v41 = vrot.slane %v638_v30, 5  ;;  %v1120_v43 = vrot.slane %v5473_v2, 5 }
  0x60   : > { %v545_v39 = vsel %vm5457_vm3, %v540_v26, %v544_v11  ;;  %v635_v45 = vor.u32 %v634_v33, %v631_v31  ;;  %v644_v46 = vrot.slane %v642_v34, 4  ;;  %v650_v50 = vrot.slane %v648_v35, 5  ;;  %v4799_v11 = vld [vmem:[%s6877_s1 + $0x18] sm:$0xf] }
  0x61   : > { %v676_v44 = vunpack.c.l.b16 %v545_v39  ;;  %4418 = vmatmul.msk.bf16.gmra.mxu1 %vm702_vm4, %v693_v38  ;;  %v555_v49 = vsel %vm5457_vm3, %v550_v40, %v554_v16  ;;  %v341_v51 = vshrl.u32 %v222_v37, 16  ;;  %v344_v52 = vshll.u32 %v222_v37, 16  ;;  %v4655_v38 = vld [vmem:[%s5445_s24 + $0x14] sm:$0x1] }
  0x62   : > { %v677_v53 = vunpack.c.l.b16 %v555_v49  ;;  %v636_v54 = vrot.slane %v635_v45, 4  ;;  %v645_v55 = vor.u32 %v644_v46, %v640_v41  ;;  %v350_v2 = vshll.u32 %v5608_v42, 16  ;;  %v4928_v45 = vld [vmem:[%s6877_s1 + $0x1c] sm:$0xf] }
  0x63   : > { %v343_v57 = vrot.slane %v341_v51, 4  ;;  %v346_v58 = vrot.slane %v344_v52, 5  ;;  %v354_v59 = vshrl.u32 %v5608_v42, 16  ;;  %v360_v60 = vshll.u32 %v5612_v48, 16  ;;  %v4999_v51 = vld [vmem:[%s5445_s24] sm:$0xff] }
  0x64   : > { %v697_v62 = vpack.c.b16 %v677_v53, %v676_v44  ;;  %v641_v3 = vsel %vm5457_vm3, %v636_v54, %v640_v41  ;;  %v646_v4 = vrot.slane %v645_v55, 4  ;;  %v352_v5 = vrot.slane %v350_v2, 5  ;;  %v4977_v2 = vld [vmem:[%s6877_s1 + $0x20] sm:$0xf] }
  0x65   : > { %v684_v7 = vunpack.c.l.b16 %v641_v3  ;;  %v347_v8 = vor.u32 %v346_v58, %v343_v57  ;;  %v356_v9 = vrot.slane %v354_v59, 4  ;;  %v362_v10 = vrot.slane %v360_v60, 5 }
  0x66   : > { %4422 = vmatmul.msk.bf16.gmra.mxu2 %vm702_vm4, %v697_v62  ;;  %v651_v13 = vsel %vm5457_vm3, %v646_v4, %v650_v50  ;;  %v4507_v14 = vrot.slane %v1064_v61, 9  ;;  %v1117_v19 = vrot.slane %v5470_v1, 5  ;;  %v2958_v22 = vsel %vm751_vm0, %v4799_v11, 0  ;;  %v4750_v50 = vld [vmem:[%s6877_s1 + $0x14] sm:$0xf] }
  0x67   : > { %v685_v15 = vunpack.c.l.b16 %v651_v13  ;;  %v348_v16 = vrot.slane %v347_v8, 4  ;;  %v357_v17 = vor.u32 %v356_v9, %v352_v5  ;;  %v1788_v23 = vshrl.u32 %v4653_v6, 16  ;;  %2967 = vmatpush.bf16.msra.mxu2 %v2958_v22  ;;  %v1065_v8 = vld [vmem:[%s5445_s24 + $0xc] sm:$0xe] }
  0x68   : > { %v1791_v24 = vshll.u32 %v4653_v6, 16  ;;  %v1797_v26 = vshll.u32 %v4654_v12, 16  ;;  %v1118_v33 = vsel %vm5631_vm7, %v4507_v14, %v1117_v19  ;;  %v1119_v35 = vrot.slane %v1117_v19, 4  ;;  %v4657_v6 = vld [vmem:[%s5445_s24 + $0x1c] sm:$0xf] }
  0x69   : > { %v701_v29 = vpack.c.b16 %v685_v15, %v684_v7  ;;  %v353_v30 = vsel %vm5457_vm3, %v348_v16, %v352_v5  ;;  %v358_v31 = vrot.slane %v357_v17, 4  ;;  %v1229_v37 = vunpack.c.l.b16 %v1118_v33  ;;  %v4656_v5 = vld [vmem:[%s5445_s24 + $0x18] sm:$0xf]  ;;  %v5015_v15 = vld [vmem:[%s5445_s24 + $0xc] sm:$0xff] }
  0x6a   : > { %v660_v34 = vunpack.c.l.b16 %v353_v30  ;;  %v1790_v1 = vrot.slane %v1788_v23, 4  ;;  %v1793_v40 = vrot.slane %v1791_v24, 5  ;;  %v1799_v41 = vrot.slane %v1797_v26, 5  ;;  %v4658_v30 = vld [vmem:[%s5445_s24 + $0x20] sm:$0x1] }
  0x6b   : > { %4426 = vmatmul.msk.bf16.gmra.mxu3 %vm702_vm4, %v701_v29  ;;  %v363_v39 = vsel %vm5457_vm3, %v358_v31, %v362_v10  ;;  %v1801_v44 = vshrl.u32 %v4654_v12, 16  ;;  %v1121_v49 = vsel %vm5631_vm7, %v1119_v35, %v1120_v43  ;;  %v1807_v55 = vshll.u32 %v4655_v38, 16  ;;  %v5000_v35 = vld [vmem:[%s5445_s24 + $0xc] sm:$0xff] }
  0x6c   : > { %v661_v46 = vunpack.c.l.b16 %v363_v39  ;;  %v1230_v52 = vunpack.c.l.b16 %v1121_v49  ;;  %v1794_v53 = vor.u32 %v1793_v40, %v1790_v1  ;;  %v3612_v58 = vsel %vm751_vm0, %v4928_v45, 0 }
  0x6d   : > { %v1803_v54 = vrot.slane %v1801_v44, 4  ;;  %3621 = vmatpush.bf16.msra.mxu3 %v3612_v58  ;;  %v2668_v60 = vsel %vm751_vm0, %v4750_v50, 0  ;;  %v4010_v61 = vsel %vm751_vm0, %v4977_v2, 0  ;;  %v1809_v4 = vrot.slane %v1807_v55, 5  ;;  %v1066_v50 = vld [vmem:[%s5445_s24 + $0x18] sm:$0xe] }
  0x6e   : > { %v689_v57 = vpack.c.b16 %v661_v46, %v660_v34  ;;  %v1261_v43 = vpack.c.b16 %v1230_v52, %v1229_v37  ;;  %2677 = vmatpush.bf16.msra.mxu1 %v2668_v60  ;;  %v1795_v62 = vrot.slane %v1794_v53, 4  ;;  %4019 = vmatpush.bf16.msra.mxu0 %v4010_v61  ;;  %v1124_v7 = vrot.slane %v5516_v28, 5  ;;  %v4660_v46 = vld [vmem:[%s5445_s24 + $0x28] sm:$0xf] }
  0x6f   : > { %v1804_v59 = vor.u32 %v1803_v54, %v1799_v41  ;;  %v1812_v9 = vshrl.u32 %v4656_v5, 16  ;;  %v1815_v10 = vshll.u32 %v4656_v5, 16  ;;  %v1821_v13 = vshll.u32 %v4657_v6, 16 }
  0x70   : > { %4414 = vmatmul.msk.bf16.gmra.mxu0 %vm702_vm4, %v689_v57  ;;  %v1800_v11 = vsel %vm5457_vm3, %v1795_v62, %v1799_v41  ;;  %v1825_v14 = vshrl.u32 %v4657_v6, 16  ;;  %v4508_v16 = vrot.slane %v1065_v8, 9  ;;  %v1126_v17 = vrot.slane %v1124_v7, 4  ;;  %v4659_v41 = vld [vmem:[%s5445_s24 + $0x24] sm:$0xf] }
  0x71   : > { %4491 = vmatmul.msk.bf16.vlgmr.msrb.gmra.mxu1 %vm702_vm4, %v4999_v51  ;;  %v1805_v3 = vrot.slane %v1804_v59, 4  ;;  %v1127_v28 = vrot.slane %v5519_v32, 5  ;;  %v2173_v19 = vunpack.c.l.b16 %v1800_v11  ;;  %v1814_v23 = vrot.slane %v1812_v9, 4  ;;  %v4661_v6 = vld [vmem:[%s5445_s24 + $0x2c] sm:$0x1] }
  0x72   : > { %v1817_v24 = vrot.slane %v1815_v10, 5  ;;  %v1823_v26 = vrot.slane %v1821_v13, 5  ;;  %v1827_v29 = vrot.slane %v1825_v14, 4  ;;  %v1125_v31 = vsel %vm5631_vm7, %v4508_v16, %v1124_v7 }
  0x73   : > { %v1810_v12 = vsel %vm5457_vm3, %v1805_v3, %v1809_v4  ;;  %v1128_v33 = vsel %vm5631_vm7, %v1126_v17, %v1127_v28  ;;  %v1831_v38 = vshll.u32 %v4658_v30, 16  ;;  %v1231_v1 = vunpack.c.l.b16 %v1125_v31 }
  0x74   : > { %v2174_v22 = vunpack.c.l.b16 %v1810_v12  ;;  %v1818_v32 = vor.u32 %v1817_v24, %v1814_v23  ;;  %v1828_v37 = vor.u32 %v1827_v29, %v1823_v26  ;;  %v1232_v39 = vunpack.c.l.b16 %v1128_v33  ;;  %v5001_v12 = vld [vmem:[%s5445_s24 + $0x18] sm:$0xff]  ;;  %v1067_v29 = vld [vmem:[%s5445_s24 + $0x24] sm:$0xe] }
  0x75   : > { %v1833_v45 = vrot.slane %v1831_v38, 5  ;;  %v1131_v51 = vrot.slane %v5562_v63, 5  ;;  %v1836_v52 = vshrl.u32 %v4659_v41, 16  ;;  %v1839_v54 = vshll.u32 %v4659_v41, 16 }
  0x76   : > { %4524 = vmatmul.msk.bf16.vlgmr.msrb.gmra.mxu2 %vm702_vm4, %v1261_v43  ;;  %v2205_v34 = vpack.c.b16 %v2174_v22, %v2173_v19  ;;  %v1819_v40 = vrot.slane %v1818_v32, 4  ;;  %v1829_v44 = vrot.slane %v1828_v37, 4  ;;  %v1262_v49 = vpack.c.b16 %v1232_v39, %v1231_v1  ;;  %v5016_v43 = vld [vmem:[%s5445_s24 + $0x18] sm:$0xff]  ;;  %v4662_v19 = vld [vmem:[%s5445_s24 + $0x30] sm:$0xf]  ;;  %v5017_v32 = vld [vmem:[%s5445_s24 + $0x24] sm:$0xff] }
  0x77   : > { %v1845_v55 = vshll.u32 %v4660_v46, 16  ;;  %v1849_v2 = vshrl.u32 %v4660_v46, 16  ;;  %v4509_v58 = vrot.slane %v1066_v50, 9  ;;  %v1133_v60 = vrot.slane %v1131_v51, 4  ;;  %v4663_v22 = vld [vmem:[%s5445_s24 + $0x34] sm:$0xf] }
  0x78   : > { %v1824_v53 = vsel %vm5457_vm3, %v1819_v40, %v1823_v26  ;;  %v1834_v57 = vsel %vm5457_vm3, %v1829_v44, %v1833_v45  ;;  %v1134_v63 = vrot.slane %v5565_v0, 5  ;;  %v1838_v61 = vrot.slane %v1836_v52, 4  ;;  %v4664_v45 = vld [vmem:[%s5445_s24 + $0x38] sm:$0x1] }
  0x79   : > { %v2175_v59 = vunpack.c.l.b16 %v1824_v53  ;;  %v2176_v62 = vunpack.c.l.b16 %v1834_v57  ;;  %v1841_v3 = vrot.slane %v1839_v54, 5  ;;  %v1847_v4 = vrot.slane %v1845_v55, 5  ;;  %v4666_v57 = vld [vmem:[%s5445_s24 + $0x40] sm:$0xf] }
  0x7a   : > { %v1851_v5 = vrot.slane %v1849_v2, 4  ;;  %v1132_v7 = vsel %vm5631_vm7, %v4509_v58, %v1131_v51  ;;  %v1135_v8 = vsel %vm5631_vm7, %v1133_v60, %v1134_v63  ;;  %v1855_v0 = vshll.u32 %v4661_v6, 16  ;;  %v4665_v2 = vld [vmem:[%s5445_s24 + $0x3c] sm:$0xf]  ;;  %v5206_v63 = vld [vmem:[%s5445_s24 + $0x34] sm:$0xf] }
  0x7b   : > { %4637 = vmatmul.msk.bf16.vlgmr.msrb.gmra.mxu3 %vm702_vm4, %v5015_v15  ;;  %v2206_v9 = vpack.c.b16 %v2176_v62, %v2175_v59  ;;  %v1842_v10 = vor.u32 %v1841_v3, %v1838_v61  ;;  %v1233_v13 = vunpack.c.l.b16 %v1132_v7  ;;  %v1234_v14 = vunpack.c.l.b16 %v1135_v8  ;;  %v1068_v62 = vld [vmem:[%s5445_s24 + $0x30] sm:$0xe] }
  0x7c   : > { %v1852_v11 = vor.u32 %v1851_v5, %v1847_v4  ;;  %v1857_v17 = vrot.slane %v1855_v0, 5  ;;  %v1138_v23 = vrot.slane %v5608_v42, 5  ;;  %v1860_v30 = vshrl.u32 %v4662_v19, 16  ;;  %v5207_v0 = vld [vmem:[%s5445_s24 + $0x38] sm:$0x1] }
  0x7d   : > { %v1843_v15 = vrot.slane %v1842_v10, 4  ;;  %v1263_v28 = vpack.c.b16 %v1234_v14, %v1233_v13  ;;  %v1863_v31 = vshll.u32 %v4662_v19, 16  ;;  %v1869_v33 = vshll.u32 %v4663_v22, 16  ;;  %v5018_v13 = vld [vmem:[%s5445_s24 + $0x30] sm:$0xff] }
  0x7e   : > { %v1853_v16 = vrot.slane %v1852_v11, 4  ;;  %v1140_v37 = vrot.slane %v1138_v23, 4  ;;  %v1141_v42 = vrot.slane %v5612_v48, 5  ;;  %v1862_v39 = vrot.slane %v1860_v30, 4  ;;  %v5002_v48 = vld [vmem:[%s5445_s24 + $0x24] sm:$0xff] }
  0x7f   : > { %v1848_v24 = vsel %vm5457_vm3, %v1843_v15, %v1847_v4  ;;  %v1865_v40 = vrot.slane %v1863_v31, 5  ;;  %v1871_v41 = vrot.slane %v1869_v33, 5  ;;  %v1879_v53 = vshll.u32 %v4664_v45, 16  ;;  %v5003_v33 = vld [vmem:[%s5445_s24 + $0x30] sm:$0xff] }
  0x80   : > { %4702 = vmatmul.msk.bf16.vlgmr.msrb.gmra.mxu0 %vm702_vm4, %v2205_v34  ;;  %v1858_v26 = vsel %vm5457_vm3, %v1853_v16, %v1857_v17  ;;  %v1873_v34 = vshrl.u32 %v4663_v22, 16  ;;  %v2177_v38 = vunpack.c.l.b16 %v1848_v24  ;;  %v1145_v61 = vrot.slane %v5206_v63, 5  ;;  %v4667_v22 = vld [vmem:[%s5445_s24 + $0x44] sm:$0x1] }
  0x81   : > { %4492 = vmatmul.msk.bf16.gmra.mxu1 %vm702_vm4, %v5000_v35  ;;  %v4510_v35 = vrot.slane %v1067_v29, 9  ;;  %v2178_v1 = vunpack.c.l.b16 %v1858_v26  ;;  %v1866_v51 = vor.u32 %v1865_v40, %v1862_v39  ;;  %v1881_v59 = vrot.slane %v1879_v53, 5  ;;  %v4668_v39 = vld [vmem:[%s5445_s24 + $0x48] sm:$0xf]  ;;  %v4669_v40 = vld [vmem:[%s5445_s24 + $0x4c] sm:$0xf] }
  0x82   : > { %v1875_v44 = vrot.slane %v1873_v34, 4  ;;  %v1884_v3 = vshrl.u32 %v4665_v2, 16  ;;  %v1887_v4 = vshll.u32 %v4665_v2, 16  ;;  %v1893_v5 = vshll.u32 %v4666_v57, 16  ;;  %v5019_v2 = vld [vmem:[%s5445_s24 + $0x3c] sm:$0xff] }
  0x83   : > { %v1139_v46 = vsel %vm5631_vm7, %v4510_v35, %v1138_v23  ;;  %v2207_v50 = vpack.c.b16 %v2178_v1, %v2177_v38  ;;  %v1867_v58 = vrot.slane %v1866_v51, 4  ;;  %v1897_v6 = vshrl.u32 %v4666_v57, 16 }
  0x84   : > { %v1876_v52 = vor.u32 %v1875_v44, %v1871_v41  ;;  %v1235_v54 = vunpack.c.l.b16 %v1139_v46  ;;  %v4511_v10 = vrot.slane %v1068_v62, 9  ;;  %v1147_v11 = vrot.slane %v1145_v61, 4 }
  0x85   : > { %v1872_v8 = vsel %vm5457_vm3, %v1867_v58, %v1871_v41  ;;  %v1886_v14 = vrot.slane %v1884_v3, 4  ;;  %v1889_v15 = vrot.slane %v1887_v4, 5  ;;  %v1895_v16 = vrot.slane %v1893_v5, 5  ;;  %v4670_v4 = vld [vmem:[%s5445_s24 + $0x50] sm:$0x1] }
  0x86   : > { %4525 = vmatmul.msk.bf16.gmra.mxu2 %vm702_vm4, %v1262_v49  ;;  %v1142_v49 = vsel %vm5631_vm7, %v1140_v37, %v1141_v42  ;;  %v1899_v17 = vrot.slane %v1897_v6, 4  ;;  %v1146_v23 = vsel %vm5631_vm7, %v4511_v10, %v1145_v61  ;;  %v1903_v30 = vshll.u32 %v4667_v22, 16 }
  0x87   : > { %v1236_v55 = vunpack.c.l.b16 %v1142_v49  ;;  %v1890_v26 = vor.u32 %v1889_v15, %v1886_v14  ;;  %v1908_v51 = vshrl.u32 %v4668_v39, 16  ;;  %v1917_v53 = vshll.u32 %v4669_v40, 16 }
  0x88   : > { %v1900_v29 = vor.u32 %v1899_v17, %v1895_v16  ;;  %v1905_v1 = vrot.slane %v1903_v30, 5 }
  0x89   : > { %v1264_v60 = vpack.c.b16 %v1236_v55, %v1235_v54  ;;  %v1891_v42 = vrot.slane %v1890_v26, 4  ;;  %v1921_v54 = vshrl.u32 %v4669_v40, 16  ;;  %v1919_v62 = vrot.slane %v1917_v53, 5 }
  0x8a   : > { %v1901_v38 = vrot.slane %v1900_v29, 4  ;;  %v1159_v26 = vrot.slane %v5529_v47, 5 }
  0x8b   : > { %4638 = vmatmul.msk.bf16.gmra.mxu3 %vm702_vm4, %v5016_v43  ;;  %v1877_v43 = vrot.slane %v1876_v52, 4  ;;  %v1896_v45 = vsel %vm5457_vm3, %v1891_v42, %v1895_v16  ;;  %v1911_v52 = vshll.u32 %v4668_v39, 16  ;;  %v1923_v3 = vrot.slane %v1921_v54, 4  ;;  %v4673_v54 = vld [vmem:[%s5445_s24 + $0x5c] sm:$0x1] }
  0x8c   : > { %v1906_v46 = vsel %vm5457_vm3, %v1901_v38, %v1905_v1  ;;  %v2181_v55 = vunpack.c.l.b16 %v1896_v45  ;;  %v5020_v1 = vld [vmem:[%s5445_s24 + $0x48] sm:$0xff]  ;;  %v1161_v40 = vrot.slane %v1159_v26, 4 }
  0x8d   : > { %v2182_v57 = vunpack.c.l.b16 %v1906_v46  ;;  %v1913_v61 = vrot.slane %v1911_v52, 5  ;;  %v1924_v10 = vor.u32 %v1923_v3, %v1919_v62 }
  0x8f   : > { %v1925_v16 = vrot.slane %v1924_v10, 4 }
  0x90   : > { %4703 = vmatmul.msk.bf16.gmra.mxu0 %vm702_vm4, %v2206_v9  ;;  %v1882_v9 = vsel %vm5457_vm3, %v1877_v43, %v1881_v59 }
  0x91   : > { %4493 = vmatmul.msk.bf16.gmra.mxu1 %vm702_vm4, %v5001_v12  ;;  %v1148_v12 = vrot.slane %v5207_v0, 5  ;;  %v2180_v19 = vunpack.c.l.b16 %v1882_v9 }
  0x93   : > { %v1149_v24 = vsel %vm5631_vm7, %v1147_v11, %v1148_v12  ;;  %v1927_v11 = vshll.u32 %v4670_v4, 16  ;;  %v5004_v12 = vld [vmem:[%s5445_s24 + $0x3c] sm:$0xff] }
  0x94   : > { %v1238_v35 = vunpack.c.l.b16 %v1149_v24  ;;  %v4672_v24 = vld [vmem:[%s5445_s24 + $0x58] sm:$0xf]  ;;  %v4674_v4 = vld [vmem:[%s5445_s24 + $0x60] sm:$0xf] }
  0x95   : > { %v1929_v17 = vrot.slane %v1927_v11, 5  ;;  %v1945_v42 = vshrl.u32 %v4672_v24, 16 }
  0x96   : > { %4526 = vmatmul.msk.bf16.gmra.mxu2 %vm702_vm4, %v1263_v28  ;;  %v2179_v28 = vunpack.c.l.b16 %v1872_v8  ;;  %v2209_v8 = vpack.c.b16 %v2182_v57, %v2181_v55 }
  0x97   : > { %v1930_v30 = vsel %vm5457_vm3, %v1925_v16, %v1929_v17  ;;  %v1947_v52 = vrot.slane %v1945_v42, 4 }
  0x98   : > { %v2208_v31 = vpack.c.b16 %v2180_v19, %v2179_v28  ;;  %v2184_v46 = vunpack.c.l.b16 %v1930_v30 }
  0x9b   : > { %4639 = vmatmul.msk.bf16.gmra.mxu3 %vm702_vm4, %v5017_v32  ;;  %v1237_v32 = vunpack.c.l.b16 %v1146_v23  ;;  %v4671_v23 = vld [vmem:[%s5445_s24 + $0x54] sm:$0xf] }
  0x9d   : > { %v1265_v44 = vpack.c.b16 %v1238_v35, %v1237_v32  ;;  %v1935_v32 = vshll.u32 %v4671_v23, 16  ;;  %v1941_v35 = vshll.u32 %v4672_v24, 16 }
  0xa0   : > { %4704 = vmatmul.msk.bf16.gmra.mxu0 %vm702_vm4, %v2207_v50  ;;  %v1152_v50 = vrot.slane %v5485_v20, 5  ;;  %v1910_v20 = vrot.slane %v1908_v51, 4  ;;  %v1943_v51 = vrot.slane %v1941_v35, 5  ;;  %v1169_v35 = vrot.slane %v5580_v27, 5 }
  0xa1   : > { %4494 = vmatmul.msk.bf16.gmra.mxu1 %vm702_vm4, %v5002_v48  ;;  %v1069_v48 = vld [vmem:[%s5445_s24 + $0x3c] sm:$0xe] }
  0xa2   : > { %v4512_v43 = vrot.slane %v1069_v48, 9  ;;  %v1154_v59 = vrot.slane %v1152_v50, 4  ;;  %v1937_v48 = vrot.slane %v1935_v32, 5 }
  0xa4   : > { %v1153_v5 = vsel %vm5631_vm7, %v4512_v43, %v1152_v50  ;;  %v5005_v43 = vld [vmem:[%s5445_s24 + $0x48] sm:$0xff] }
  0xa6   : > { %v5726_v7 = vpop.f32.mrf.mxu1  ;;  %4527 = vmatmul.msk.bf16.gmra.mxu2 %vm702_vm4, %v1264_v60  ;;  %v1155_v60 = vrot.slane %v5490_v25, 5  ;;  %v1914_v25 = vor.u32 %v1913_v61, %v1910_v20  ;;  %v1951_v20 = vshll.u32 %v4673_v54, 16  ;;  %v5006_v54 = vld [vmem:[%s5445_s24 + $0x54] sm:$0xff] }
  0xa8   : > { %v1156_v6 = vsel %vm5631_vm7, %v1154_v59, %v1155_v60  ;;  %v1915_v15 = vrot.slane %v1914_v25, 4  ;;  %v1948_v60 = vor.u32 %v1947_v52, %v1943_v51  ;;  %v1953_v10 = vrot.slane %v1951_v20, 5 }
  0xa9   : > { %v1240_v14 = vunpack.c.l.b16 %v1156_v6 }
  0xaa   : > { %v1920_v29 = vsel %vm5457_vm3, %v1915_v15, %v1919_v62  ;;  %v1949_v25 = vrot.slane %v1948_v60, 4  ;;  %v1166_v15 = vrot.slane %v5575_v21, 5 }
  0xab   : > { %4640 = vmatmul.msk.bf16.gmra.mxu3 %vm702_vm4, %v5018_v13  ;;  %v1239_v13 = vunpack.c.l.b16 %v1153_v5  ;;  %v2183_v45 = vunpack.c.l.b16 %v1920_v29  ;;  %v4675_v5 = vld [vmem:[%s5445_s24 + $0x64] sm:$0xf] }
  0xac   : > { %v1969_v16 = vshrl.u32 %v4675_v5, 16  ;;  %v1954_v24 = vsel %vm5457_vm3, %v1949_v25, %v1953_v10  ;;  %v1168_v32 = vrot.slane %v1166_v15, 4  ;;  %v5208_v10 = vld [vmem:[%s5445_s24 + $0x64] sm:$0xf] }
  0xad   : > { %v1266_v19 = vpack.c.b16 %v1240_v14, %v1239_v13  ;;  %v2210_v57 = vpack.c.b16 %v2184_v46, %v2183_v45  ;;  %v1959_v13 = vshll.u32 %v4674_v4, 16  ;;  %v1965_v14 = vshll.u32 %v4675_v5, 16 }
  0xae   : > { %v5742_v34 = vpop.f32.mrf.mxu1  ;;  %v1971_v42 = vrot.slane %v1969_v16, 4 }
  0xaf   : > { %v1961_v30 = vrot.slane %v1959_v13, 5  ;;  %v1072_v13 = vld [vmem:[%s5445_s24 + $0x60] sm:$0xe] }
  0xb0   : > { %v5744_v37 = vpop.f32.mrf.mxu2  ;;  %4705 = vmatmul.msk.bf16.gmra.mxu0 %vm702_vm4, %v2208_v31  ;;  %v1070_v31 = vld [vmem:[%s5445_s24 + $0x48] sm:$0xe] }
  0xb1   : > { %4495 = vmatmul.msk.bf16.gmra.mxu1 %vm702_vm4, %v5003_v33  ;;  %v1932_v33 = vshrl.u32 %v4671_v23, 16  ;;  %v4513_v47 = vrot.slane %v1070_v31, 9  ;;  %v1967_v31 = vrot.slane %v1965_v14, 5 }
  0xb3   : > { %v5750_v41 = vpop.f32.mrf.mxu0  ;;  %v1934_v50 = vrot.slane %v1932_v33, 4  ;;  %v5021_v33 = vld [vmem:[%s5445_s24 + $0x54] sm:$0xff]  ;;  %v1972_v27 = vor.u32 %v1971_v42, %v1967_v31 }
  0xb4   : > { %v5756_v49 = vpop.f32.mrf.mxu3 }
  0xb5   : > { %v1938_v59 = vor.u32 %v1937_v48, %v1934_v50  ;;  %v1170_v48 = vsel %vm5631_vm7, %v1168_v32, %v1169_v35  ;;  %v1973_v60 = vrot.slane %v1972_v27, 4 }
  0xb6   : > { %4528 = vmatmul.msk.bf16.gmra.mxu2 %vm702_vm4, %v1265_v44  ;;  %v1162_v44 = vrot.slane %v5534_v56, 5 }
  0xb8   : > { %v5762_v58 = vpop.f32.mrf.mxu1  ;;  %v5765_v63 = vpop.f32.mrf.mxu2  ;;  %v1163_v56 = vsel %vm5631_vm7, %v1161_v40, %v1162_v44  ;;  %v4676_v40 = vld [vmem:[%s5445_s24 + $0x68] sm:$0x1] }
  0xb9   : > { %v1242_v62 = vunpack.c.l.b16 %v1163_v56 }
  0xbb   : > { %4641 = vmatmul.msk.bf16.gmra.mxu3 %vm702_vm4, %v5019_v2  ;;  %v5773_v9 = vpop.f32.mrf.mxu0  ;;  %v1160_v2 = vsel %vm5631_vm7, %v4513_v47, %v1159_v26  ;;  %v2186_v47 = vunpack.c.l.b16 %v1954_v24 }
  0xbc   : > { %v5775_v0 = vpop.f32.mrf.mxu3  ;;  %v1241_v61 = vunpack.c.l.b16 %v1160_v2 }
  0xbe   : > { %v1267_v11 = vpack.c.b16 %v1242_v62, %v1241_v61  ;;  %v4677_v61 = vld [vmem:[%s5445_s24 + $0x6c] sm:$0xf]  ;;  %v4678_v62 = vld [vmem:[%s5445_s24 + $0x70] sm:$0xf] }
  0xbf   : > { %v1980_v14 = vshrl.u32 %v4677_v61, 16  ;;  %v1989_v16 = vshll.u32 %v4678_v62, 16 }
  0xc0   : > { %4706 = vmatmul.msk.bf16.gmra.mxu0 %vm702_vm4, %v2209_v8  ;;  %v5779_v28 = vpop.f32.mrf.mxu1  ;;  %v1939_v8 = vrot.slane %v1938_v59, 4 }
  0xc1   : > { %4496 = vmatmul.msk.bf16.gmra.mxu1 %vm702_vm4, %v5004_v12  ;;  %v1956_v12 = vshrl.u32 %v4674_v4, 16  ;;  %v1982_v35 = vrot.slane %v1980_v14, 4  ;;  %v4681_v14 = vld [vmem:[%s5445_s24 + $0x7c] sm:$0xf] }
  0xc2   : > { %v1944_v23 = vsel %vm5457_vm3, %v1939_v8, %v1943_v51  ;;  %v1975_v51 = vshll.u32 %v4676_v40, 16 }
  0xc3   : > { %v5782_v22 = vpop.f32.mrf.mxu2  ;;  %v1958_v29 = vrot.slane %v1956_v12, 4 }
  0xc4   : > { %v1977_v20 = vrot.slane %v1975_v51, 5 }
  0xc5   : > { %v1962_v46 = vor.u32 %v1961_v30, %v1958_v29  ;;  %v5022_v30 = vld [vmem:[%s5445_s24 + $0x60] sm:$0xff] }
  0xc6   : > { %4529 = vmatmul.msk.bf16.gmra.mxu2 %vm702_vm4, %v1266_v19  ;;  %v1071_v19 = vld [vmem:[%s5445_s24 + $0x54] sm:$0xe]  ;;  %v1978_v25 = vsel %vm5457_vm3, %v1973_v60, %v1977_v20 }
  0xc7   : > { %v5792_v38 = vpop.f32.mrf.mxu0  ;;  %v4514_v21 = vrot.slane %v1071_v19, 9  ;;  %v1963_v59 = vrot.slane %v1962_v46, 4  ;;  %v1993_v19 = vshrl.u32 %v4678_v62, 16  ;;  %v4679_v46 = vld [vmem:[%s5445_s24 + $0x74] sm:$0x1] }
  0xc8   : > { %v5796_v39 = vpop.f32.mrf.mxu3 }
  0xc9   : > { %v1167_v50 = vsel %vm5631_vm7, %v4514_v21, %v1166_v15  ;;  %v1968_v8 = vsel %vm5457_vm3, %v1963_v59, %v1967_v31  ;;  %v1983_v15 = vshll.u32 %v4677_v61, 16  ;;  %v4515_v21 = vrot.slane %v1072_v13, 9  ;;  %v4680_v13 = vld [vmem:[%s5445_s24 + $0x78] sm:$0xf] }
  0xca   : > { %v5799_v53 = vpop.f32.mrf.mxu1  ;;  %v1243_v56 = vunpack.c.l.b16 %v1167_v50  ;;  %v2187_v31 = vunpack.c.l.b16 %v1968_v8 }
  0xcb   : > { %4642 = vmatmul.msk.bf16.gmra.mxu3 %vm702_vm4, %v5020_v1  ;;  %v5803_v55 = vpop.f32.mrf.mxu2  ;;  %v2185_v1 = vunpack.c.l.b16 %v1944_v23  ;;  %v5209_v23 = vld [vmem:[%s5445_s24 + $0x68] sm:$0x1]  ;;  %v1985_v42 = vrot.slane %v1983_v15, 5  ;;  %v5210_v15 = vld [vmem:[%s5445_s24 + $0x70] sm:$0xf] }
  0xcc   : > { %v1176_v24 = vrot.slane %v5209_v23, 5  ;;  %v1073_v23 = vld [vmem:[%s5445_s24 + $0x6c] sm:$0xe] }
  0xcd   : > { %v2211_v52 = vpack.c.b16 %v2186_v47, %v2185_v1  ;;  %v1991_v1 = vrot.slane %v1989_v16, 5  ;;  %v1995_v47 = vrot.slane %v1993_v19, 4  ;;  %v1986_v51 = vor.u32 %v1985_v42, %v1982_v35  ;;  %v5211_v42 = vld [vmem:[%s5445_s24 + $0x74] sm:$0x1] }
  0xce   : > { %v1180_v16 = vrot.slane %v5210_v15, 5 }
  0xcf   : > { %v5810_v3 = vpop.f32.mrf.mxu0 }
  0xd0   : > { %4707 = vmatmul.msk.bf16.gmra.mxu0 %vm702_vm4, %v2210_v57  ;;  %v5815_v6 = vpop.f32.mrf.mxu3  ;;  %v1244_v57 = vunpack.c.l.b16 %v1170_v48 }
  0xd1   : > { %4497 = vmatmul.msk.bf16.gmra.mxu1 %vm702_vm4, %v5005_v43 }
  0xd2   : > { %v5819_v17 = vpop.f32.mrf.mxu1  ;;  %v1268_v4 = vpack.c.b16 %v1244_v57, %v1243_v56  ;;  %v5007_v57 = vld [vmem:[%s5445_s24 + $0x60] sm:$0xff] }
  0xd6   : > { %v5826_v26 = vpop.f32.mrf.mxu2  ;;  %4530 = vmatmul.msk.bf16.gmra.mxu2 %vm702_vm4, %v1267_v11  ;;  %v1173_v11 = vrot.slane %v5208_v10, 5 }
  0xd8   : > { %v1175_v32 = vrot.slane %v1173_v11, 4  ;;  %v1174_v50 = vsel %vm5631_vm7, %v4515_v21, %v1173_v11  ;;  %v2017_v21 = vshrl.u32 %v4681_v14, 16 }
  0xd9   : > { %v5832_v44 = vpop.f32.mrf.mxu0  ;;  %v1245_v20 = vunpack.c.l.b16 %v1174_v50  ;;  %v4516_v50 = vrot.slane %v1073_v23, 9 }
  0xda   : > { %v5834_v45 = vpop.f32.mrf.mxu3  ;;  %v1177_v48 = vsel %vm5631_vm7, %v1175_v32, %v1176_v24 }
  0xdb   : > { %4643 = vmatmul.msk.bf16.gmra.mxu3 %vm702_vm4, %v5021_v33  ;;  %v2188_v33 = vunpack.c.l.b16 %v1978_v25  ;;  %v1246_v61 = vunpack.c.l.b16 %v1177_v48  ;;  %v1182_v48 = vrot.slane %v1180_v16, 4 }
  0xdd   : > { %v2212_v27 = vpack.c.b16 %v2188_v33, %v2187_v31  ;;  %v1269_v11 = vpack.c.b16 %v1246_v61, %v1245_v20  ;;  %v2007_v31 = vshll.u32 %v4680_v13, 16  ;;  %v2013_v33 = vshll.u32 %v4681_v14, 16 }
  0xde   : > { %v5842_v2 = vpop.f32.mrf.mxu1  ;;  %v5844_v43 = vpop.f32.mrf.mxu2  ;;  %v2019_v20 = vrot.slane %v2017_v21, 4 }
  0xe0   : > { %4708 = vmatmul.msk.bf16.gmra.mxu0 %vm702_vm4, %v2211_v52  ;;  %v1996_v52 = vor.u32 %v1995_v47, %v1991_v1  ;;  %v1183_v47 = vrot.slane %v5211_v42, 5 }
  0xe1   : > { %4498 = vmatmul.msk.bf16.gmra.mxu1 %vm702_vm4, %v5006_v54  ;;  %v5850_v5 = vpop.f32.mrf.mxu0  ;;  %v1999_v54 = vshll.u32 %v4679_v46, 16  ;;  %v5023_v46 = vld [vmem:[%s5445_s24 + $0x6c] sm:$0xff] }
  0xe2   : > { %v5857_v12 = vpop.f32.mrf.mxu3  ;;  %v1997_v8 = vrot.slane %v1996_v52, 4 }
  0xe3   : > { %v2001_v25 = vrot.slane %v1999_v54, 5 }
  0xe6   : > { %4531 = vmatmul.msk.bf16.gmra.mxu2 %vm702_vm4, %v1268_v4  ;;  %v5862_v29 = vpop.f32.mrf.mxu1  ;;  %v1987_v4 = vrot.slane %v1986_v51, 4 }
  0xe8   : > { %v1992_v19 = vsel %vm5457_vm3, %v1987_v4, %v1991_v1  ;;  %v4682_v4 = vld [vmem:[%s5445_s24 + $0x80] sm:$0x1] }
  0xe9   : > { %v5865_v40 = vpop.f32.mrf.mxu2 }
  0xeb   : > { %4644 = vmatmul.msk.bf16.gmra.mxu3 %vm702_vm4, %v5022_v30  ;;  %v2004_v30 = vshrl.u32 %v4680_v13, 16  ;;  %v5008_v13 = vld [vmem:[%s5445_s24 + $0x6c] sm:$0xff] }
  0xed   : > { %v5873_v56 = vpop.f32.mrf.mxu0  ;;  %v2006_v54 = vrot.slane %v2004_v30, 4 }
  0xee   : > { %v5876_v59 = vpop.f32.mrf.mxu3  ;;  %v984_v60 = vpop.f32.mrf.mxu1 }
  0xef   : > { %v985_v62 = vadd.f32 %v984_v60, %v5750_v41  ;;  %v2002_v41 = vsel %vm5457_vm3, %v1997_v8, %v2001_v25  ;;  %v2015_v60 = vrot.slane %v2013_v33, 5  ;;  %v1181_v8 = vsel %vm5631_vm7, %v4516_v50, %v1180_v16 }
  0xf0   : > { %4709 = vmatmul.msk.bf16.gmra.mxu0 %vm702_vm4, %v2212_v27  ;;  %v2189_v27 = vunpack.c.l.b16 %v1992_v19  ;;  %v2190_v51 = vunpack.c.l.b16 %v2002_v41  ;;  %v2023_v19 = vshll.u32 %v4682_v4, 16 }
  0xf1   : > { %v5880_v10 = vpop.f32.mrf.mxu2  ;;  %4499 = vmatmul.msk.bf16.gmra.mxu1 %vm702_vm4, %v5007_v57  ;;  %v2009_v57 = vrot.slane %v2007_v31, 5  ;;  %v2020_v15 = vor.u32 %v2019_v20, %v2015_v60 }
  0xf2   : > { %v2213_v25 = vpack.c.b16 %v2190_v51, %v2189_v27  ;;  %v2025_v42 = vrot.slane %v2023_v19, 5  ;;  %v4684_v27 = vld [vmem:[%s5445_s24 + $0x88] sm:$0xf]  ;;  %v5212_v51 = vld [vmem:[%s5445_s24 + $0x7c] sm:$0xf] }
  0xf3   : > { %v2010_v14 = vor.u32 %v2009_v57, %v2006_v54  ;;  %v1074_v54 = vld [vmem:[%s5445_s24 + $0x78] sm:$0xe] }
  0xf5   : > { %v5891_v24 = vpop.f32.mrf.mxu0  ;;  %v2011_v21 = vrot.slane %v2010_v14, 4 }
  0xf6   : > { %v5893_v32 = vpop.f32.mrf.mxu3  ;;  %4532 = vmatmul.msk.bf16.gmra.mxu2 %vm702_vm4, %v1269_v11  ;;  %v986_v35 = vpop.f32.mrf.mxu1 }
  0xf7   : > { %v987_v1 = vadd.f32 %v986_v35, %v5773_v9  ;;  %v1184_v9 = vsel %vm5631_vm7, %v1182_v48, %v1183_v47  ;;  %v2021_v35 = vrot.slane %v2020_v15, 4  ;;  %v4683_v47 = vld [vmem:[%s5445_s24 + $0x84] sm:$0xf]  ;;  %v5024_v15 = vld [vmem:[%s5445_s24 + $0x78] sm:$0xff] }
  0xf8   : > { %v1248_v30 = vunpack.c.l.b16 %v1184_v9  ;;  %v2031_v57 = vshll.u32 %v4683_v47, 16  ;;  %v2041_v9 = vshrl.u32 %v4684_v27, 16 }
  0xf9   : > { %v1337_v52 = vpop.f32.mrf.mxu2  ;;  %v2026_v4 = vsel %vm5457_vm3, %v2021_v35, %v2025_v42 }
  0xfa   : > { %v1417_v61 = vadd.f32 %v1337_v52, %v985_v62  ;;  %v1247_v62 = vunpack.c.l.b16 %v1181_v8  ;;  %v1187_v52 = vrot.slane %v5212_v51, 5  ;;  %v2037_v8 = vshll.u32 %v4684_v27, 16 }
  0xfb   : > { %4645 = vmatmul.msk.bf16.gmra.mxu3 %vm702_vm4, %v5023_v46  ;;  %v2043_v35 = vrot.slane %v2041_v9, 4 }
  0xfc   : > { %v1270_v48 = vpack.c.b16 %v1248_v30, %v1247_v62 }
  0xfd   : > { %v2281_v11 = vpop.f32.mrf.mxu0 }
  0xfe   : > { %v1627_v41 = vpop.f32.mrf.mxu3  ;;  %v989_v23 = vpop.f32.mrf.mxu1 }
  0xff   : > { %v1707_v31 = vadd.f32 %v1627_v41, %v1417_v61  ;;  %v990_v16 = vadd.f32 %v989_v23, %v5792_v38  ;;  %v2028_v38 = vshrl.u32 %v4683_v47, 16  ;;  %v2016_v61 = vsel %vm5457_vm3, %v2011_v21, %v2015_v60 }
 0x100   : > { %4710 = vmatmul.msk.bf16.gmra.mxu0 %vm702_vm4, %v2213_v25  ;;  %v5213_v25 = vld [vmem:[%s5445_s24 + $0x80] sm:$0x1]  ;;  %v4517_v41 = vrot.slane %v1074_v54, 9  ;;  %v1189_v23 = vrot.slane %v1187_v52, 4  ;;  %v2191_v62 = vunpack.c.l.b16 %v2016_v61  ;;  %v2192_v60 = vunpack.c.l.b16 %v2026_v4 }
 0x101   : > { %v1339_v33 = vpop.f32.mrf.mxu2  ;;  %4500 = vmatmul.msk.bf16.gmra.mxu1 %vm702_vm4, %v5008_v13  ;;  %v5910_v46 = vadd.f32 %v2281_v11, %v1707_v31  ;;  %v1190_v11 = vrot.slane %v5213_v25, 5  ;;  %v2030_v30 = vrot.slane %v2028_v38, 4  ;;  %v2033_v31 = vrot.slane %v2031_v57, 5  ;;  %v5009_v38 = vld [vmem:[%s5445_s24 + $0x78] sm:$0xff] }
 0x102   : > { %v1418_v50 = vadd.f32 %v1339_v33, %v987_v1  ;;  %v2039_v21 = vrot.slane %v2037_v8, 5  ;;  %v2214_v27 = vpack.c.b16 %v2192_v60, %v2191_v62  ;;  %v4687_v62 = vld [vmem:[%s5445_s24 + $0x94] sm:$0xf]  ;;  %v5214_v60 = vld [vmem:[%s5445_s24 + $0x88] sm:$0xf] }
 0x103   : > { %v2034_v51 = vor.u32 %v2033_v31, %v2030_v30  ;;  %v1194_v30 = vrot.slane %v5214_v60, 5  ;;  %v1075_v31 = vld [vmem:[%s5445_s24 + $0x84] sm:$0xe] }
 0x104   : > { %v2044_v57 = vor.u32 %v2043_v35, %v2039_v21 }
 0x105   : > { %v2283_v20 = vpop.f32.mrf.mxu0  ;;  %v2035_v25 = vrot.slane %v2034_v51, 4 }
 0x106   : > { %v1629_v1 = vpop.f32.mrf.mxu3  ;;  %4533 = vmatmul.msk.bf16.gmra.mxu2 %vm702_vm4, %v1270_v48  ;;  %v991_v13 = vpop.f32.mrf.mxu1  ;;  %v4685_v48 = vld [vmem:[%s5445_s24 + $0x8c] sm:$0x1] }
 0x107   : > { %v1708_v14 = vadd.f32 %v1629_v1, %v1418_v50  ;;  %v992_v19 = vadd.f32 %v991_v13, %v5810_v3  ;;  %v1188_v50 = vsel %vm5631_vm7, %v4517_v41, %v1187_v52  ;;  %v1191_v3 = vsel %vm5631_vm7, %v1189_v23, %v1190_v11 }
 0x108   : > { %v2047_v61 = vshll.u32 %v4685_v48, 16  ;;  %v1250_v8 = vunpack.c.l.b16 %v1191_v3  ;;  %v2045_v1 = vrot.slane %v2044_v57, 4  ;;  %v2065_v3 = vshrl.u32 %v4687_v62, 16  ;;  %v5025_v57 = vld [vmem:[%s5445_s24 + $0x84] sm:$0xff] }
 0x109   : > { %v1342_v33 = vpop.f32.mrf.mxu2  ;;  %v5923_v42 = vadd.f32 %v2283_v20, %v1708_v14  ;;  %v4686_v14 = vld [vmem:[%s5445_s24 + $0x90] sm:$0xf] }
 0x10a   : > { %v1419_v47 = vadd.f32 %v1342_v33, %v990_v16  ;;  %v1249_v16 = vunpack.c.l.b16 %v1188_v50  ;;  %v2049_v13 = vrot.slane %v2047_v61, 5  ;;  %v2052_v33 = vshrl.u32 %v4686_v14, 16 }
 0x10b   : > { %4646 = vmatmul.msk.bf16.gmra.mxu3 %vm702_vm4, %v5024_v15  ;;  %v2055_v48 = vshll.u32 %v4686_v14, 16  ;;  %v2061_v50 = vshll.u32 %v4687_v62, 16  ;;  %v4518_v61 = vrot.slane %v1075_v31, 9 }
 0x10c   : > { %v1271_v23 = vpack.c.b16 %v1250_v8, %v1249_v16  ;;  %v2054_v8 = vrot.slane %v2052_v33, 4 }
 0x10d   : > { %v2286_v54 = vpop.f32.mrf.mxu0 }
 0x10e   : > { %v1632_v4 = vpop.f32.mrf.mxu3  ;;  %v994_v20 = vpop.f32.mrf.mxu1 }
 0x10f   : > { %v1709_v9 = vadd.f32 %v1632_v4, %v1419_v47  ;;  %v995_v52 = vadd.f32 %v994_v20, %v5832_v44  ;;  %v2040_v44 = vsel %vm5457_vm3, %v2035_v25, %v2039_v21  ;;  %v2050_v47 = vsel %vm5457_vm3, %v2045_v1, %v2049_v13 }
 0x110   : > { %4711 = vmatmul.msk.bf16.gmra.mxu0 %vm702_vm4, %v2214_v27  ;;  %v5215_v27 = vld [vmem:[%s5445_s24 + $0x8c] sm:$0x1]  ;;  %v1196_v4 = vrot.slane %v1194_v30, 4  ;;  %v2193_v20 = vunpack.c.l.b16 %v2040_v44  ;;  %v2194_v16 = vunpack.c.l.b16 %v2050_v47  ;;  %v2057_v25 = vrot.slane %v2055_v48, 5  ;;  %v5010_v44 = vld [vmem:[%s5445_s24 + $0x84] sm:$0xff] }
 0x111   : > { %v1344_v11 = vpop.f32.mrf.mxu2  ;;  %4501 = vmatmul.msk.bf16.gmra.mxu1 %vm702_vm4, %v5009_v38  ;;  %v5936_v15 = vadd.f32 %v2286_v54, %v1709_v9  ;;  %v1197_v51 = vrot.slane %v5215_v27, 5  ;;  %v2067_v1 = vrot.slane %v2065_v3, 4 }
 0x112   : > { %v1420_v41 = vadd.f32 %v1344_v11, %v992_v19  ;;  %v2063_v11 = vrot.slane %v2061_v50, 5  ;;  %v2215_v62 = vpack.c.b16 %v2194_v16, %v2193_v20  ;;  %v2058_v31 = vor.u32 %v2057_v25, %v2054_v8  ;;  %v4690_v20 = vld [vmem:[%s5445_s24 + $0xa0] sm:$0xf]  ;;  %v5216_v16 = vld [vmem:[%s5445_s24 + $0x94] sm:$0xf] }
 0x113   : > { %v1201_v8 = vrot.slane %v5216_v16, 5 }
 0x114   : > { %v2068_v33 = vor.u32 %v2067_v1, %v2063_v11 }
 0x115   : > { %v2288_v35 = vpop.f32.mrf.mxu0 }
 0x116   : > { %v1634_v19 = vpop.f32.mrf.mxu3  ;;  %4534 = vmatmul.msk.bf16.gmra.mxu2 %vm702_vm4, %v1271_v23  ;;  %v996_v54 = vpop.f32.mrf.mxu1  ;;  %v4688_v23 = vld [vmem:[%s5445_s24 + $0x98] sm:$0x1] }
 0x117   : > { %v1710_v38 = vadd.f32 %v1634_v19, %v1420_v41  ;;  %v997_v21 = vadd.f32 %v996_v54, %v5850_v5  ;;  %v1195_v41 = vsel %vm5631_vm7, %v4518_v61, %v1194_v30  ;;  %v1198_v5 = vsel %vm5631_vm7, %v1196_v4, %v1197_v51 }
 0x118   : > { %v2071_v47 = vshll.u32 %v4688_v23, 16  ;;  %v1252_v50 = vunpack.c.l.b16 %v1198_v5  ;;  %v2059_v51 = vrot.slane %v2058_v31, 4  ;;  %v2069_v19 = vrot.slane %v2068_v33, 4  ;;  %v5026_v33 = vld [vmem:[%s5445_s24 + $0x90] sm:$0xff] }
 0x119   : > { %v1347_v9 = vpop.f32.mrf.mxu2  ;;  %v5949_v13 = vadd.f32 %v2288_v35, %v1710_v38  ;;  %v4689_v38 = vld [vmem:[%s5445_s24 + $0x9c] sm:$0xf]  ;;  %v2089_v5 = vshrl.u32 %v4690_v20, 16 }
 0x11a   : > { %v1421_v14 = vadd.f32 %v1347_v9, %v995_v52  ;;  %v1251_v52 = vunpack.c.l.b16 %v1195_v41  ;;  %v2073_v54 = vrot.slane %v2071_v47, 5  ;;  %v1076_v9 = vld [vmem:[%s5445_s24 + $0x90] sm:$0xe]  ;;  %v2079_v25 = vshll.u32 %v4689_v38, 16 }
 0x11b   : > { %4647 = vmatmul.msk.bf16.gmra.mxu3 %vm702_vm4, %v5025_v57  ;;  %v2085_v41 = vshll.u32 %v4690_v20, 16 }
 0x11c   : > { %v1272_v4 = vpack.c.b16 %v1252_v50, %v1251_v52  ;;  %v2074_v23 = vsel %vm5457_vm3, %v2069_v19, %v2073_v54  ;;  %v2091_v19 = vrot.slane %v2089_v5, 4 }
 0x11d   : > { %v2291_v60 = vpop.f32.mrf.mxu0 }
 0x11e   : > { %v1637_v48 = vpop.f32.mrf.mxu3  ;;  %v999_v35 = vpop.f32.mrf.mxu1 }
 0x11f   : > { %v1711_v3 = vadd.f32 %v1637_v48, %v1421_v14  ;;  %v1000_v30 = vadd.f32 %v999_v35, %v5873_v56  ;;  %v2076_v56 = vshrl.u32 %v4689_v38, 16  ;;  %v2064_v14 = vsel %vm5457_vm3, %v2059_v51, %v2063_v11 }
 0x120   : > { %4712 = vmatmul.msk.bf16.gmra.mxu0 %vm702_vm4, %v2215_v62  ;;  %v5217_v62 = vld [vmem:[%s5445_s24 + $0x98] sm:$0x1]  ;;  %v4519_v48 = vrot.slane %v1076_v9, 9  ;;  %v1203_v35 = vrot.slane %v1201_v8, 4  ;;  %v2195_v52 = vunpack.c.l.b16 %v2064_v14  ;;  %v2196_v11 = vunpack.c.l.b16 %v2074_v23 }
 0x121   : > { %v1349_v27 = vpop.f32.mrf.mxu2  ;;  %4502 = vmatmul.msk.bf16.gmra.mxu1 %vm702_vm4, %v5010_v44  ;;  %v5962_v57 = vadd.f32 %v2291_v60, %v1711_v3  ;;  %v1204_v60 = vrot.slane %v5217_v62, 5  ;;  %v2078_v50 = vrot.slane %v2076_v56, 4  ;;  %v2081_v3 = vrot.slane %v2079_v25, 5  ;;  %v5011_v56 = vld [vmem:[%s5445_s24 + $0x90] sm:$0xff] }
 0x122   : > { %v1422_v61 = vadd.f32 %v1349_v27, %v997_v21  ;;  %v2087_v51 = vrot.slane %v2085_v41, 5  ;;  %v2216_v20 = vpack.c.b16 %v2196_v11, %v2195_v52  ;;  %v4693_v11 = vld [vmem:[%s5445_s24 + $0xac] sm:$0xf] }
 0x123   : > { %v2082_v16 = vor.u32 %v2081_v3, %v2078_v50  ;;  %v1077_v50 = vld [vmem:[%s5445_s24 + $0x9c] sm:$0xe] }
 0x124   : > { %v2092_v25 = vor.u32 %v2091_v19, %v2087_v51 }
 0x125   : > { %v2293_v1 = vpop.f32.mrf.mxu0 }
 0x126   : > { %v1639_v21 = vpop.f32.mrf.mxu3  ;;  %4535 = vmatmul.msk.bf16.gmra.mxu2 %vm702_vm4, %v1272_v4  ;;  %v1001_v44 = vpop.f32.mrf.mxu1  ;;  %v4691_v4 = vld [vmem:[%s5445_s24 + $0xa4] sm:$0x1] }
 0x127   : > { %v1712_v31 = vadd.f32 %v1639_v21, %v1422_v61  ;;  %v1002_v47 = vadd.f32 %v1001_v44, %v5891_v24  ;;  %v1202_v61 = vsel %vm5631_vm7, %v4519_v48, %v1201_v8  ;;  %v1205_v24 = vsel %vm5631_vm7, %v1203_v35, %v1204_v60  ;;  %v4692_v44 = vld [vmem:[%s5445_s24 + $0xa8] sm:$0xf]  ;;  %v5218_v35 = vld [vmem:[%s5445_s24 + $0xa0] sm:$0xf] }
 0x128   : > { %v2095_v14 = vshll.u32 %v4691_v4, 16  ;;  %v1254_v41 = vunpack.c.l.b16 %v1205_v24  ;;  %v2083_v8 = vrot.slane %v2082_v16, 4  ;;  %v2093_v60 = vrot.slane %v2092_v25, 4 }
 0x129   : > { %v1352_v27 = vpop.f32.mrf.mxu2  ;;  %v5975_v54 = vadd.f32 %v2293_v1, %v1712_v31  ;;  %v1208_v52 = vrot.slane %v5218_v35, 5  ;;  %v2103_v19 = vshll.u32 %v4692_v44, 16  ;;  %v2113_v24 = vshrl.u32 %v4693_v11, 16 }
 0x12a   : > { %v1423_v38 = vadd.f32 %v1352_v27, %v1000_v30  ;;  %v1253_v30 = vunpack.c.l.b16 %v1202_v61  ;;  %v2097_v21 = vrot.slane %v2095_v14, 5  ;;  %v2088_v3 = vsel %vm5457_vm3, %v2083_v8, %v2087_v51 }
 0x12b   : > { %4648 = vmatmul.msk.bf16.gmra.mxu3 %vm702_vm4, %v5026_v33  ;;  %v2100_v27 = vshrl.u32 %v4692_v44, 16  ;;  %v2109_v61 = vshll.u32 %v4693_v11, 16  ;;  %v1210_v25 = vrot.slane %v1208_v52, 4  ;;  %v2197_v51 = vunpack.c.l.b16 %v2088_v3  ;;  %v4694_v11 = vld [vmem:[%s5445_s24 + $0xb0] sm:$0x1]  ;;  %v5012_v3 = vld [vmem:[%s5445_s24 + $0x9c] sm:$0xff] }
 0x12c   : > { %v1273_v48 = vpack.c.b16 %v1254_v41, %v1253_v30  ;;  %v2098_v4 = vsel %vm5457_vm3, %v2093_v60, %v2097_v21  ;;  %v2105_v8 = vrot.slane %v2103_v19, 5  ;;  %v2115_v21 = vrot.slane %v2113_v24, 4 }
 0x12d   : > { %v2296_v9 = vpop.f32.mrf.mxu0  ;;  %v2198_v41 = vunpack.c.l.b16 %v2098_v4  ;;  %v2111_v60 = vrot.slane %v2109_v61, 5  ;;  %v2119_v4 = vshll.u32 %v4694_v11, 16 }
 0x12e   : > { %v1642_v1 = vpop.f32.mrf.mxu3  ;;  %v1004_v23 = vpop.f32.mrf.mxu1 }
 0x12f   : > { %v1713_v5 = vadd.f32 %v1642_v1, %v1423_v38  ;;  %v5027_v1 = vld [vmem:[%s5445_s24 + $0x9c] sm:$0xff]  ;;  %v1005_v30 = vadd.f32 %v1004_v23, %v5726_v7  ;;  %v2217_v7 = vpack.c.b16 %v2198_v41, %v2197_v51  ;;  %v2121_v51 = vrot.slane %v2119_v4, 5 }
 0x130   : > { %4713 = vmatmul.msk.bf16.gmra.mxu0 %vm702_vm4, %v2216_v20  ;;  %v5219_v20 = vld [vmem:[%s5445_s24 + $0xa4] sm:$0x1] }
 0x131   : > { %v1354_v62 = vpop.f32.mrf.mxu2  ;;  %4503 = vmatmul.msk.bf16.gmra.mxu1 %vm702_vm4, %v5011_v56  ;;  %v5987_v31 = vadd.f32 %v2296_v9, %v1713_v5  ;;  %v1211_v16 = vrot.slane %v5219_v20, 5  ;;  %v4520_v56 = vrot.slane %v1077_v50, 9  ;;  %v2102_v5 = vrot.slane %v2100_v27, 4 }
 0x132   : > { %v1424_v33 = vadd.f32 %v1354_v62, %v1002_v47 }
 0x133   : > { %v2106_v23 = vor.u32 %v2105_v8, %v2102_v5 }
 0x135   : > { %v2298_v38 = vpop.f32.mrf.mxu0 }
 0x136   : > { %v1644_v47 = vpop.f32.mrf.mxu3  ;;  %4536 = vmatmul.msk.bf16.gmra.mxu2 %vm702_vm4, %v1273_v48  ;;  %v1006_v9 = vpop.f32.mrf.mxu1  ;;  %v1209_v48 = vsel %vm5631_vm7, %v4520_v56, %v1208_v52  ;;  %v4695_v52 = vld [vmem:[%s5445_s24 + $0xb4] sm:$0xf]  ;;  %v2107_v56 = vrot.slane %v2106_v23, 4 }
 0x137   : > { %v1714_v14 = vadd.f32 %v1644_v47, %v1424_v33  ;;  %v1212_v33 = vsel %vm5631_vm7, %v1210_v25, %v1211_v16  ;;  %v1255_v27 = vunpack.c.l.b16 %v1209_v48  ;;  %v4696_v47 = vld [vmem:[%s5445_s24 + $0xb8] sm:$0xf]  ;;  %v1007_v16 = vadd.f32 %v1006_v9, %v5742_v34 }
 0x138   : > { %v1256_v19 = vunpack.c.l.b16 %v1212_v33  ;;  %v2124_v5 = vshrl.u32 %v4695_v52, 16  ;;  %v2127_v8 = vshll.u32 %v4695_v52, 16  ;;  %v2137_v48 = vshrl.u32 %v4696_v47, 16  ;;  %v1078_v33 = vld [vmem:[%s5445_s24 + $0xa8] sm:$0xe] }
 0x139   : > { %v1357_v62 = vpop.f32.mrf.mxu2  ;;  %v6000_v44 = vadd.f32 %v2298_v38, %v1714_v14  ;;  %v2116_v38 = vor.u32 %v2115_v21, %v2111_v60  ;;  %v5220_v21 = vld [vmem:[%s5445_s24 + $0xac] sm:$0xf]  ;;  %v2112_v9 = vsel %vm5457_vm3, %v2107_v56, %v2111_v60 }
 0x13a   : > { %v1425_v35 = vadd.f32 %v1357_v62, %v1005_v30  ;;  %v1274_v14 = vpack.c.b16 %v1256_v19, %v1255_v27  ;;  %v2133_v62 = vshll.u32 %v4696_v47, 16  ;;  %v2126_v27 = vrot.slane %v2124_v5, 4 }
 0x13b   : > { %4649 = vmatmul.msk.bf16.gmra.mxu3 %vm702_vm4, %v5027_v1  ;;  %v2117_v1 = vrot.slane %v2116_v38, 4  ;;  %v2129_v19 = vrot.slane %v2127_v8, 5  ;;  %v2139_v47 = vrot.slane %v2137_v48, 4  ;;  %v5013_v48 = vld [vmem:[%s5445_s24 + $0xa8] sm:$0xff] }
 0x13c   : > { %v2135_v38 = vrot.slane %v2133_v62, 5 }
 0x13d   : > { %v2301_v50 = vpop.f32.mrf.mxu0  ;;  %v2122_v11 = vsel %vm5457_vm3, %v2117_v1, %v2121_v51 }
 0x13e   : > { %v1647_v61 = vpop.f32.mrf.mxu3  ;;  %v1009_v24 = vpop.f32.mrf.mxu1  ;;  %v2200_v56 = vunpack.c.l.b16 %v2122_v11  ;;  %v2140_v8 = vor.u32 %v2139_v47, %v2135_v38 }
 0x13f   : > { %v1715_v20 = vadd.f32 %v1647_v61, %v1425_v35  ;;  %v1215_v35 = vrot.slane %v5220_v21, 5  ;;  %v5028_v61 = vld [vmem:[%s5445_s24 + $0xa8] sm:$0xff]  ;;  %v1010_v60 = vadd.f32 %v1009_v24, %v5762_v58 }
 0x140   : > { %4714 = vmatmul.msk.bf16.gmra.mxu0 %vm702_vm4, %v2217_v7  ;;  %v5221_v7 = vld [vmem:[%s5445_s24 + $0xb0] sm:$0x1] }
 0x141   : > { %v1359_v25 = vpop.f32.mrf.mxu2  ;;  %4504 = vmatmul.msk.bf16.gmra.mxu1 %vm702_vm4, %v5012_v3  ;;  %v6014_v30 = vadd.f32 %v2301_v50, %v1715_v20  ;;  %v1218_v23 = vrot.slane %v5221_v7, 5  ;;  %v4521_v20 = vrot.slane %v1078_v33, 9  ;;  %v1217_v52 = vrot.slane %v1215_v35, 4 }
 0x142   : > { %v1426_v41 = vadd.f32 %v1359_v25, %v1007_v16  ;;  %v2199_v16 = vunpack.c.l.b16 %v2112_v9  ;;  %v4697_v25 = vld [vmem:[%s5445_s24 + $0xbc] sm:$0x1] }
 0x143   : > { %v1219_v5 = vsel %vm5631_vm7, %v1217_v52, %v1218_v23  ;;  %v2143_v58 = vshll.u32 %v4697_v25, 16  ;;  %v4699_v52 = vld [vmem:[%s5445_s24 + $0xc4] sm:$0xf] }
 0x144   : > { %v2218_v24 = vpack.c.b16 %v2200_v56, %v2199_v16  ;;  %v1258_v11 = vunpack.c.l.b16 %v1219_v5  ;;  %v1079_v16 = vld [vmem:[%s5445_s24 + $0xb4] sm:$0xe]  ;;  %v5223_v56 = vld [vmem:[%s5445_s24 + $0xb8] sm:$0xf]  ;;  %v2161_v5 = vshrl.u32 %v4699_v52, 16 }
 0x145   : > { %v2303_v34 = vpop.f32.mrf.mxu0  ;;  %v1222_v25 = vrot.slane %v5223_v56, 5 }
 0x146   : > { %v1649_v50 = vpop.f32.mrf.mxu3  ;;  %4537 = vmatmul.msk.bf16.gmra.mxu2 %vm702_vm4, %v1274_v14  ;;  %v1011_v3 = vpop.f32.mrf.mxu1  ;;  %v2130_v14 = vor.u32 %v2129_v19, %v2126_v27  ;;  %v2145_v27 = vrot.slane %v2143_v58, 5  ;;  %v4698_v19 = vld [vmem:[%s5445_s24 + $0xc0] sm:$0xf]  ;;  %v5224_v58 = vld [vmem:[%s5445_s24 + $0x14] sm:$0x1] }
 0x147   : > { %v1716_v4 = vadd.f32 %v1649_v50, %v1426_v41  ;;  %v1216_v41 = vsel %vm5631_vm7, %v4521_v20, %v1215_v35  ;;  %v2141_v35 = vrot.slane %v2140_v8, 4  ;;  %v1012_v23 = vadd.f32 %v1011_v3, %v5779_v28 }
 0x148   : > { %v1257_v9 = vunpack.c.l.b16 %v1216_v41  ;;  %v2131_v50 = vrot.slane %v2130_v14, 4  ;;  %v2148_v3 = vshrl.u32 %v4698_v19, 16  ;;  %v2151_v14 = vshll.u32 %v4698_v19, 16  ;;  %v5029_v19 = vld [vmem:[%s5445_s24 + $0xb4] sm:$0xff] }
 0x149   : > { %v1362_v1 = vpop.f32.mrf.mxu2  ;;  %v6027_v51 = vadd.f32 %v2303_v34, %v1716_v4  ;;  %v5222_v4 = vld [vmem:[%s5445_s24 + $0x10] sm:$0xf]  ;;  %v2146_v28 = vsel %vm5457_vm3, %v2141_v35, %v2145_v27  ;;  %v2157_v41 = vshll.u32 %v4699_v52, 16  ;;  %v1224_v35 = vrot.slane %v1222_v25, 4  ;;  %v4718_v27 = vld [vmem:[%s5445_s24 + $0xc] sm:$0xe] }
 0x14a   : > { %v1427_v21 = vadd.f32 %v1362_v1, %v1010_v60  ;;  %v1275_v60 = vpack.c.b16 %v1258_v11, %v1257_v9  ;;  %v5225_v9 = vld [vmem:[%s5445_s24 + $0xbc] sm:$0x1]  ;;  %v4734_v52 = vrot.slane %v4718_v27, 9 }
 0x14b   : > { %4650 = vmatmul.msk.bf16.gmra.mxu3 %vm702_vm4, %v5028_v61  ;;  %v2459_v61 = vrot.slane %v5222_v4, 5  ;;  %v2150_v4 = vrot.slane %v2148_v3, 4 }
 0x14d   : > { %v2306_v62 = vpop.f32.mrf.mxu0  ;;  %v2461_v8 = vrot.slane %v2459_v61, 4 }
 0x14e   : > { %v1652_v33 = vpop.f32.mrf.mxu3  ;;  %v1014_v34 = vpop.f32.mrf.mxu1 }
 0x14f   : > { %v1717_v7 = vadd.f32 %v1652_v33, %v1427_v21  ;;  %v2136_v21 = vsel %vm5457_vm3, %v2131_v50, %v2135_v38  ;;  %v4522_v33 = vrot.slane %v1079_v16, 9  ;;  %v1015_v56 = vadd.f32 %v1014_v34, %v5799_v53 }
 0x150   : > { %4715 = vmatmul.msk.bf16.gmra.mxu0 %vm702_vm4, %v2218_v24  ;;  %v2462_v24 = vrot.slane %v5224_v58, 5  ;;  %v2201_v38 = vunpack.c.l.b16 %v2136_v21  ;;  %v2159_v16 = vrot.slane %v2157_v41, 5  ;;  %v2163_v58 = vrot.slane %v2161_v5, 4  ;;  %v4700_v21 = vld [vmem:[%s5445_s24 + $0xc8] sm:$0x1] }
 0x151   : > { %v1364_v20 = vpop.f32.mrf.mxu2  ;;  %4505 = vmatmul.msk.bf16.gmra.mxu1 %vm702_vm4, %v5013_v48  ;;  %v6043_v1 = vadd.f32 %v2306_v62, %v1717_v7  ;;  %v1225_v62 = vrot.slane %v5225_v9, 5  ;;  %v2202_v7 = vunpack.c.l.b16 %v2146_v28  ;;  %v2460_v28 = vsel %vm5631_vm7, %v4734_v52, %v2459_v61  ;;  %v4880_v41 = vld [vmem:[%s5445_s24 + $0x18] sm:$0xf] }
 0x152   : > { %v1428_v47 = vadd.f32 %v1364_v20, %v1012_v23  ;;  %v2153_v20 = vrot.slane %v2151_v14, 5  ;;  %v2571_v53 = vunpack.c.l.b16 %v2460_v28  ;;  %v2167_v27 = vshll.u32 %v4700_v21, 16 }
 0x153   : > { %v1226_v14 = vsel %vm5631_vm7, %v1224_v35, %v1225_v62  ;;  %v2219_v5 = vpack.c.b16 %v2202_v7, %v2201_v38  ;;  %v3130_v62 = vshrl.u32 %v4880_v41, 16  ;;  %v3133_v35 = vshll.u32 %v4880_v41, 16 }
 0x155   : > { %v2308_v48 = vpop.f32.mrf.mxu0  ;;  %v3132_v21 = vrot.slane %v3130_v62, 4 }
 0x156   : > { %v1654_v11 = vpop.f32.mrf.mxu3  ;;  %4538 = vmatmul.msk.bf16.gmra.mxu2 %vm702_vm4, %v1275_v60  ;;  %v1016_v50 = vpop.f32.mrf.mxu1  ;;  %v1223_v60 = vsel %vm5631_vm7, %v4522_v33, %v1222_v25  ;;  %v6067_v25 = vld [vmem:[%s5445_s24 + $0x1c] sm:$0xf]  ;;  %v2164_v33 = vor.u32 %v2163_v58, %v2159_v16 }
 0x157   : > { %v1718_v23 = vadd.f32 %v1654_v11, %v1428_v47  ;;  %v2463_v47 = vsel %vm5631_vm7, %v2461_v8, %v2462_v24  ;;  %v2154_v11 = vor.u32 %v2153_v20, %v2150_v4  ;;  %v5014_v24 = vld [vmem:[%s5445_s24 + $0xb4] sm:$0xff]  ;;  %v3143_v38 = vshrl.u32 %v6067_v25, 16 }
 0x158   : > { %v2572_v34 = vunpack.c.l.b16 %v2463_v47  ;;  %v1017_v4 = vadd.f32 %v1016_v50, %v5819_v17 }
 0x159   : > { %v1367_v9 = vpop.f32.mrf.mxu2  ;;  %v6071_v52 = vadd.f32 %v2308_v48, %v1718_v23  ;;  %v2155_v48 = vrot.slane %v2154_v11, 4  ;;  %v2165_v23 = vrot.slane %v2164_v33, 4  ;;  %v3145_v41 = vrot.slane %v3143_v38, 4 }
 0x15a   : > { %v1429_v3 = vadd.f32 %v1367_v9, %v1015_v56  ;;  %v6069_v61 = vpack.c.b16 %v2572_v34, %v2571_v53  ;;  %v1259_v56 = vunpack.c.l.b16 %v1223_v60  ;;  %v1260_v9 = vunpack.c.l.b16 %v1226_v14 }
 0x15b   : > { %4651 = vmatmul.msk.bf16.gmra.mxu3 %vm702_vm4, %v5029_v19  ;;  %6887 = vst [vmem:[#allocation5_spill] sm:$0xff] %v6071_v52  ;;  %v3139_v19 = vshll.u32 %v6067_v25, 16  ;;  %v2169_v60 = vrot.slane %v2167_v27, 5  ;;  %v3135_v14 = vrot.slane %v3133_v35, 5  ;;  %v2160_v17 = vsel %vm5457_vm3, %v2155_v48, %v2159_v16  ;;  %v4945_v48 = vld [vmem:[%s5445_s24 + $0x18] sm:$0xe] }
 0x15c   : > { %v1276_v58 = vpack.c.b16 %v1260_v9, %v1259_v56  ;;  %v5030_v9 = vld [vmem:[%s5445_s24 + $0xc0] sm:$0xff]  ;;  %v2203_v16 = vunpack.c.l.b16 %v2160_v17 }
 0x15d   : > { %v2311_v8 = vpop.f32.mrf.mxu0  ;;  %v3141_v34 = vrot.slane %v3139_v19, 5  ;;  %v2170_v50 = vsel %vm5457_vm3, %v2165_v23, %v2169_v60  ;;  %v3136_v27 = vor.u32 %v3135_v14, %v3132_v21  ;;  %v4883_v23 = vld [vmem:[%s5445_s24 + $0x24] sm:$0xf]  ;;  %v6097_v60 = vld [vmem:[%s5445_s24 + $0x28] sm:$0xf] }
 0x15e   : > { %v1657_v28 = vpop.f32.mrf.mxu3  ;;  %v1019_v47 = vpop.f32.mrf.mxu1  ;;  %v2204_v35 = vunpack.c.l.b16 %v2170_v50 }
 0x15f   : > { %v1719_v7 = vadd.f32 %v1657_v28, %v1429_v3  ;;  %v6082_v3 = vld [vmem:[%s5445_s24 + $0x20] sm:$0x1]  ;;  %v1020_v62 = vadd.f32 %v1019_v47, %v5842_v2  ;;  %v3137_v38 = vrot.slane %v3136_v27, 4  ;;  %v5226_v47 = vld [vmem:[%s5445_s24 + $0x1c] sm:$0xf] }
 0x160   : > { %4716 = vmatmul.msk.bf16.gmra.mxu0 %vm702_vm4, %v2219_v5  ;;  %v2466_v14 = vrot.slane %v5226_v47, 5  ;;  %v4719_v27 = vld [vmem:[%s5445_s24 + $0x18] sm:$0xe] }
 0x161   : > { %v1369_v20 = vpop.f32.mrf.mxu2  ;;  %4506 = vmatmul.msk.bf16.gmra.mxu1 %vm702_vm4, %v5014_v24  ;;  %v6079_v52 = vadd.f32 %v2311_v8, %v1719_v7  ;;  %v3146_v24 = vor.u32 %v3145_v41, %v3141_v34  ;;  %v3149_v8 = vshll.u32 %v6082_v3, 16  ;;  %v3142_v17 = vsel %vm5457_vm3, %v3137_v38, %v3141_v34 }
 0x162   : > { %v1430_v53 = vadd.f32 %v1369_v20, %v1017_v4  ;;  %v2220_v20 = vpack.c.b16 %v2204_v35, %v2203_v16  ;;  %v3804_v34 = vrot.slane %v6082_v3, 5  ;;  %v5227_v16 = vld [vmem:[%s5445_s24 + $0x20] sm:$0x1]  ;;  %v4735_v38 = vrot.slane %v4719_v27, 9 }
 0x163   : > { %v3147_v7 = vrot.slane %v3146_v24, 4  ;;  %v3151_v4 = vrot.slane %v3149_v8, 5  ;;  %v3154_v24 = vshrl.u32 %v4883_v23, 16  ;;  %v3157_v8 = vshll.u32 %v4883_v23, 16 }
 0x164   : > { %v2469_v35 = vrot.slane %v5227_v16, 5  ;;  %v2467_v27 = vsel %vm5631_vm7, %v4735_v38, %v2466_v14  ;;  %v4886_v38 = vld [vmem:[%s5445_s24 + $0x30] sm:$0xf] }
 0x165   : > { %v2313_v5 = vpop.f32.mrf.mxu0  ;;  %v3152_v50 = vsel %vm5457_vm3, %v3147_v7, %v3151_v4  ;;  %v2468_v7 = vrot.slane %v2466_v14, 4  ;;  %v3159_v3 = vrot.slane %v3157_v8, 5 }
 0x166   : > { %v1659_v11 = vpop.f32.mrf.mxu3  ;;  %4539 = vmatmul.msk.bf16.gmra.mxu2 %vm702_vm4, %v1276_v58  ;;  %v1021_v33 = vpop.f32.mrf.mxu1  ;;  %v3801_v58 = vrot.slane %v6067_v25, 5  ;;  %v3516_v23 = vunpack.c.l.b16 %v3152_v50 }
 0x167   : > { %v1720_v56 = vadd.f32 %v1659_v11, %v1430_v53  ;;  %v4961_v11 = vrot.slane %v4945_v48, 9  ;;  %v5031_v48 = vld [vmem:[%s5445_s24 + $0x18] sm:$0xff]  ;;  %v2470_v50 = vsel %vm5631_vm7, %v2468_v7, %v2469_v35  ;;  %v6137_v7 = vld [vmem:[%s5445_s24 + $0x34] sm:$0xf] }
 0x169   : > { %v1372_v28 = vpop.f32.mrf.mxu2  ;;  %v6099_v21 = vadd.f32 %v2313_v5, %v1720_v56  ;;  %v3163_v5 = vshll.u32 %v6097_v60, 16  ;;  %v3167_v56 = vshrl.u32 %v6097_v60, 16 }
 0x16a   : > { %v1431_v19 = vadd.f32 %v1372_v28, %v1020_v62  ;;  %v3803_v62 = vrot.slane %v3801_v58, 4 }
 0x16b   : > { %4652 = vmatmul.msk.bf16.gmra.mxu3 %vm702_vm4, %v5030_v9  ;;  %v1022_v9 = vadd.f32 %v1021_v33, %v5862_v29  ;;  %v3156_v33 = vrot.slane %v3154_v24, 4  ;;  %v6120_v47 = vrot.slane %v3163_v5, 5 }
 0x16d   : > { %v2316_v2 = vpop.f32.mrf.mxu0  ;;  %v3160_v5 = vor.u32 %v3159_v3, %v3156_v33  ;;  %v4946_v33 = vld [vmem:[%s5445_s24 + $0x24] sm:$0xe] }
 0x16e   : > { %v1662_v53 = vpop.f32.mrf.mxu3  ;;  %v1024_v41 = vpop.f32.mrf.mxu1 }
 0x16f   : > { %v1721_v25 = vadd.f32 %v1662_v53, %v1431_v19  ;;  %v3515_v19 = vunpack.c.l.b16 %v3142_v17  ;;  %v3169_v53 = vrot.slane %v3167_v56, 4  ;;  %v1025_v14 = vadd.f32 %v1024_v41, %v5744_v37 }
 0x170   : > { %4717 = vmatmul.msk.bf16.gmra.mxu0 %vm702_vm4, %v2220_v20  ;;  %v3802_v20 = vsel %vm5631_vm7, %v4961_v11, %v3801_v58  ;;  %v3808_v37 = vrot.slane %v6097_v60, 5 }
 0x171   : > { %v1374_v28 = vpop.f32.mrf.mxu2  ;;  %4751 = vmatmul.msk.bf16.vlgmr.msra.gmra.mxu1 %vm702_vm4, %v6069_v61  ;;  %v6118_v29 = vadd.f32 %v2316_v2, %v1721_v25  ;;  %v3805_v61 = vsel %vm5631_vm7, %v3803_v62, %v3804_v34  ;;  %v3547_v2 = vpack.c.b16 %v3516_v23, %v3515_v19  ;;  %v3913_v11 = vunpack.c.l.b16 %v3802_v20 }
 0x172   : > { %v1432_v4 = vadd.f32 %v1374_v28, %v1022_v9  ;;  %v6129_v9 = vld [vmem:[%s5445_s24 + $0x2c] sm:$0x1]  ;;  %v3914_v8 = vunpack.c.l.b16 %v3805_v61  ;;  %v3170_v56 = vor.u32 %v3169_v53, %v6120_v47  ;;  %v2573_v62 = vunpack.c.l.b16 %v2467_v27 }
 0x173   : > { %v2574_v34 = vunpack.c.l.b16 %v2470_v50  ;;  %v3173_v16 = vshll.u32 %v6129_v9, 16  ;;  %v3178_v53 = vshrl.u32 %v4886_v38, 16  ;;  %v3181_v61 = vshll.u32 %v4886_v38, 16 }
 0x174   : > { %v3945_v19 = vpack.c.b16 %v3914_v8, %v3913_v11  ;;  %v3187_v27 = vshll.u32 %v6137_v7, 16  ;;  %v3191_v50 = vshrl.u32 %v6137_v7, 16  ;;  %v5228_v11 = vld [vmem:[%s5445_s24 + $0x28] sm:$0xf]  ;;  %v3811_v60 = vrot.slane %v6129_v9, 5 }
 0x175   : > { %v2318_v17 = vpop.f32.mrf.mxu0  ;;  %v2604_v23 = vpack.c.b16 %v2574_v34, %v2573_v62  ;;  %v3175_v20 = vrot.slane %v3173_v16, 5  ;;  %v2473_v8 = vrot.slane %v5228_v11, 5  ;;  %v4962_v62 = vrot.slane %v4946_v33, 9  ;;  %v5032_v11 = vld [vmem:[%s5445_s24 + $0x24] sm:$0xff] }
 0x176   : > { %v1664_v58 = vpop.f32.mrf.mxu3  ;;  %4864 = vmatmul.msk.bf16.vlgmr.msra.gmra.mxu2 %vm702_vm4, %v5031_v48  ;;  %v1026_v24 = vpop.f32.mrf.mxu1  ;;  %v3171_v48 = vrot.slane %v3170_v56, 4  ;;  %v3183_v33 = vrot.slane %v3181_v61, 5  ;;  %v6158_v9 = vrot.slane %v3187_v27, 5 }
 0x177   : > { %v1722_v25 = vadd.f32 %v1664_v58, %v1432_v4  ;;  %v3161_v4 = vrot.slane %v3160_v5, 4  ;;  %v5229_v5 = vld [vmem:[%s5445_s24 + $0x2c] sm:$0x1] }
 0x178   : > { %v2476_v56 = vrot.slane %v5229_v5, 5  ;;  %v3176_v16 = vsel %vm5457_vm3, %v3171_v48, %v3175_v20  ;;  %v3809_v20 = vsel %vm5631_vm7, %v4962_v62, %v3808_v37 }
 0x179   : > { %v1377_v35 = vpop.f32.mrf.mxu2  ;;  %v6142_v41 = vadd.f32 %v2318_v17, %v1722_v25  ;;  %v4720_v17 = vld [vmem:[%s5445_s24 + $0x24] sm:$0xe]  ;;  %v1027_v25 = vadd.f32 %v1026_v24, %v5765_v63  ;;  %v3166_v34 = vsel %vm5457_vm3, %v3161_v4, %v6120_v47  ;;  %v2475_v24 = vrot.slane %v2473_v8, 4 }
 0x17a   : > { %v1433_v28 = vadd.f32 %v1377_v35, %v1025_v14  ;;  %v3810_v35 = vrot.slane %v3808_v37, 4  ;;  %v4736_v63 = vrot.slane %v4720_v17, 9  ;;  %v3517_v47 = vunpack.c.l.b16 %v3166_v34 }
 0x17b   : > { %4929 = vmatmul.msk.bf16.vlgmr.msra.gmra.mxu3 %vm702_vm4, %v3547_v2  ;;  %6888 = vst [vmem:[#allocation6_spill] sm:$0xff] %v6142_v41  ;;  %v3518_v4 = vunpack.c.l.b16 %v3176_v16  ;;  %v6164_v41 = vld [vmem:[%s5445_s24 + $0x38] sm:$0x1] }
 0x17c   : > { %v3197_v37 = vshll.u32 %v6164_v41, 16 }
 0x17d   : > { %v2321_v3 = vpop.f32.mrf.mxu0  ;;  %v3548_v17 = vpack.c.b16 %v3518_v4, %v3517_v47  ;;  %v5230_v4 = vld [vmem:[%s5445_s24 + $0x34] sm:$0xf] }
 0x17e   : > { %v1667_v58 = vpop.f32.mrf.mxu3  ;;  %v1029_v2 = vpop.f32.mrf.mxu1 }
 0x17f   : > { %v1723_v14 = vadd.f32 %v1667_v58, %v1433_v28  ;;  %v3180_v28 = vrot.slane %v3178_v53, 4  ;;  %v3193_v58 = vrot.slane %v3191_v50, 4  ;;  %v2477_v50 = vsel %vm5631_vm7, %v2475_v24, %v2476_v56  ;;  %v6183_v24 = vld [vmem:[%s5445_s24 + $0x40] sm:$0xf] }
 0x180   : > { %4978 = vmatmul.msk.bf16.vlgmr.msra.gmra.mxu0 %vm702_vm4, %v3945_v19 }
 0x181   : > { %v1379_v38 = vpop.f32.mrf.mxu2  ;;  %4752 = vmatmul.msk.bf16.gmra.mxu1 %vm702_vm4, %v2604_v23  ;;  %v6161_v5 = vadd.f32 %v2321_v3, %v1723_v14  ;;  %v3812_v23 = vsel %vm5631_vm7, %v3810_v35, %v3811_v60  ;;  %v3184_v53 = vor.u32 %v3183_v33, %v3180_v28  ;;  %v2474_v3 = vsel %vm5631_vm7, %v4736_v63, %v2473_v8 }
 0x182   : > { %v1434_v19 = vadd.f32 %v1379_v38, %v1027_v25  ;;  %v3194_v14 = vor.u32 %v3193_v58, %v6158_v9  ;;  %v1030_v60 = vadd.f32 %v1029_v2, %v5782_v22  ;;  %v3915_v25 = vunpack.c.l.b16 %v3809_v20  ;;  %v4947_v58 = vld [vmem:[%s5445_s24 + $0x30] sm:$0xe] }
 0x183   : > { %v3916_v34 = vunpack.c.l.b16 %v3812_v23  ;;  %v2575_v35 = vunpack.c.l.b16 %v2474_v3  ;;  %v2576_v8 = vunpack.c.l.b16 %v2477_v50  ;;  %v3185_v28 = vrot.slane %v3184_v53, 4 }
 0x184   : > { %v3195_v56 = vrot.slane %v3194_v14, 4  ;;  %v3199_v33 = vrot.slane %v3197_v37, 5  ;;  %v3815_v63 = vrot.slane %v6137_v7, 5  ;;  %v2480_v20 = vrot.slane %v5230_v4, 5  ;;  %v4721_v7 = vld [vmem:[%s5445_s24 + $0x30] sm:$0xe] }
 0x185   : > { %v2323_v48 = vpop.f32.mrf.mxu0  ;;  %v2605_v47 = vpack.c.b16 %v2576_v8, %v2575_v35  ;;  %v4963_v50 = vrot.slane %v4947_v58, 9 }
 0x186   : > { %v1669_v61 = vpop.f32.mrf.mxu3  ;;  %4865 = vmatmul.msk.bf16.gmra.mxu2 %vm702_vm4, %v5032_v11  ;;  %v1031_v27 = vpop.f32.mrf.mxu1  ;;  %v4889_v11 = vld [vmem:[%s5445_s24 + $0x3c] sm:$0xf]  ;;  %v3200_v3 = vsel %vm5457_vm3, %v3195_v56, %v3199_v33  ;;  %v5033_v33 = vld [vmem:[%s5445_s24 + $0x30] sm:$0xff] }
 0x187   : > { %v1724_v62 = vadd.f32 %v1669_v61, %v1434_v19  ;;  %v3946_v19 = vpack.c.b16 %v3916_v34, %v3915_v25  ;;  %v3190_v61 = vsel %vm5457_vm3, %v3185_v28, %v6158_v9  ;;  %v3202_v14 = vshrl.u32 %v4889_v11, 16  ;;  %v5231_v34 = vld [vmem:[%s5445_s24 + $0x38] sm:$0x1] }
 0x188   : > { %v3817_v25 = vrot.slane %v3815_v63, 4  ;;  %v3818_v9 = vrot.slane %v6164_v41, 5  ;;  %v3519_v8 = vunpack.c.l.b16 %v3190_v61  ;;  %v2482_v28 = vrot.slane %v2480_v20, 4 }
 0x189   : > { %v1382_v16 = vpop.f32.mrf.mxu2  ;;  %v6185_v22 = vadd.f32 %v2323_v48, %v1724_v62  ;;  %v3205_v48 = vshll.u32 %v4889_v11, 16  ;;  %v3211_v62 = vshll.u32 %v6183_v24, 16  ;;  %v3520_v58 = vunpack.c.l.b16 %v3200_v3 }
 0x18a   : > { %v1435_v38 = vadd.f32 %v1382_v16, %v1030_v60  ;;  %v1032_v60 = vadd.f32 %v1031_v27, %v5803_v55  ;;  %v2483_v16 = vrot.slane %v5231_v34, 5  ;;  %v3816_v11 = vsel %vm5631_vm7, %v4963_v50, %v3815_v63 }
 0x18b   : > { %4930 = vmatmul.msk.bf16.gmra.mxu3 %vm702_vm4, %v3548_v17  ;;  %v3215_v17 = vshrl.u32 %v6183_v24, 16  ;;  %v3204_v55 = vrot.slane %v3202_v14, 4  ;;  %v3207_v27 = vrot.slane %v3205_v48, 5  ;;  %v6206_v41 = vrot.slane %v3211_v62, 5 }
 0x18c   : > { %v2484_v3 = vsel %vm5631_vm7, %v2482_v28, %v2483_v16  ;;  %v3917_v50 = vunpack.c.l.b16 %v3816_v11  ;;  %v4948_v11 = vld [vmem:[%s5445_s24 + $0x3c] sm:$0xe] }
 0x18d   : > { %v2326_v2 = vpop.f32.mrf.mxu0  ;;  %v3217_v4 = vrot.slane %v3215_v17, 4  ;;  %v3208_v62 = vor.u32 %v3207_v27, %v3204_v55 }
 0x18e   : > { %v1672_v23 = vpop.f32.mrf.mxu3  ;;  %v1034_v53 = vpop.f32.mrf.mxu1 }
 0x18f   : > { %v1725_v37 = vadd.f32 %v1672_v23, %v1435_v38  ;;  %v4737_v38 = vrot.slane %v4721_v7, 9  ;;  %v6215_v7 = vld [vmem:[%s5445_s24 + $0x44] sm:$0x1]  ;;  %v3218_v17 = vor.u32 %v3217_v4, %v6206_v41  ;;  %v3209_v28 = vrot.slane %v3208_v62, 4 }
 0x190   : > { %4979 = vmatmul.msk.bf16.gmra.mxu0 %vm702_vm4, %v3946_v19 }
 0x191   : > { %v1384_v35 = vpop.f32.mrf.mxu2  ;;  %4753 = vmatmul.msk.bf16.gmra.mxu1 %vm702_vm4, %v2605_v47  ;;  %v6204_v19 = vadd.f32 %v2326_v2, %v1725_v37  ;;  %v3819_v47 = vsel %vm5631_vm7, %v3817_v25, %v3818_v9  ;;  %v2481_v61 = vsel %vm5631_vm7, %v4737_v38, %v2480_v20  ;;  %v3549_v2 = vpack.c.b16 %v3520_v58, %v3519_v8  ;;  %v6223_v38 = vld [vmem:[%s5445_s24 + $0x4c] sm:$0xf] }
 0x192   : > { %v1436_v56 = vadd.f32 %v1384_v35, %v1032_v60  ;;  %v3918_v48 = vunpack.c.l.b16 %v3819_v47  ;;  %v1035_v20 = vadd.f32 %v1034_v53, %v5826_v26  ;;  %v2577_v60 = vunpack.c.l.b16 %v2481_v61  ;;  %v4892_v35 = vld [vmem:[%s5445_s24 + $0x48] sm:$0xf] }
 0x193   : > { %v2578_v25 = vunpack.c.l.b16 %v2484_v3  ;;  %v3221_v9 = vshll.u32 %v6215_v7, 16  ;;  %v3822_v26 = vrot.slane %v6183_v24, 5  ;;  %v3226_v27 = vshrl.u32 %v4892_v35, 16 }
 0x194   : > { %v3947_v8 = vpack.c.b16 %v3918_v48, %v3917_v50  ;;  %v3229_v4 = vshll.u32 %v4892_v35, 16  ;;  %v3235_v47 = vshll.u32 %v6223_v38, 16  ;;  %v3239_v61 = vshrl.u32 %v6223_v38, 16  ;;  %v5233_v48 = vld [vmem:[%s5445_s24 + $0x44] sm:$0x1] }
 0x195   : > { %v2328_v23 = vpop.f32.mrf.mxu0  ;;  %v3223_v58 = vrot.slane %v3221_v9, 5  ;;  %v2490_v62 = vrot.slane %v5233_v48, 5  ;;  %v3825_v24 = vrot.slane %v6215_v7, 5  ;;  %v3824_v9 = vrot.slane %v3822_v26, 4  ;;  %v6250_v48 = vld [vmem:[%s5445_s24 + $0x50] sm:$0x1] }
 0x196   : > { %v1674_v63 = vpop.f32.mrf.mxu3  ;;  %4866 = vmatmul.msk.bf16.gmra.mxu2 %vm702_vm4, %v5033_v33  ;;  %v1036_v14 = vpop.f32.mrf.mxu1  ;;  %v2606_v33 = vpack.c.b16 %v2578_v25, %v2577_v60  ;;  %v3214_v60 = vsel %vm5457_vm3, %v3209_v28, %v6206_v41  ;;  %v3231_v35 = vrot.slane %v3229_v4, 5  ;;  %v6244_v7 = vrot.slane %v3235_v47, 5 }
 0x197   : > { %v1726_v37 = vadd.f32 %v1674_v63, %v1436_v56  ;;  %v3219_v56 = vrot.slane %v3218_v17, 4  ;;  %v3521_v41 = vunpack.c.l.b16 %v3214_v60 }
 0x199   : > { %v1387_v34 = vpop.f32.mrf.mxu2  ;;  %v6228_v53 = vadd.f32 %v2328_v23, %v1726_v37  ;;  %v4722_v23 = vld [vmem:[%s5445_s24 + $0x3c] sm:$0xe]  ;;  %v1037_v37 = vadd.f32 %v1036_v14, %v5844_v43  ;;  %v3224_v25 = vsel %vm5457_vm3, %v3219_v56, %v3223_v58 }
 0x19a   : > { %v1437_v16 = vadd.f32 %v1387_v34, %v1035_v20  ;;  %v4964_v20 = vrot.slane %v4948_v11, 9  ;;  %v3241_v11 = vrot.slane %v3239_v61, 4  ;;  %v4738_v43 = vrot.slane %v4722_v23, 9 }
 0x19b   : > { %4931 = vmatmul.msk.bf16.gmra.mxu3 %vm702_vm4, %v3549_v2  ;;  %v5232_v2 = vld [vmem:[%s5445_s24 + $0x40] sm:$0xf]  ;;  %v3522_v28 = vunpack.c.l.b16 %v3224_v25 }
 0x19c   : > { %v2487_v50 = vrot.slane %v5232_v2, 5  ;;  %v3823_v58 = vsel %vm5631_vm7, %v4964_v20, %v3822_v26  ;;  %v3245_v26 = vshll.u32 %v6250_v48, 16 }
 0x19d   : > { %v2331_v55 = vpop.f32.mrf.mxu0  ;;  %v3550_v23 = vpack.c.b16 %v3522_v28, %v3521_v41  ;;  %v5234_v28 = vld [vmem:[%s5445_s24 + $0x4c] sm:$0xf] }
 0x19e   : > { %v1677_v3 = vpop.f32.mrf.mxu3  ;;  %v1039_v63 = vpop.f32.mrf.mxu1  ;;  %v2489_v14 = vrot.slane %v2487_v50, 4 }
 0x19f   : > { %v1727_v17 = vadd.f32 %v1677_v3, %v1437_v16  ;;  %v3228_v16 = vrot.slane %v3226_v27, 4  ;;  %v5034_v3 = vld [vmem:[%s5445_s24 + $0x3c] sm:$0xff] }
 0x1a0   : > { %4980 = vmatmul.msk.bf16.gmra.mxu0 %vm702_vm4, %v3947_v8  ;;  %v2491_v61 = vsel %vm5631_vm7, %v2489_v14, %v2490_v62  ;;  %v6269_v14 = vld [vmem:[%s5445_s24 + $0x58] sm:$0xf] }
 0x1a1   : > { %v1389_v34 = vpop.f32.mrf.mxu2  ;;  %4754 = vmatmul.msk.bf16.gmra.mxu1 %vm702_vm4, %v2606_v33  ;;  %v6247_v2 = vadd.f32 %v2331_v55, %v1727_v17  ;;  %v3826_v33 = vsel %vm5631_vm7, %v3824_v9, %v3825_v24  ;;  %v3232_v27 = vor.u32 %v3231_v35, %v3228_v16  ;;  %v2488_v55 = vsel %vm5631_vm7, %v4738_v43, %v2487_v50 }
 0x1a2   : > { %v1438_v8 = vadd.f32 %v1389_v34, %v1037_v37  ;;  %v3242_v17 = vor.u32 %v3241_v11, %v6244_v7  ;;  %v1040_v24 = vadd.f32 %v1039_v63, %v5865_v40  ;;  %v3919_v37 = vunpack.c.l.b16 %v3823_v58  ;;  %v4949_v11 = vld [vmem:[%s5445_s24 + $0x48] sm:$0xe] }
 0x1a3   : > { %v3920_v60 = vunpack.c.l.b16 %v3826_v33  ;;  %v2579_v9 = vunpack.c.l.b16 %v2488_v55  ;;  %v2580_v50 = vunpack.c.l.b16 %v2491_v61  ;;  %v3233_v16 = vrot.slane %v3232_v27, 4 }
 0x1a4   : > { %v3243_v62 = vrot.slane %v3242_v17, 4  ;;  %v3247_v35 = vrot.slane %v3245_v26, 5  ;;  %v3829_v43 = vrot.slane %v6223_v38, 5  ;;  %v2494_v58 = vrot.slane %v5234_v28, 5  ;;  %v4723_v38 = vld [vmem:[%s5445_s24 + $0x48] sm:$0xe] }
 0x1a5   : > { %v2333_v56 = vpop.f32.mrf.mxu0  ;;  %v2607_v41 = vpack.c.b16 %v2580_v50, %v2579_v9  ;;  %v4965_v61 = vrot.slane %v4949_v11, 9 }
 0x1a6   : > { %v1679_v4 = vpop.f32.mrf.mxu3  ;;  %4867 = vmatmul.msk.bf16.gmra.mxu2 %vm702_vm4, %v5034_v3  ;;  %v1041_v47 = vpop.f32.mrf.mxu1  ;;  %v4895_v3 = vld [vmem:[%s5445_s24 + $0x54] sm:$0xf]  ;;  %v3248_v55 = vsel %vm5457_vm3, %v3243_v62, %v3247_v35  ;;  %v5035_v35 = vld [vmem:[%s5445_s24 + $0x48] sm:$0xff] }
 0x1a7   : > { %v1728_v20 = vadd.f32 %v1679_v4, %v1438_v8  ;;  %v3948_v8 = vpack.c.b16 %v3920_v60, %v3919_v37  ;;  %v3238_v4 = vsel %vm5457_vm3, %v3233_v16, %v6244_v7  ;;  %v3250_v17 = vshrl.u32 %v4895_v3, 16  ;;  %v5235_v60 = vld [vmem:[%s5445_s24 + $0x50] sm:$0x1] }
 0x1a8   : > { %v3831_v37 = vrot.slane %v3829_v43, 4  ;;  %v3832_v7 = vrot.slane %v6250_v48, 5  ;;  %v3523_v50 = vunpack.c.l.b16 %v3238_v4  ;;  %v2496_v16 = vrot.slane %v2494_v58, 4 }
 0x1a9   : > { %v1392_v25 = vpop.f32.mrf.mxu2  ;;  %v6271_v40 = vadd.f32 %v2333_v56, %v1728_v20  ;;  %v3253_v56 = vshll.u32 %v4895_v3, 16  ;;  %v3259_v20 = vshll.u32 %v6269_v14, 16  ;;  %v3524_v11 = vunpack.c.l.b16 %v3248_v55 }
 0x1aa   : > { %v1439_v34 = vadd.f32 %v1392_v25, %v1040_v24  ;;  %v1042_v24 = vadd.f32 %v1041_v47, %v5880_v10  ;;  %v2497_v25 = vrot.slane %v5235_v60, 5  ;;  %v3830_v3 = vsel %vm5631_vm7, %v4965_v61, %v3829_v43 }
 0x1ab   : > { %4932 = vmatmul.msk.bf16.gmra.mxu3 %vm702_vm4, %v3550_v23  ;;  %v3263_v23 = vshrl.u32 %v6269_v14, 16  ;;  %v3252_v10 = vrot.slane %v3250_v17, 4  ;;  %v3255_v47 = vrot.slane %v3253_v56, 5  ;;  %v6292_v48 = vrot.slane %v3259_v20, 5 }
 0x1ac   : > { %v2498_v55 = vsel %vm5631_vm7, %v2496_v16, %v2497_v25  ;;  %v3921_v61 = vunpack.c.l.b16 %v3830_v3  ;;  %v4950_v3 = vld [vmem:[%s5445_s24 + $0x54] sm:$0xe] }
 0x1ad   : > { %v2336_v63 = vpop.f32.mrf.mxu0  ;;  %v3265_v28 = vrot.slane %v3263_v23, 4  ;;  %v3256_v20 = vor.u32 %v3255_v47, %v3252_v10 }
 0x1ae   : > { %v1682_v33 = vpop.f32.mrf.mxu3  ;;  %v1044_v27 = vpop.f32.mrf.mxu1 }
 0x1af   : > { %v1729_v26 = vadd.f32 %v1682_v33, %v1439_v34  ;;  %v4739_v34 = vrot.slane %v4723_v38, 9  ;;  %v6301_v38 = vld [vmem:[%s5445_s24 + $0x5c] sm:$0x1]  ;;  %v3266_v23 = vor.u32 %v3265_v28, %v6292_v48  ;;  %v3257_v16 = vrot.slane %v3256_v20, 4 }
 0x1b0   : > { %4981 = vmatmul.msk.bf16.gmra.mxu0 %vm702_vm4, %v3948_v8 }
 0x1b1   : > { %v1394_v9 = vpop.f32.mrf.mxu2  ;;  %4755 = vmatmul.msk.bf16.gmra.mxu1 %vm702_vm4, %v2607_v41  ;;  %v6290_v8 = vadd.f32 %v2336_v63, %v1729_v26  ;;  %v3833_v41 = vsel %vm5631_vm7, %v3831_v37, %v3832_v7  ;;  %v2495_v4 = vsel %vm5631_vm7, %v4739_v34, %v2494_v58  ;;  %v3551_v63 = vpack.c.b16 %v3524_v11, %v3523_v50  ;;  %v6309_v34 = vld [vmem:[%s5445_s24 + $0x64] sm:$0xf] }
 0x1b2   : > { %v1440_v62 = vadd.f32 %v1394_v9, %v1042_v24  ;;  %v3922_v56 = vunpack.c.l.b16 %v3833_v41  ;;  %v1045_v58 = vadd.f32 %v1044_v27, %v5756_v49  ;;  %v2581_v24 = vunpack.c.l.b16 %v2495_v4  ;;  %v4898_v9 = vld [vmem:[%s5445_s24 + $0x60] sm:$0xf] }
 0x1b3   : > { %v2582_v37 = vunpack.c.l.b16 %v2498_v55  ;;  %v3269_v7 = vshll.u32 %v6301_v38, 16  ;;  %v3836_v49 = vrot.slane %v6269_v14, 5  ;;  %v3274_v47 = vshrl.u32 %v4898_v9, 16 }
 0x1b4   : > { %v3949_v50 = vpack.c.b16 %v3922_v56, %v3921_v61  ;;  %v3277_v28 = vshll.u32 %v4898_v9, 16  ;;  %v3283_v41 = vshll.u32 %v6309_v34, 16  ;;  %v3287_v4 = vshrl.u32 %v6309_v34, 16  ;;  %v5237_v56 = vld [vmem:[%s5445_s24 + $0x5c] sm:$0x1] }
 0x1b5   : > { %v2338_v33 = vpop.f32.mrf.mxu0  ;;  %v3271_v11 = vrot.slane %v3269_v7, 5  ;;  %v2504_v20 = vrot.slane %v5237_v56, 5  ;;  %v3839_v14 = vrot.slane %v6301_v38, 5  ;;  %v3838_v7 = vrot.slane %v3836_v49, 4  ;;  %v6336_v56 = vld [vmem:[%s5445_s24 + $0x68] sm:$0x1] }
 0x1b6   : > { %v1684_v43 = vpop.f32.mrf.mxu3  ;;  %4868 = vmatmul.msk.bf16.gmra.mxu2 %vm702_vm4, %v5035_v35  ;;  %v1046_v17 = vpop.f32.mrf.mxu1  ;;  %v2608_v35 = vpack.c.b16 %v2582_v37, %v2581_v24  ;;  %v3262_v24 = vsel %vm5457_vm3, %v3257_v16, %v6292_v48  ;;  %v3279_v9 = vrot.slane %v3277_v28, 5  ;;  %v6330_v38 = vrot.slane %v3283_v41, 5 }
 0x1b7   : > { %v1730_v26 = vadd.f32 %v1684_v43, %v1440_v62  ;;  %v3267_v62 = vrot.slane %v3266_v23, 4  ;;  %v3525_v48 = vunpack.c.l.b16 %v3262_v24 }
 0x1b9   : > { %v1397_v60 = vpop.f32.mrf.mxu2  ;;  %v6314_v27 = vadd.f32 %v2338_v33, %v1730_v26  ;;  %v4724_v33 = vld [vmem:[%s5445_s24 + $0x54] sm:$0xe]  ;;  %v1047_v26 = vadd.f32 %v1046_v17, %v5775_v0  ;;  %v3272_v37 = vsel %vm5457_vm3, %v3267_v62, %v3271_v11 }
 0x1ba   : > { %v1441_v25 = vadd.f32 %v1397_v60, %v1045_v58  ;;  %v4966_v58 = vrot.slane %v4950_v3, 9  ;;  %v3289_v3 = vrot.slane %v3287_v4, 4  ;;  %v4740_v0 = vrot.slane %v4724_v33, 9 }
 0x1bb   : > { %4933 = vmatmul.msk.bf16.gmra.mxu3 %vm702_vm4, %v3551_v63  ;;  %v5236_v63 = vld [vmem:[%s5445_s24 + $0x58] sm:$0xf]  ;;  %v3526_v16 = vunpack.c.l.b16 %v3272_v37 }
 0x1bc   : > { %v2501_v61 = vrot.slane %v5236_v63, 5  ;;  %v3837_v11 = vsel %vm5631_vm7, %v4966_v58, %v3836_v49  ;;  %v3293_v49 = vshll.u32 %v6336_v56, 16 }
 0x1bd   : > { %v2341_v10 = vpop.f32.mrf.mxu0  ;;  %v3552_v33 = vpack.c.b16 %v3526_v16, %v3525_v48 }
 0x1be   : > { %v1687_v55 = vpop.f32.mrf.mxu3  ;;  %v1049_v43 = vpop.f32.mrf.mxu1  ;;  %v2503_v17 = vrot.slane %v2501_v61, 4 }
 0x1bf   : > { %v1731_v23 = vadd.f32 %v1687_v55, %v1441_v25  ;;  %v3276_v25 = vrot.slane %v3274_v47, 4  ;;  %v5036_v55 = vld [vmem:[%s5445_s24 + $0x54] sm:$0xff] }
 0x1c0   : > { %4982 = vmatmul.msk.bf16.gmra.mxu0 %vm702_vm4, %v3949_v50  ;;  %v2505_v4 = vsel %vm5631_vm7, %v2503_v17, %v2504_v20  ;;  %v3295_v20 = vrot.slane %v3293_v49, 5  ;;  %v6355_v17 = vld [vmem:[%s5445_s24 + $0x70] sm:$0xf]  ;;  %v4725_v49 = vld [vmem:[%s5445_s24 + $0x60] sm:$0xe] }
 0x1c1   : > { %v1399_v60 = vpop.f32.mrf.mxu2  ;;  %4756 = vmatmul.msk.bf16.gmra.mxu1 %vm702_vm4, %v2608_v35  ;;  %v6333_v63 = vadd.f32 %v2341_v10, %v1731_v23  ;;  %v3840_v35 = vsel %vm5631_vm7, %v3838_v7, %v3839_v14  ;;  %v3280_v47 = vor.u32 %v3279_v9, %v3276_v25  ;;  %v2502_v10 = vsel %vm5631_vm7, %v4740_v0, %v2501_v61 }
 0x1c2   : > { %v1442_v50 = vadd.f32 %v1399_v60, %v1047_v26  ;;  %v3290_v23 = vor.u32 %v3289_v3, %v6330_v38  ;;  %v1050_v14 = vadd.f32 %v1049_v43, %v5796_v39  ;;  %v3923_v26 = vunpack.c.l.b16 %v3837_v11  ;;  %v4901_v3 = vld [vmem:[%s5445_s24 + $0x6c] sm:$0xf] }
 0x1c3   : > { %v3924_v24 = vunpack.c.l.b16 %v3840_v35  ;;  %v2583_v7 = vunpack.c.l.b16 %v2502_v10  ;;  %v2584_v60 = vunpack.c.l.b16 %v2505_v4  ;;  %v3281_v25 = vrot.slane %v3280_v47, 4  ;;  %v5238_v10 = vld [vmem:[%s5445_s24 + $0x64] sm:$0xf] }
 0x1c4   : > { %v3291_v9 = vrot.slane %v3290_v23, 4  ;;  %v3843_v0 = vrot.slane %v6309_v34, 5  ;;  %v2508_v4 = vrot.slane %v5238_v10, 5  ;;  %v3298_v34 = vshrl.u32 %v4901_v3, 16 }
 0x1c5   : > { %v2343_v62 = vpop.f32.mrf.mxu0  ;;  %v2609_v48 = vpack.c.b16 %v2584_v60, %v2583_v7  ;;  %v3286_v47 = vsel %vm5457_vm3, %v3281_v25, %v6330_v38  ;;  %v3846_v38 = vrot.slane %v6336_v56, 5 }
 0x1c6   : > { %v1689_v28 = vpop.f32.mrf.mxu3  ;;  %4869 = vmatmul.msk.bf16.gmra.mxu2 %vm702_vm4, %v5036_v55  ;;  %v1051_v41 = vpop.f32.mrf.mxu1  ;;  %v4951_v55 = vld [vmem:[%s5445_s24 + $0x60] sm:$0xe]  ;;  %v3527_v60 = vunpack.c.l.b16 %v3286_v47  ;;  %v6383_v47 = vld [vmem:[%s5445_s24 + $0x74] sm:$0x1] }
 0x1c7   : > { %v1732_v58 = vadd.f32 %v1689_v28, %v1442_v50  ;;  %v3950_v50 = vpack.c.b16 %v3924_v24, %v3923_v26  ;;  %v4967_v16 = vrot.slane %v4951_v55, 9  ;;  %v3296_v28 = vsel %vm5457_vm3, %v3291_v9, %v3295_v20  ;;  %v5239_v24 = vld [vmem:[%s5445_s24 + $0x68] sm:$0x1]  ;;  %v5037_v20 = vld [vmem:[%s5445_s24 + $0x60] sm:$0xff] }
 0x1c8   : > { %v3845_v26 = vrot.slane %v3843_v0, 4  ;;  %v4741_v55 = vrot.slane %v4725_v49, 9 }
 0x1c9   : > { %v1402_v37 = vpop.f32.mrf.mxu2  ;;  %v6357_v39 = vadd.f32 %v2343_v62, %v1732_v58  ;;  %v3301_v62 = vshll.u32 %v4901_v3, 16  ;;  %v3307_v58 = vshll.u32 %v6355_v17, 16  ;;  %v3844_v25 = vsel %vm5631_vm7, %v4967_v16, %v3843_v0 }
 0x1ca   : > { %v1443_v61 = vadd.f32 %v1402_v37, %v1050_v14  ;;  %v1052_v14 = vadd.f32 %v1051_v41, %v5815_v6  ;;  %v2511_v37 = vrot.slane %v5239_v24, 5  ;;  %v2510_v3 = vrot.slane %v2508_v4, 4 }
 0x1cb   : > { %4934 = vmatmul.msk.bf16.gmra.mxu3 %vm702_vm4, %v3552_v33  ;;  %v3311_v33 = vshrl.u32 %v6355_v17, 16  ;;  %v3300_v6 = vrot.slane %v3298_v34, 4  ;;  %v3303_v41 = vrot.slane %v3301_v62, 5  ;;  %v6378_v56 = vrot.slane %v3307_v58, 5 }
 0x1cc   : > { %v3847_v10 = vsel %vm5631_vm7, %v3845_v26, %v3846_v38  ;;  %v3925_v16 = vunpack.c.l.b16 %v3844_v25  ;;  %v2509_v34 = vsel %vm5631_vm7, %v4741_v55, %v2508_v4  ;;  %v3317_v26 = vshll.u32 %v6383_v47, 16  ;;  %v6395_v25 = vld [vmem:[%s5445_s24 + $0x7c] sm:$0xf]  ;;  %v4952_v55 = vld [vmem:[%s5445_s24 + $0x6c] sm:$0xe] }
 0x1cd   : > { %v2346_v43 = vpop.f32.mrf.mxu0  ;;  %v3926_v62 = vunpack.c.l.b16 %v3847_v10  ;;  %v3304_v58 = vor.u32 %v3303_v41, %v3300_v6  ;;  %v2585_v24 = vunpack.c.l.b16 %v2509_v34  ;;  %v3331_v10 = vshll.u32 %v6395_v25, 16 }
 0x1ce   : > { %v1692_v11 = vpop.f32.mrf.mxu3  ;;  %v1054_v35 = vpop.f32.mrf.mxu1 }
 0x1cf   : > { %v1733_v23 = vadd.f32 %v1692_v11, %v1443_v61  ;;  %v3528_v61 = vunpack.c.l.b16 %v3296_v28  ;;  %v3313_v11 = vrot.slane %v3311_v33, 4  ;;  %v3951_v4 = vpack.c.b16 %v3926_v62, %v3925_v16  ;;  %v4726_v16 = vld [vmem:[%s5445_s24 + $0x6c] sm:$0xe] }
 0x1d0   : > { %4983 = vmatmul.msk.bf16.gmra.mxu0 %vm702_vm4, %v3950_v50 }
 0x1d1   : > { %v1404_v7 = vpop.f32.mrf.mxu2  ;;  %4757 = vmatmul.msk.bf16.gmra.mxu1 %vm702_vm4, %v2609_v48  ;;  %v6376_v50 = vadd.f32 %v2346_v43, %v1733_v23  ;;  %v3553_v0 = vpack.c.b16 %v3528_v61, %v3527_v60  ;;  %v2512_v23 = vsel %vm5631_vm7, %v2510_v3, %v2511_v37  ;;  %v3314_v33 = vor.u32 %v3313_v11, %v6378_v56  ;;  %v4904_v60 = vld [vmem:[%s5445_s24 + $0x78] sm:$0xf] }
 0x1d2   : > { %v1444_v9 = vadd.f32 %v1404_v7, %v1052_v14  ;;  %v1055_v14 = vadd.f32 %v1054_v35, %v5834_v45  ;;  %v2586_v7 = vunpack.c.l.b16 %v2512_v23  ;;  %v3305_v37 = vrot.slane %v3304_v58, 4  ;;  %v5240_v23 = vld [vmem:[%s5445_s24 + $0x70] sm:$0xf] }
 0x1d3   : > { %v3850_v45 = vrot.slane %v6355_v17, 5  ;;  %v3322_v35 = vshrl.u32 %v4904_v60, 16  ;;  %v3325_v11 = vshll.u32 %v4904_v60, 16  ;;  %v2515_v62 = vrot.slane %v5240_v23, 5 }
 0x1d4   : > { %v2610_v41 = vpack.c.b16 %v2586_v7, %v2585_v24  ;;  %v3310_v17 = vsel %vm5457_vm3, %v3305_v37, %v6378_v56  ;;  %v4742_v7 = vrot.slane %v4726_v16, 9  ;;  %v3333_v56 = vrot.slane %v3331_v10, 5 }
 0x1d5   : > { %v2348_v48 = vpop.f32.mrf.mxu0  ;;  %v3327_v60 = vrot.slane %v3325_v11, 5 }
 0x1d6   : > { %v1694_v28 = vpop.f32.mrf.mxu3  ;;  %4870 = vmatmul.msk.bf16.gmra.mxu2 %vm702_vm4, %v5037_v20  ;;  %v1056_v43 = vpop.f32.mrf.mxu1  ;;  %v3319_v20 = vrot.slane %v3317_v26, 5  ;;  %v3852_v26 = vrot.slane %v3850_v45, 4 }
 0x1d7   : > { %v1734_v49 = vadd.f32 %v1694_v28, %v1444_v9  ;;  %v3315_v9 = vrot.slane %v3314_v33, 4  ;;  %v3335_v28 = vshrl.u32 %v6395_v25, 16  ;;  %v1057_v33 = vadd.f32 %v1056_v43, %v5857_v12 }
 0x1d8   : > { %v3529_v12 = vunpack.c.l.b16 %v3310_v17 }
 0x1d9   : > { %v1407_v38 = vpop.f32.mrf.mxu2  ;;  %v6400_v3 = vadd.f32 %v2348_v48, %v1734_v49  ;;  %v4968_v48 = vrot.slane %v4952_v55, 9  ;;  %v3853_v49 = vrot.slane %v6383_v47, 5  ;;  %v5038_v55 = vld [vmem:[%s5445_s24 + $0x6c] sm:$0xff]  ;;  %v2517_v47 = vrot.slane %v2515_v62, 4 }
 0x1da   : > { %v1445_v61 = vadd.f32 %v1407_v38, %v1055_v14  ;;  %v3320_v14 = vsel %vm5457_vm3, %v3315_v9, %v3319_v20  ;;  %v3324_v38 = vrot.slane %v3322_v35, 4  ;;  %v4906_v9 = vld [vmem:[%s5445_s24 + $0x80] sm:$0x1] }
 0x1db   : > { %4935 = vmatmul.msk.bf16.gmra.mxu3 %vm702_vm4, %v3553_v0  ;;  %v3530_v43 = vunpack.c.l.b16 %v3320_v14  ;;  %v3851_v35 = vsel %vm5631_vm7, %v4968_v48, %v3850_v45  ;;  %v3341_v17 = vshll.u32 %v4906_v9, 16 }
 0x1dc   : > { %v3328_v11 = vor.u32 %v3327_v60, %v3324_v38 }
 0x1dd   : > { %v2351_v6 = vpop.f32.mrf.mxu0  ;;  %v3554_v45 = vpack.c.b16 %v3530_v43, %v3529_v12 }
 0x1de   : > { %v1697_v0 = vpop.f32.mrf.mxu3  ;;  %v1059_v34 = vpop.f32.mrf.mxu1  ;;  %v3329_v60 = vrot.slane %v3328_v11, 4 }
 0x1df   : > { %v1735_v58 = vadd.f32 %v1697_v0, %v1445_v61  ;;  %v3337_v61 = vrot.slane %v3335_v28, 4  ;;  %v5241_v0 = vld [vmem:[%s5445_s24 + $0x74] sm:$0x1]  ;;  %v1060_v48 = vadd.f32 %v1059_v34, %v5876_v59  ;;  %v6435_v34 = vld [vmem:[%s5445_s24 + $0x88] sm:$0xf] }
 0x1e0   : > { %4984 = vmatmul.msk.bf16.gmra.mxu0 %vm702_vm4, %v3951_v4  ;;  %v2518_v4 = vrot.slane %v5241_v0, 5 }
 0x1e1   : > { %v1409_v24 = vpop.f32.mrf.mxu2  ;;  %4758 = vmatmul.msk.bf16.gmra.mxu1 %vm702_vm4, %v2610_v41  ;;  %v6417_v23 = vadd.f32 %v2351_v6, %v1735_v58  ;;  %v3854_v41 = vsel %vm5631_vm7, %v3852_v26, %v3853_v49  ;;  %v2516_v6 = vsel %vm5631_vm7, %v4742_v7, %v2515_v62  ;;  %v3338_v58 = vor.u32 %v3337_v61, %v3333_v56 }
 0x1e2   : > { %v1446_v37 = vadd.f32 %v1409_v24, %v1057_v33  ;;  %v2519_v16 = vsel %vm5631_vm7, %v2517_v47, %v2518_v4  ;;  %v3927_v49 = vunpack.c.l.b16 %v3851_v35  ;;  %v3928_v14 = vunpack.c.l.b16 %v3854_v41 }
 0x1e3   : > { %v2587_v38 = vunpack.c.l.b16 %v2516_v6  ;;  %v2588_v24 = vunpack.c.l.b16 %v2519_v16  ;;  %v3857_v62 = vrot.slane %v6395_v25, 5  ;;  %v3339_v0 = vrot.slane %v3338_v58, 4  ;;  %v4727_v16 = vld [vmem:[%s5445_s24 + $0x78] sm:$0xe]  ;;  %v5242_v58 = vld [vmem:[%s5445_s24 + $0x7c] sm:$0xf] }
 0x1e4   : > { %v3343_v61 = vrot.slane %v3341_v17, 5  ;;  %v3952_v47 = vpack.c.b16 %v3928_v14, %v3927_v49  ;;  %v3334_v35 = vsel %vm5457_vm3, %v3329_v60, %v3333_v56  ;;  %v3860_v41 = vrot.slane %v4906_v9, 5 }
 0x1e5   : > { %v2353_v20 = vpop.f32.mrf.mxu0  ;;  %v2611_v43 = vpack.c.b16 %v2588_v24, %v2587_v38  ;;  %v3859_v25 = vrot.slane %v3857_v62, 4  ;;  %v2522_v17 = vrot.slane %v5242_v58, 5  ;;  %v3359_v49 = vshrl.u32 %v6435_v34, 16 }
 0x1e6   : > { %v1699_v10 = vpop.f32.mrf.mxu3  ;;  %4871 = vmatmul.msk.bf16.gmra.mxu2 %vm702_vm4, %v5038_v55  ;;  %v1061_v28 = vpop.f32.mrf.mxu1  ;;  %v4953_v55 = vld [vmem:[%s5445_s24 + $0x78] sm:$0xe]  ;;  %v3344_v6 = vsel %vm5457_vm3, %v3339_v0, %v3343_v61  ;;  %v3531_v9 = vunpack.c.l.b16 %v3334_v35  ;;  %v4743_v60 = vrot.slane %v4727_v16, 9  ;;  %v5243_v61 = vld [vmem:[%s5445_s24 + $0x80] sm:$0x1] }
 0x1e7   : > { %v1736_v33 = vadd.f32 %v1699_v10, %v1446_v37  ;;  %v4907_v37 = vld [vmem:[%s5445_s24 + $0x84] sm:$0xf]  ;;  %v4969_v59 = vrot.slane %v4953_v55, 9  ;;  %v1062_v56 = vadd.f32 %v1061_v28, %v5893_v32  ;;  %v3861_v24 = vsel %vm5631_vm7, %v3859_v25, %v3860_v41 }
 0x1e8   : > { %v2524_v0 = vrot.slane %v2522_v17, 4  ;;  %v3930_v25 = vunpack.c.l.b16 %v3861_v24 }
 0x1e9   : > { %v1412_v26 = vpop.f32.mrf.mxu2  ;;  %v6437_v4 = vadd.f32 %v2353_v20, %v1736_v33  ;;  %v3349_v20 = vshll.u32 %v4907_v37, 16  ;;  %v3355_v33 = vshll.u32 %v6435_v34, 16  ;;  %v3858_v38 = vsel %vm5631_vm7, %v4969_v59, %v3857_v62 }
 0x1ea   : > { %v1447_v7 = vadd.f32 %v1412_v26, %v1060_v48  ;;  %v3532_v26 = vunpack.c.l.b16 %v3344_v6  ;;  %v3929_v58 = vunpack.c.l.b16 %v3858_v38  ;;  %v4954_v38 = vld [vmem:[%s5445_s24 + $0x84] sm:$0xe] }
 0x1eb   : > { %4936 = vmatmul.msk.bf16.gmra.mxu3 %vm702_vm4, %v3554_v45  ;;  %v3346_v45 = vshrl.u32 %v4907_v37, 16  ;;  %v2525_v37 = vrot.slane %v5243_v61, 5  ;;  %v3351_v28 = vrot.slane %v3349_v20, 5  ;;  %v6458_v35 = vrot.slane %v3355_v33, 5  ;;  %v6472_v61 = vld [vmem:[%s5445_s24 + $0x94] sm:$0xf] }
 0x1ec   : > { %v3555_v59 = vpack.c.b16 %v3532_v26, %v3531_v9  ;;  %v3953_v24 = vpack.c.b16 %v3930_v25, %v3929_v58 }
 0x1ed   : > { %v2356_v12 = vpop.f32.mrf.mxu0  ;;  %v3348_v32 = vrot.slane %v3346_v45, 4  ;;  %v2526_v16 = vsel %vm5631_vm7, %v2524_v0, %v2525_v37  ;;  %v4970_v37 = vrot.slane %v4954_v38, 9 }
 0x1ee   : > { %v1702_v11 = vpop.f32.mrf.mxu3  ;;  %v2679_v10 = vpop.f32.mrf.mxu1  ;;  %v2590_v26 = vunpack.c.l.b16 %v2526_v16 }
 0x1ef   : > { %v1737_v48 = vadd.f32 %v1702_v11, %v1447_v7  ;;  %v5039_v7 = vld [vmem:[%s5445_s24 + $0x78] sm:$0xff]  ;;  %v4909_v11 = vld [vmem:[%s5445_s24 + $0x8c] sm:$0x1] }
 0x1f0   : > { %4985 = vmatmul.msk.bf16.gmra.mxu0 %vm702_vm4, %v3952_v47  ;;  %v3365_v33 = vshll.u32 %v4909_v11, 16 }
 0x1f1   : > { %v1414_v14 = vpop.f32.mrf.mxu2  ;;  %4759 = vmatmul.msk.bf16.gmra.mxu1 %vm702_vm4, %v2611_v43  ;;  %v6456_v47 = vadd.f32 %v2356_v12, %v1737_v48  ;;  %v3361_v43 = vrot.slane %v3359_v49, 4  ;;  %v2523_v12 = vsel %vm5631_vm7, %v4743_v60, %v2522_v17  ;;  %v3352_v48 = vor.u32 %v3351_v28, %v3348_v32 }
 0x1f2   : > { %v1448_v55 = vadd.f32 %v1414_v14, %v1062_v56  ;;  %v3864_v49 = vrot.slane %v6435_v34, 5  ;;  %v2759_v56 = vadd.f32 %v2679_v10, %v5910_v46  ;;  %v2589_v14 = vunpack.c.l.b16 %v2523_v12 }
 0x1f3   : > { %v3362_v20 = vor.u32 %v3361_v43, %v6458_v35  ;;  %v3353_v60 = vrot.slane %v3352_v48, 4  ;;  %v3367_v0 = vrot.slane %v3365_v33, 5  ;;  %v3867_v32 = vrot.slane %v4909_v11, 5  ;;  %v4728_v33 = vld [vmem:[%s5445_s24 + $0x84] sm:$0xe] }
 0x1f4   : > { %v3866_v34 = vrot.slane %v3864_v49, 4  ;;  %v2612_v28 = vpack.c.b16 %v2590_v26, %v2589_v14  ;;  %v3383_v48 = vshrl.u32 %v6472_v61, 16 }
 0x1f5   : > { %v2358_v6 = vpop.f32.mrf.mxu0  ;;  %v3358_v11 = vsel %vm5457_vm3, %v3353_v60, %v6458_v35  ;;  %v5040_v35 = vld [vmem:[%s5445_s24 + $0x84] sm:$0xff]  ;;  %v5245_v60 = vld [vmem:[%s5445_s24 + $0x8c] sm:$0x1] }
 0x1f6   : > { %v1704_v62 = vpop.f32.mrf.mxu3  ;;  %4872 = vmatmul.msk.bf16.gmra.mxu2 %vm702_vm4, %v5039_v7  ;;  %v2681_v41 = vpop.f32.mrf.mxu1  ;;  %v4910_v7 = vld [vmem:[%s5445_s24 + $0x90] sm:$0xf] }
 0x1f7   : > { %v1738_v45 = vadd.f32 %v1704_v62, %v1448_v55  ;;  %v3363_v55 = vrot.slane %v3362_v20, 4  ;;  %v3370_v43 = vshrl.u32 %v4910_v7, 16  ;;  %v3373_v58 = vshll.u32 %v4910_v7, 16 }
 0x1f8   : > { %v3379_v62 = vshll.u32 %v6472_v61, 16  ;;  %v4744_v7 = vrot.slane %v4728_v33, 9 }
 0x1f9   : > { %v2969_v9 = vpop.f32.mrf.mxu2  ;;  %v6475_v46 = vadd.f32 %v2358_v6, %v1738_v45  ;;  %v3368_v6 = vsel %vm5457_vm3, %v3363_v55, %v3367_v0  ;;  %v3865_v45 = vsel %vm5631_vm7, %v4970_v37, %v3864_v49  ;;  %v3372_v26 = vrot.slane %v3370_v43, 4  ;;  %v6500_v37 = vld [vmem:[%s6878_s2] ss:$0 sm:$0xff] }
 0x1fa   : > { %v3049_v17 = vadd.f32 %v2969_v9, %v2759_v56  ;;  %v3868_v56 = vsel %vm5631_vm7, %v3866_v34, %v3867_v32  ;;  %v2760_v9 = vadd.f32 %v2681_v41, %v5923_v42  ;;  %v3375_v38 = vrot.slane %v3373_v58, 5  ;;  %v4912_v32 = vld [vmem:[%s5445_s24 + $0x98] sm:$0x1] }
 0x1fb   : > { %4937 = vmatmul.msk.bf16.gmra.mxu3 %vm702_vm4, %v3555_v59  ;;  %v5244_v59 = vld [vmem:[%s5445_s24 + $0x88] sm:$0xf]  ;;  %v2532_v55 = vrot.slane %v5245_v60, 5  ;;  %v3385_v0 = vrot.slane %v3383_v48, 4  ;;  %v3533_v41 = vunpack.c.l.b16 %v3358_v11  ;;  %v3534_v34 = vunpack.c.l.b16 %v3368_v6  ;;  %v6513_v11 = vld [vmem:[%s6879_s3] ss:$0 sm:$0xff] }
 0x1fc   : > { %v2529_v16 = vrot.slane %v5244_v59, 5  ;;  %v3931_v43 = vunpack.c.l.b16 %v3865_v45  ;;  %v3932_v58 = vunpack.c.l.b16 %v3868_v56  ;;  %v3376_v48 = vor.u32 %v3375_v38, %v3372_v26 }
 0x1fd   : > { %v4021_v10 = vpop.f32.mrf.mxu0  ;;  %v3556_v45 = vpack.c.b16 %v3534_v34, %v3533_v41  ;;  %v3389_v56 = vshll.u32 %v4912_v32, 16 }
 0x1fe   : > { %v3623_v25 = vpop.f32.mrf.mxu3  ;;  %v2684_v12 = vpop.f32.mrf.mxu1  ;;  %v3954_v60 = vpack.c.b16 %v3932_v58, %v3931_v43 }
 0x1ff   : > { %v3703_v20 = vadd.f32 %v3623_v25, %v3049_v17  ;;  %v2531_v17 = vrot.slane %v2529_v16, 4 }
 0x200   : > { %4986 = vmatmul.msk.bf16.gmra.mxu0 %vm702_vm4, %v3953_v24  ;;  %v6493_v24 = vrot.slane %v3379_v62, 5 }
 0x201   : > { %v2971_v14 = vpop.f32.mrf.mxu2  ;;  %4760 = vmatmul.msk.bf16.gmra.mxu1 %vm702_vm4, %v2612_v28  ;;  %v4101_v49 = vadd.f32 %v4021_v10, %v3703_v20  ;;  %v2530_v10 = vsel %vm5631_vm7, %v4744_v7, %v2529_v16  ;;  %v2533_v59 = vsel %vm5631_vm7, %v2531_v17, %v2532_v55  ;;  %v3871_v16 = vrot.slane %v6472_v61, 5  ;;  %v4955_v7 = vld [vmem:[%s5445_s24 + $0x90] sm:$0xe]  ;;  %v4913_v17 = vld [vmem:[%s5445_s24 + $0x9c] sm:$0xf] }
 0x202   : > { %v3050_v42 = vadd.f32 %v2971_v14, %v2760_v9  ;;  %v3386_v20 = vor.u32 %v3385_v0, %v6493_v24  ;;  %v2761_v14 = vadd.f32 %v2684_v12, %v5936_v15  ;;  %v2591_v26 = vunpack.c.l.b16 %v2530_v10 }
 0x203   : > { %v4137_v33 = vmul.f32 %v6500_v37, %v4101_v49  ;;  %v2592_v38 = vunpack.c.l.b16 %v2533_v59  ;;  %v3377_v55 = vrot.slane %v3376_v48, 4  ;;  %v6521_v49 = vld [vmem:[%s5445_s24 + $0xa0] sm:$0xf]  ;;  %v3391_v61 = vrot.slane %v3389_v56, 5 }
 0x204   : > { %v3387_v0 = vrot.slane %v3386_v20, 4  ;;  %v4971_v12 = vrot.slane %v4955_v7, 9  ;;  %v3873_v34 = vrot.slane %v3871_v16, 4  ;;  %v3397_v59 = vshll.u32 %v4913_v17, 16  ;;  %v4729_v7 = vld [vmem:[%s5445_s24 + $0x90] sm:$0xe] }
 0x205   : > { %v4023_v28 = vpop.f32.mrf.mxu0  ;;  %v2613_v10 = vpack.c.b16 %v2592_v38, %v2591_v26  ;;  %v3403_v48 = vshll.u32 %v6521_v49, 16  ;;  %v3407_v56 = vshrl.u32 %v6521_v49, 16 }
 0x206   : > { %v3625_v62 = vpop.f32.mrf.mxu3  ;;  %4873 = vmatmul.msk.bf16.gmra.mxu2 %vm702_vm4, %v5040_v35  ;;  %v2686_v25 = vpop.f32.mrf.mxu1  ;;  %v3392_v26 = vsel %vm5457_vm3, %v3387_v0, %v3391_v61  ;;  %v3872_v38 = vsel %vm5631_vm7, %v4971_v12, %v3871_v16  ;;  %v4745_v0 = vrot.slane %v4729_v7, 9 }
 0x207   : > { %v3704_v6 = vadd.f32 %v3625_v62, %v3050_v42  ;;  %v4173_v42 = vadd.f32 %v6513_v11, %v4137_v33  ;;  %v3394_v62 = vshrl.u32 %v4913_v17, 16  ;;  %v3409_v16 = vrot.slane %v3407_v56, 4 }
 0x209   : > { %v4102_v9 = vadd.f32 %v4023_v28, %v3704_v6  ;;  %v2974_v35 = vpop.f32.mrf.mxu2  ;;  %v3874_v28 = vrot.slane %v4912_v32, 5  ;;  %v5246_v6 = vld [vmem:[%s5445_s24 + $0x94] sm:$0xf] }
 0x20a   : > { %v3051_v15 = vadd.f32 %v2974_v35, %v2761_v14  ;;  %v3382_v35 = vsel %vm5457_vm3, %v3377_v55, %v6493_v24  ;;  %v3399_v24 = vrot.slane %v3397_v59, 5  ;;  %v5041_v55 = vld [vmem:[%s5445_s24 + $0x90] sm:$0xff] }
 0x20b   : > { %v4138_v41 = vmul.f32 %v6500_v37, %v4102_v9  ;;  %4938 = vmatmul.msk.bf16.gmra.mxu3 %vm702_vm4, %v3556_v45  ;;  %v2536_v45 = vrot.slane %v5246_v6, 5  ;;  %v4205_v9 = vmax.f32 %v4173_v42, 0.0  ;;  %v3875_v17 = vsel %vm5631_vm7, %v3873_v34, %v3874_v28  ;;  %v6556_v28 = vld [vmem:[%s5445_s24 + $0xa4] sm:$0x1] }
 0x20c   : > { %v3396_v42 = vrot.slane %v3394_v62, 4  ;;  %v3934_v59 = vunpack.c.l.b16 %v3875_v17 }
 0x20d   : > { %v4174_v43 = vadd.f32 %v6513_v11, %v4138_v41  ;;  %v4026_v58 = vpop.f32.mrf.mxu0  ;;  %v2538_v61 = vrot.slane %v2536_v45, 4  ;;  %v2537_v56 = vsel %vm5631_vm7, %v4745_v0, %v2536_v45  ;;  %v4916_v45 = vld [vmem:[%s5445_s24 + $0xa8] sm:$0xf]  ;;  %v6569_v0 = vld [vmem:[%s5445_s24 + $0xac] sm:$0xf] }
 0x20e   : > { %v3628_v20 = vpop.f32.mrf.mxu3  ;;  %v2689_v33 = vpop.f32.mrf.mxu1 }
 0x20f   : > { %v4206_v32 = vmax.f32 %v4174_v43, 0.0  ;;  %v3705_v14 = vadd.f32 %v3628_v20, %v3051_v15  ;;  %v2762_v15 = vadd.f32 %v2686_v25, %v5949_v13  ;;  %v5247_v20 = vld [vmem:[%s5445_s24 + $0x98] sm:$0x1]  ;;  %v3535_v13 = vunpack.c.l.b16 %v3382_v35 }
 0x210   : > { %4987 = vmatmul.msk.bf16.gmra.mxu0 %vm702_vm4, %v3954_v60  ;;  %v6547_v60 = vrot.slane %v3403_v48, 5  ;;  %v2539_v6 = vrot.slane %v5247_v20, 5  ;;  %v3536_v25 = vunpack.c.l.b16 %v3392_v26 }
 0x211   : > { %v5051_v41 = vpack.c.bf16 %v4206_v32, %v4205_v9  ;;  %v2976_v43 = vpop.f32.mrf.mxu2  ;;  %4761 = vmatmul.msk.bf16.gmra.mxu1 %vm702_vm4, %v2613_v10  ;;  %v4103_v12 = vadd.f32 %v4026_v58, %v3705_v14  ;;  %v3933_v10 = vunpack.c.l.b16 %v3872_v38  ;;  %v3400_v32 = vor.u32 %v3399_v24, %v3396_v42 }
 0x212   : > { %v3052_v34 = vadd.f32 %v2976_v43, %v2762_v15  ;;  %v2540_v58 = vsel %vm5631_vm7, %v2538_v61, %v2539_v6  ;;  %v3410_v14 = vor.u32 %v3409_v16, %v6547_v60  ;;  %v3557_v26 = vpack.c.b16 %v3536_v25, %v3535_v13 }
 0x213   : > { %5052 = vst [vmem:[%s6552_s22] sm:$0xff] %v5051_v41   ;;  %v4139_v35 = vmul.f32 %v6500_v37, %v4103_v12  ;;  %v3413_v38 = vshll.u32 %v6556_v28, 16  ;;  %v2763_v41 = vadd.f32 %v2689_v33, %v5962_v57  ;;  %v2593_v43 = vunpack.c.l.b16 %v2537_v56 }
 0x214   : > { %v3955_v61 = vpack.c.b16 %v3934_v59, %v3933_v10  ;;  %v3401_v42 = vrot.slane %v3400_v32, 4  ;;  %v3411_v24 = vrot.slane %v3410_v14, 4  ;;  %v3418_v57 = vshrl.u32 %v4916_v45, 16 }
 0x215   : > { %v4028_v62 = vpop.f32.mrf.mxu0  ;;  %v4175_v20 = vadd.f32 %v6513_v11, %v4139_v35  ;;  %v3415_v12 = vrot.slane %v3413_v38, 5  ;;  %v3421_v33 = vshll.u32 %v4916_v45, 16  ;;  %v3427_v13 = vshll.u32 %v6569_v0, 16  ;;  %v5248_v35 = vld [vmem:[%s5445_s24 + $0xa0] sm:$0xf] }
 0x216   : > { %v3630_v48 = vpop.f32.mrf.mxu3  ;;  %4874 = vmatmul.msk.bf16.gmra.mxu2 %vm702_vm4, %v5041_v55  ;;  %v2691_v9 = vpop.f32.mrf.mxu1  ;;  %v2594_v55 = vunpack.c.l.b16 %v2540_v58  ;;  %v3431_v25 = vshrl.u32 %v6569_v0, 16  ;;  %v3406_v32 = vsel %vm5457_vm3, %v3401_v42, %v6547_v60 }
 0x217   : > { %v3706_v7 = vadd.f32 %v3630_v48, %v3052_v34  ;;  %v4956_v34 = vld [vmem:[%s5445_s24 + $0x9c] sm:$0xe]  ;;  %v3878_v48 = vrot.slane %v6521_v49, 5  ;;  %v3420_v49 = vrot.slane %v3418_v57, 4  ;;  %v2764_v42 = vadd.f32 %v2691_v9, %v5975_v54  ;;  %v5249_v57 = vld [vmem:[%s5445_s24 + $0xa4] sm:$0x1] }
 0x218   : > { %v2614_v59 = vpack.c.b16 %v2594_v55, %v2593_v43  ;;  %v4972_v14 = vrot.slane %v4956_v34, 9  ;;  %v3423_v43 = vrot.slane %v3421_v33, 5  ;;  %v6587_v55 = vrot.slane %v3427_v13, 5 }
 0x219   : > { %v4104_v17 = vadd.f32 %v4028_v62, %v3706_v7  ;;  %v2979_v15 = vpop.f32.mrf.mxu2  ;;  %v2543_v7 = vrot.slane %v5248_v35, 5  ;;  %v3433_v60 = vrot.slane %v3431_v25, 4  ;;  %v3537_v25 = vunpack.c.l.b16 %v3406_v32 }
 0x21a   : > { %v3053_v16 = vadd.f32 %v2979_v15, %v2763_v41  ;;  %v3416_v41 = vsel %vm5457_vm3, %v3411_v24, %v3415_v12  ;;  %v4730_v15 = vld [vmem:[%s5445_s24 + $0x9c] sm:$0xe]  ;;  %v6593_v24 = vld [vmem:[%s5445_s24 + $0xb0] sm:$0x1]  ;;  %v3879_v54 = vsel %vm5631_vm7, %v4972_v14, %v3878_v48  ;;  %v3424_v9 = vor.u32 %v3423_v43, %v3420_v49 }
 0x21b   : > { %v4140_v6 = vmul.f32 %v6500_v37, %v4104_v17  ;;  %4939 = vmatmul.msk.bf16.gmra.mxu3 %vm702_vm4, %v3557_v26  ;;  %v4207_v26 = vmax.f32 %v4175_v20, 0.0  ;;  %v5042_v12 = vld [vmem:[%s5445_s24 + $0x9c] sm:$0xff]  ;;  %v4746_v34 = vrot.slane %v4730_v15, 9 }
 0x21c   : > { %v3425_v43 = vrot.slane %v3424_v9, 4  ;;  %v6624_v9 = vld [vmem:[%s5445_s24 + $0xb8] sm:$0xf] }
 0x21d   : > { %v4176_v62 = vadd.f32 %v6513_v11, %v4140_v6  ;;  %v4031_v10 = vpop.f32.mrf.mxu0  ;;  %v3880_v6 = vrot.slane %v3878_v48, 4 }
 0x21e   : > { %v3633_v56 = vpop.f32.mrf.mxu3  ;;  %v2694_v58 = vpop.f32.mrf.mxu1 }
 0x21f   : > { %v4208_v38 = vmax.f32 %v4176_v62, 0.0  ;;  %v3707_v17 = vadd.f32 %v3633_v56, %v3053_v16  ;;  %v3881_v16 = vrot.slane %v6556_v28, 5  ;;  %v2546_v62 = vrot.slane %v5249_v57, 5 }
 0x220   : > { %4988 = vmatmul.msk.bf16.gmra.mxu0 %vm702_vm4, %v3955_v61  ;;  %v2545_v61 = vrot.slane %v2543_v7, 4  ;;  %v3538_v56 = vunpack.c.l.b16 %v3416_v41  ;;  %v3437_v28 = vshll.u32 %v6593_v24, 16  ;;  %v3935_v41 = vunpack.c.l.b16 %v3879_v54 }
 0x221   : > { %v5056_v45 = vpack.c.bf16 %v4208_v38, %v4207_v26  ;;  %v2981_v20 = vpop.f32.mrf.mxu2  ;;  %4762 = vmatmul.msk.bf16.gmra.mxu1 %vm702_vm4, %v2614_v59  ;;  %v4105_v33 = vadd.f32 %v4031_v10, %v3707_v17  ;;  %v3434_v59 = vor.u32 %v3433_v60, %v6587_v55  ;;  %v3882_v26 = vsel %vm5631_vm7, %v3880_v6, %v3881_v16 }
 0x222   : > { %v3054_v13 = vadd.f32 %v2981_v20, %v2764_v42  ;;  %v2544_v10 = vsel %vm5631_vm7, %v4746_v34, %v2543_v7  ;;  %v2547_v48 = vsel %vm5631_vm7, %v2545_v61, %v2546_v62  ;;  %v3558_v17 = vpack.c.b16 %v3538_v56, %v3537_v25 }
 0x223   : > { %5128 = vst [vmem:[%s6552_s22 + $0x8] sm:$0xff] %v5056_v45   ;;  %v4141_v32 = vmul.f32 %v6500_v37, %v4105_v33  ;;  %v3936_v49 = vunpack.c.l.b16 %v3882_v26  ;;  %v3435_v60 = vrot.slane %v3434_v59, 4  ;;  %v3439_v45 = vrot.slane %v3437_v28, 5  ;;  %v4919_v33 = vld [vmem:[%s5445_s24 + $0xb4] sm:$0xf] }
 0x224   : > { %v2765_v20 = vadd.f32 %v2694_v58, %v5987_v31  ;;  %v2595_v16 = vunpack.c.l.b16 %v2544_v10  ;;  %v2596_v7 = vunpack.c.l.b16 %v2547_v48  ;;  %v3885_v34 = vrot.slane %v6569_v0, 5 }
 0x225   : > { %v4033_v35 = vpop.f32.mrf.mxu0  ;;  %v4177_v61 = vadd.f32 %v6513_v11, %v4141_v32  ;;  %v3430_v0 = vsel %vm5457_vm3, %v3425_v43, %v6587_v55  ;;  %v3440_v54 = vsel %vm5457_vm3, %v3435_v60, %v3439_v45  ;;  %v3888_v26 = vrot.slane %v6593_v24, 5 }
 0x226   : > { %v3635_v38 = vpop.f32.mrf.mxu3  ;;  %4875 = vmatmul.msk.bf16.gmra.mxu2 %vm702_vm4, %v5042_v12  ;;  %v2696_v15 = vpop.f32.mrf.mxu1  ;;  %v4957_v12 = vld [vmem:[%s5445_s24 + $0xa8] sm:$0xe]  ;;  %v2615_v56 = vpack.c.b16 %v2596_v7, %v2595_v16  ;;  %v3442_v48 = vshrl.u32 %v4919_v33, 16  ;;  %v3445_v55 = vshll.u32 %v4919_v33, 16  ;;  %v3451_v43 = vshll.u32 %v6624_v9, 16 }
 0x227   : > { %v3708_v14 = vadd.f32 %v3635_v38, %v3054_v13  ;;  %v3956_v13 = vpack.c.b16 %v3936_v49, %v3935_v41  ;;  %v4973_v25 = vrot.slane %v4957_v12, 9  ;;  %v5250_v38 = vld [vmem:[%s5445_s24 + $0xac] sm:$0xf]  ;;  %v4209_v32 = vmax.f32 %v4177_v61, 0.0  ;;  %v4731_v41 = vld [vmem:[%s5445_s24 + $0xa8] sm:$0xe] }
 0x228   : > { %v2550_v10 = vrot.slane %v5250_v38, 5  ;;  %v3539_v49 = vunpack.c.l.b16 %v3430_v0  ;;  %v3455_v60 = vshrl.u32 %v6624_v9, 16  ;;  %v2766_v24 = vadd.f32 %v2696_v15, %v6000_v44  ;;  %v5043_v16 = vld [vmem:[%s5445_s24 + $0xa8] sm:$0xff] }
 0x229   : > { %v4106_v42 = vadd.f32 %v4033_v35, %v3708_v14  ;;  %v2984_v6 = vpop.f32.mrf.mxu2  ;;  %v3887_v35 = vrot.slane %v3885_v34, 4  ;;  %v4747_v12 = vrot.slane %v4731_v41, 9  ;;  %v3444_v44 = vrot.slane %v3442_v48, 4 }
 0x22a   : > { %v3055_v62 = vadd.f32 %v2984_v6, %v2765_v20  ;;  %v3540_v20 = vunpack.c.l.b16 %v3440_v54  ;;  %v3886_v6 = vsel %vm5631_vm7, %v4973_v25, %v3885_v34  ;;  %v2552_v61 = vrot.slane %v2550_v10, 4  ;;  %v6644_v54 = vld [vmem:[%s5445_s24 + $0xbc] sm:$0x1] }
 0x22b   : > { %v4142_v57 = vmul.f32 %v6500_v37, %v4106_v42  ;;  %4940 = vmatmul.msk.bf16.gmra.mxu3 %vm702_vm4, %v3558_v17  ;;  %v3889_v7 = vsel %vm5631_vm7, %v3887_v35, %v3888_v26  ;;  %v3447_v15 = vrot.slane %v3445_v55, 5  ;;  %v3937_v25 = vunpack.c.l.b16 %v3886_v6  ;;  %v6657_v6 = vld [vmem:[%s5445_s24 + $0xc4] sm:$0xf] }
 0x22c   : > { %v3461_v41 = vshll.u32 %v6644_v54, 16 }
 0x22d   : > { %v4178_v31 = vadd.f32 %v6513_v11, %v4142_v57  ;;  %v4036_v58 = vpop.f32.mrf.mxu0  ;;  %v5251_v57 = vld [vmem:[%s5445_s24 + $0xb0] sm:$0x1] }
 0x22e   : > { %v3638_v59 = vpop.f32.mrf.mxu3  ;;  %v2699_v28 = vpop.f32.mrf.mxu1 }
 0x22f   : > { %v4210_v14 = vmax.f32 %v4178_v31, 0.0  ;;  %v3709_v17 = vadd.f32 %v3638_v59, %v3055_v62  ;;  %v2553_v62 = vrot.slane %v5251_v57, 5  ;;  %v6641_v31 = vrot.slane %v3451_v43, 5 }
 0x230   : > { %4989 = vmatmul.msk.bf16.gmra.mxu0 %vm702_vm4, %v3956_v13  ;;  %v3938_v59 = vunpack.c.l.b16 %v3889_v7  ;;  %v2767_v43 = vadd.f32 %v2699_v28, %v6014_v30  ;;  %v3463_v57 = vrot.slane %v3461_v41, 5  ;;  %v3892_v30 = vrot.slane %v6624_v9, 5 }
 0x231   : > { %v5061_v45 = vpack.c.bf16 %v4210_v14, %v4209_v32  ;;  %v2986_v42 = vpop.f32.mrf.mxu2  ;;  %4763 = vmatmul.msk.bf16.gmra.mxu1 %vm702_vm4, %v2615_v56  ;;  %v4107_v33 = vadd.f32 %v4036_v58, %v3709_v17  ;;  %v3457_v56 = vrot.slane %v3455_v60, 4  ;;  %v2551_v58 = vsel %vm5631_vm7, %v4747_v12, %v2550_v10  ;;  %v4922_v10 = vld [vmem:[%s5445_s24 + $0xc0] sm:$0xf]  ;;  %v4958_v12 = vld [vmem:[%s5445_s24 + $0xb4] sm:$0xe] }
 0x232   : > { %v3056_v13 = vadd.f32 %v2986_v42, %v2766_v24  ;;  %v2554_v26 = vsel %vm5631_vm7, %v2552_v61, %v2553_v62  ;;  %v3559_v32 = vpack.c.b16 %v3540_v20, %v3539_v49  ;;  %v3448_v14 = vor.u32 %v3447_v15, %v3444_v44 }
 0x233   : > { %5129 = vst [vmem:[%s6552_s22 + $0x10] sm:$0xff] %v5061_v45   ;;  %v4143_v38 = vmul.f32 %v6500_v37, %v4107_v33  ;;  %v3458_v17 = vor.u32 %v3457_v56, %v6641_v31  ;;  %v2597_v45 = vunpack.c.l.b16 %v2551_v58  ;;  %v2598_v24 = vunpack.c.l.b16 %v2554_v26 }
 0x234   : > { %v3957_v42 = vpack.c.b16 %v3938_v59, %v3937_v25  ;;  %v3449_v7 = vrot.slane %v3448_v14, 4  ;;  %v3466_v28 = vshrl.u32 %v4922_v10, 16  ;;  %v3469_v44 = vshll.u32 %v4922_v10, 16  ;;  %v5252_v25 = vld [vmem:[%s5445_s24 + $0xb8] sm:$0xf] }
 0x235   : > { %v4038_v0 = vpop.f32.mrf.mxu0  ;;  %v3459_v61 = vrot.slane %v3458_v17, 4  ;;  %v3475_v15 = vshll.u32 %v6657_v6, 16  ;;  %v2557_v59 = vrot.slane %v5252_v25, 5  ;;  %v3479_v58 = vshrl.u32 %v6657_v6, 16  ;;  %v5044_v10 = vld [vmem:[%s5445_s24 + $0xb4] sm:$0xff] }
 0x236   : > { %v3640_v34 = vpop.f32.mrf.mxu3  ;;  %4876 = vmatmul.msk.bf16.gmra.mxu2 %vm702_vm4, %v5043_v16  ;;  %v2701_v35 = vpop.f32.mrf.mxu1  ;;  %v4179_v16 = vadd.f32 %v6513_v11, %v4143_v38  ;;  %v3894_v17 = vrot.slane %v3892_v30, 4  ;;  %v3895_v41 = vrot.slane %v6644_v54, 5 }
 0x237   : > { %v3710_v48 = vadd.f32 %v3640_v34, %v3056_v13  ;;  %v2616_v13 = vpack.c.b16 %v2598_v24, %v2597_v45  ;;  %v4974_v34 = vrot.slane %v4958_v12, 9  ;;  %v3464_v14 = vsel %vm5457_vm3, %v3459_v61, %v3463_v57 }
 0x238   : > { %v4211_v26 = vmax.f32 %v4179_v16, 0.0  ;;  %v6678_v24 = vrot.slane %v3475_v15, 5  ;;  %v2559_v16 = vrot.slane %v2557_v59, 4  ;;  %v3542_v57 = vunpack.c.l.b16 %v3464_v14 }
 0x239   : > { %v4108_v55 = vadd.f32 %v4038_v0, %v3710_v48  ;;  %v2989_v60 = vpop.f32.mrf.mxu2  ;;  %v3454_v48 = vsel %vm5457_vm3, %v3449_v7, %v6641_v31  ;;  %v3471_v31 = vrot.slane %v3469_v44, 5  ;;  %v3481_v7 = vrot.slane %v3479_v58, 4 }
 0x23a   : > { %v3057_v20 = vadd.f32 %v2989_v60, %v2767_v43  ;;  %v2768_v60 = vadd.f32 %v2701_v35, %v6027_v51  ;;  %v3541_v61 = vunpack.c.l.b16 %v3454_v48  ;;  %v3893_v35 = vsel %vm5631_vm7, %v4974_v34, %v3892_v30 }
 0x23b   : > { %v4144_v49 = vmul.f32 %v6500_v37, %v4108_v55  ;;  %4941 = vmatmul.msk.bf16.gmra.mxu3 %vm702_vm4, %v3559_v32  ;;  %v4732_v32 = vld [vmem:[%s5445_s24 + $0xb4] sm:$0xe]  ;;  %v3468_v55 = vrot.slane %v3466_v28, 4  ;;  %v6684_v28 = vld [vmem:[%s5445_s24 + $0xc8] sm:$0x1]  ;;  %v3482_v25 = vor.u32 %v3481_v7, %v6678_v24 }
 0x23c   : > { %v3560_v30 = vpack.c.b16 %v3542_v57, %v3541_v61  ;;  %v3485_v34 = vshll.u32 %v6684_v28, 16  ;;  %v6707_v7 = vld [vmem:[%s5445_s24 + $0xd0] sm:$0xf] }
 0x23d   : > { %v4180_v62 = vadd.f32 %v6513_v11, %v4144_v49  ;;  %v4041_v33 = vpop.f32.mrf.mxu0  ;;  %v5253_v49 = vld [vmem:[%s5445_s24 + $0xbc] sm:$0x1] }
 0x23e   : > { %v3643_v56 = vpop.f32.mrf.mxu3  ;;  %v2704_v0 = vpop.f32.mrf.mxu1 }
 0x23f   : > { %v4212_v38 = vmax.f32 %v4180_v62, 0.0  ;;  %v3711_v9 = vadd.f32 %v3643_v56, %v3057_v20  ;;  %v2560_v20 = vrot.slane %v5253_v49, 5  ;;  %v3896_v62 = vsel %vm5631_vm7, %v3894_v17, %v3895_v41 }
 0x240   : > { %4990 = vmatmul.msk.bf16.gmra.mxu0 %vm702_vm4, %v3957_v42  ;;  %v4748_v42 = vrot.slane %v4732_v32, 9  ;;  %v3472_v56 = vor.u32 %v3471_v31, %v3468_v55  ;;  %v2769_v32 = vadd.f32 %v2704_v0, %v6043_v1  ;;  %v3483_v55 = vrot.slane %v3482_v25, 4 }
 0x241   : > { %v5066_v43 = vpack.c.bf16 %v4212_v38, %v4211_v26  ;;  %v2991_v45 = vpop.f32.mrf.mxu2  ;;  %4764 = vmatmul.msk.bf16.gmra.mxu1 %vm702_vm4, %v2616_v13  ;;  %v4109_v12 = vadd.f32 %v4041_v33, %v3711_v9  ;;  %v2561_v33 = vsel %vm5631_vm7, %v2559_v16, %v2560_v20  ;;  %v3939_v38 = vunpack.c.l.b16 %v3893_v35  ;;  %v4925_v20 = vld [vmem:[%s5445_s24 + $0xcc] sm:$0xf] }
 0x242   : > { %v3058_v54 = vadd.f32 %v2991_v45, %v2768_v60  ;;  %v2558_v15 = vsel %vm5631_vm7, %v4748_v42, %v2557_v59  ;;  %v3940_v9 = vunpack.c.l.b16 %v3896_v62  ;;  %v2600_v17 = vunpack.c.l.b16 %v2561_v33 }
 0x243   : > { %5130 = vst [vmem:[%s6552_s22 + $0x18] sm:$0xff] %v5066_v43   ;;  %v4145_v58 = vmul.f32 %v6500_v37, %v4109_v12  ;;  %v2599_v59 = vunpack.c.l.b16 %v2558_v15  ;;  %v3473_v41 = vrot.slane %v3472_v56, 4  ;;  %v3487_v31 = vrot.slane %v3485_v34, 5 }
 0x244   : > { %v3958_v42 = vpack.c.b16 %v3940_v9, %v3939_v38  ;;  %v3899_v49 = vrot.slane %v6657_v6, 5  ;;  %v4733_v6 = vld [vmem:[%s5445_s24 + $0xc0] sm:$0xe]  ;;  %v3490_v56 = vshrl.u32 %v4925_v20, 16  ;;  %v3493_v25 = vshll.u32 %v4925_v20, 16 }
 0x245   : > { %v4043_v51 = vpop.f32.mrf.mxu0  ;;  %v4181_v43 = vadd.f32 %v6513_v11, %v4145_v58  ;;  %v2617_v16 = vpack.c.b16 %v2600_v17, %v2599_v59  ;;  %v3478_v61 = vsel %vm5457_vm3, %v3473_v41, %v6678_v24  ;;  %v3488_v33 = vsel %vm5457_vm3, %v3483_v55, %v3487_v31  ;;  %v5255_v41 = vld [vmem:[%s5445_s24 + $0xc8] sm:$0x1]  ;;  %v4927_v20 = vld [vmem:[%s5445_s24 + $0xd4] sm:$0x1] }
 0x246   : > { %v3645_v13 = vpop.f32.mrf.mxu3  ;;  %4877 = vmatmul.msk.bf16.gmra.mxu2 %vm702_vm4, %v5044_v10  ;;  %v2706_v44 = vpop.f32.mrf.mxu1  ;;  %v4959_v10 = vld [vmem:[%s5445_s24 + $0xc0] sm:$0xe]  ;;  %v3499_v58 = vshll.u32 %v6707_v7, 16  ;;  %v3503_v24 = vshrl.u32 %v6707_v7, 16  ;;  %v3901_v9 = vrot.slane %v3899_v49, 4  ;;  %v4749_v59 = vrot.slane %v4733_v6, 9 }
 0x247   : > { %v3712_v26 = vadd.f32 %v3645_v13, %v3058_v54  ;;  %v4975_v57 = vrot.slane %v4959_v10, 9  ;;  %v4213_v62 = vmax.f32 %v4181_v43, 0.0  ;;  %v2567_v55 = vrot.slane %v5255_v41, 5 }
 0x248   : > { %v3492_v31 = vrot.slane %v3490_v56, 4  ;;  %v3495_v10 = vrot.slane %v3493_v25, 5  ;;  %v3509_v56 = vshll.u32 %v4927_v20, 16 }
 0x249   : > { %v4110_v48 = vadd.f32 %v4043_v51, %v3712_v26  ;;  %v2994_v14 = vpop.f32.mrf.mxu2  ;;  %v5254_v51 = vld [vmem:[%s5445_s24 + $0xc4] sm:$0xf] }
 0x24a   : > { %v3059_v45 = vadd.f32 %v2994_v14, %v2769_v32  ;;  %v2564_v35 = vrot.slane %v5254_v51, 5  ;;  %v5045_v32 = vld [vmem:[%s5445_s24 + $0xc0] sm:$0xff]  ;;  %v3543_v14 = vunpack.c.l.b16 %v3478_v61 }
 0x24b   : > { %v4146_v60 = vmul.f32 %v6500_v37, %v4110_v48  ;;  %4942 = vmatmul.msk.bf16.gmra.mxu3 %vm702_vm4, %v3560_v30  ;;  %v6889_v30 = vld [vmem:[#allocation5_spill] sm:$0xff]  ;;  %v3902_v48 = vrot.slane %v6684_v28, 5 }
 0x24c   : > { %v2770_v34 = vadd.f32 %v2706_v44, %v6889_v30  ;;  %v2566_v17 = vrot.slane %v2564_v35, 4  ;;  %v3900_v44 = vsel %vm5631_vm7, %v4975_v57, %v3899_v49 }
 0x24d   : > { %v4182_v1 = vadd.f32 %v6513_v11, %v4146_v60  ;;  %v4046_v0 = vpop.f32.mrf.mxu0  ;;  %v3903_v28 = vsel %vm5631_vm7, %v3901_v9, %v3902_v48 }
 0x24e   : > { %v3648_v12 = vpop.f32.mrf.mxu3  ;;  %v2709_v54 = vpop.f32.mrf.mxu1  ;;  %v2568_v51 = vsel %vm5631_vm7, %v2566_v17, %v2567_v55  ;;  %v4960_v55 = vld [vmem:[%s5445_s24 + $0xcc] sm:$0xe] }
 0x24f   : > { %v4214_v13 = vmax.f32 %v4182_v1, 0.0  ;;  %v3713_v15 = vadd.f32 %v3648_v12, %v3059_v45  ;;  %v3544_v45 = vunpack.c.l.b16 %v3488_v33  ;;  %v3505_v1 = vrot.slane %v3503_v24, 4 }
 0x250   : > { %4991 = vmatmul.msk.bf16.gmra.mxu0 %vm702_vm4, %v3958_v42  ;;  %v3501_v42 = vrot.slane %v3499_v58, 5  ;;  %v3496_v33 = vor.u32 %v3495_v10, %v3492_v31  ;;  %v2771_v58 = vadd.f32 %v2709_v54, %v6079_v52  ;;  %v2602_v30 = vunpack.c.l.b16 %v2568_v51  ;;  %v5046_v51 = vld [vmem:[%s5445_s24 + $0xcc] sm:$0xff]  ;;  %s5278_s24 = scalar_lea.hbm %s6880_s4, 256 }
 0x251   : > { %v5071_v26 = vpack.c.bf16 %v4214_v13, %v4213_v62  ;;  %v2996_v38 = vpop.f32.mrf.mxu2  ;;  %4765 = vmatmul.msk.bf16.gmra.mxu1 %vm702_vm4, %v2617_v16  ;;  %v4111_v43 = vadd.f32 %v4046_v0, %v3713_v15  ;;  %v2565_v0 = vsel %vm5631_vm7, %v4749_v59, %v2564_v35  ;;  %v3561_v62 = vpack.c.b16 %v3544_v45, %v3543_v14  ;;  %p5280_p2 = scmp.lt.s32.totalorder %s5278_s24, %s5274_s12 }
 0x252   : > { %v3060_v60 = vadd.f32 %v2996_v38, %v2770_v34  ;;  %v3941_v13 = vunpack.c.l.b16 %v3900_v44  ;;  %v3942_v15 = vunpack.c.l.b16 %v3903_v28  ;;  %v3506_v6 = vor.u32 %v3505_v1, %v3501_v42 }
 0x253   : > { %5131 = vst [vmem:[%s6552_s22 + $0x20] sm:$0xff] %v5071_v26   ;;  %v4147_v49 = vmul.f32 %v6500_v37, %v4111_v43  ;;  %v2601_v26 = vunpack.c.l.b16 %v2565_v0  ;;  %v3497_v48 = vrot.slane %v3496_v33, 4  ;;  %v3511_v14 = vrot.slane %v3509_v56, 5  ;;  %p5281_p3 = por %p5280_p2, %p5279_p1 }
 0x254   : > { %v3959_v9 = vpack.c.b16 %v3942_v15, %v3941_v13  ;;  %v3906_v52 = vrot.slane %v6707_v7, 5  ;;  %v4976_v1 = vrot.slane %v4960_v55, 9  ;;  %v3909_v0 = vrot.slane %v4927_v20, 5 }
 0x255   : > { %v4048_v16 = vpop.f32.mrf.mxu0  ;;  %v4183_v35 = vadd.f32 %v6513_v11, %v4147_v49  ;;  %v2618_v41 = vpack.c.b16 %v2602_v30, %v2601_v26  ;;  %v3502_v31 = vsel %vm5457_vm3, %v3497_v48, %v3501_v42  ;;  %p5282_p5 = pnand %p5281_p3, %p5277_p0 }
 0x256   : > { %v3650_v12 = vpop.f32.mrf.mxu3  ;;  %4878 = vmatmul.msk.bf16.gmra.mxu2 %vm702_vm4, %v5045_v32  ;;  %v2711_v61 = vpop.f32.mrf.mxu1  ;;  %v3507_v32 = vrot.slane %v3506_v6, 4  ;;  %v3907_v36 = vsel %vm5631_vm7, %v4976_v1, %v3906_v52 }
 0x257   : > { %v3714_v57 = vadd.f32 %v3650_v12, %v3060_v60  ;;  %v4215_v60 = vmax.f32 %v4183_v35, 0.0  ;;  %v2772_v28 = vadd.f32 %v2711_v61, %v6099_v21  ;;  %v3908_v12 = vrot.slane %v3906_v52, 4 }
 0x258   : > { %v3512_v10 = vsel %vm5457_vm3, %v3507_v32, %v3511_v14  ;;  %v3943_v56 = vunpack.c.l.b16 %v3907_v36 }
 0x259   : > { %v4112_v25 = vadd.f32 %v4048_v16, %v3714_v57  ;;  %v2999_v24 = vpop.f32.mrf.mxu2  ;;  %v3546_v13 = vunpack.c.l.b16 %v3512_v10  ;;  %v3910_v42 = vsel %vm5631_vm7, %v3908_v12, %v3909_v0 }
 0x25a   : > { %v3061_v38 = vadd.f32 %v2999_v24, %v2771_v58 }
 0x25b   : > { %v4148_v34 = vmul.f32 %v6500_v37, %v4112_v25  ;;  %4943 = vmatmul.msk.bf16.gmra.mxu3 %vm702_vm4, %v3561_v62  ;;  %v3545_v62 = vunpack.c.l.b16 %v3502_v31  ;;  %v3944_v25 = vunpack.c.l.b16 %v3910_v42 }
 0x25d   : > { %v4184_v59 = vadd.f32 %v6513_v11, %v4148_v34  ;;  %v4051_v17 = vpop.f32.mrf.mxu0  ;;  %v3562_v6 = vpack.c.b16 %v3546_v13, %v3545_v62  ;;  %v3960_v34 = vpack.c.b16 %v3944_v25, %v3943_v56 }
 0x25e   : > { %v3653_v54 = vpop.f32.mrf.mxu3  ;;  %v2714_v43 = vpop.f32.mrf.mxu1 }
 0x25f   : > { %v4216_v45 = vmax.f32 %v4184_v59, 0.0  ;;  %v3715_v44 = vadd.f32 %v3653_v54, %v3061_v38  ;;  %v2773_v24 = vadd.f32 %v2714_v43, %v6118_v29 }
 0x260   : > { %4992 = vmatmul.msk.bf16.gmra.mxu0 %vm702_vm4, %v3959_v9 }
 0x261   : > { %v5076_v16 = vpack.c.bf16 %v4216_v45, %v4215_v60  ;;  %v3001_v7 = vpop.f32.mrf.mxu2  ;;  %4766 = vmatmul.msk.bf16.gmra.mxu1 %vm702_vm4, %v2618_v41  ;;  %v4113_v49 = vadd.f32 %v4051_v17, %v3715_v44  ;;  %v6890_v41 = vld [vmem:[#allocation6_spill] sm:$0xff] }
 0x262   : > { %v3062_v57 = vadd.f32 %v3001_v7, %v2772_v28 }
 0x263   : > { %5132 = vst [vmem:[%s6552_s22 + $0x28] sm:$0xff] %v5076_v16   ;;  %v4149_v61 = vmul.f32 %v6500_v37, %v4113_v49 }
 0x265   : > { %v4053_v15 = vpop.f32.mrf.mxu0  ;;  %v4185_v30 = vadd.f32 %v6513_v11, %v4149_v61 }
 0x266   : > { %v3655_v33 = vpop.f32.mrf.mxu3  ;;  %4879 = vmatmul.msk.bf16.gmra.mxu2 %vm702_vm4, %v5046_v51  ;;  %v2716_v21 = vpop.f32.mrf.mxu1 }
 0x267   : > { %v3716_v20 = vadd.f32 %v3655_v33, %v3062_v57  ;;  %v4217_v14 = vmax.f32 %v4185_v30, 0.0  ;;  %v2774_v55 = vadd.f32 %v2716_v21, %v6890_v41 }
 0x269   : > { %v4114_v58 = vadd.f32 %v4053_v15, %v3716_v20  ;;  %v3004_v26 = vpop.f32.mrf.mxu2 }
 0x26a   : > { %v3063_v35 = vadd.f32 %v3004_v26, %v2773_v24 }
 0x26b   : > { %v4150_v18 = vmul.f32 %v6500_v37, %v4114_v58  ;;  %4944 = vmatmul.msk.bf16.gmra.mxu3 %vm702_vm4, %v3562_v6 }
 0x26d   : > { %v4186_v38 = vadd.f32 %v6513_v11, %v4150_v18  ;;  %v4056_v9 = vpop.f32.mrf.mxu0 }
 0x26e   : > { %v3658_v48 = vpop.f32.mrf.mxu3  ;;  %v2719_v32 = vpop.f32.mrf.mxu1 }
 0x26f   : > { %v4218_v59 = vmax.f32 %v4186_v38, 0.0  ;;  %v3717_v17 = vadd.f32 %v3658_v48, %v3063_v35  ;;  %v2775_v16 = vadd.f32 %v2719_v32, %v6161_v5 }
 0x270   : > { %4993 = vmatmul.msk.bf16.gmra.mxu0 %vm702_vm4, %v3960_v34 }
 0x271   : > { %v5081_v29 = vpack.c.bf16 %v4218_v59, %v4217_v14  ;;  %v3006_v52 = vpop.f32.mrf.mxu2  ;;  %v4115_v54 = vadd.f32 %v4056_v9, %v3717_v17 }
 0x272   : > { %v3064_v43 = vadd.f32 %v3006_v52, %v2774_v55 }
 0x273   : > { %5133 = vst [vmem:[%s6552_s22 + $0x30] sm:$0xff] %v5081_v29   ;;  %v4151_v31 = vmul.f32 %v6500_v37, %v4115_v54 }
 0x275   : > { %v4058_v60 = vpop.f32.mrf.mxu0  ;;  %v4187_v7 = vadd.f32 %v6513_v11, %v4151_v31 }
 0x276   : > { %v3660_v45 = vpop.f32.mrf.mxu3  ;;  %v2721_v44 = vpop.f32.mrf.mxu1 }
 0x277   : > { %v3718_v10 = vadd.f32 %v3660_v45, %v3064_v43  ;;  %v4219_v13 = vmax.f32 %v4187_v7, 0.0  ;;  %v2776_v33 = vadd.f32 %v2721_v44, %v6185_v22 }
 0x279   : > { %v4116_v1 = vadd.f32 %v4058_v60, %v3718_v10  ;;  %v3009_v28 = vpop.f32.mrf.mxu2 }
 0x27a   : > { %v3065_v0 = vadd.f32 %v3009_v28, %v2775_v16 }
 0x27b   : > { %v4152_v12 = vmul.f32 %v6500_v37, %v4116_v1 }
 0x27d   : > { %v4188_v51 = vadd.f32 %v6513_v11, %v4152_v12  ;;  %v4061_v49 = vpop.f32.mrf.mxu0 }
 0x27e   : > { %v3663_v57 = vpop.f32.mrf.mxu3  ;;  %v2724_v62 = vpop.f32.mrf.mxu1 }
 0x27f   : > { %v4220_v15 = vmax.f32 %v4188_v51, 0.0  ;;  %v3719_v36 = vadd.f32 %v3663_v57, %v3065_v0  ;;  %v2777_v26 = vadd.f32 %v2724_v62, %v6204_v19 }
 0x281   : > { %v5086_v42 = vpack.c.bf16 %v4220_v15, %v4219_v13  ;;  %v3011_v21 = vpop.f32.mrf.mxu2  ;;  %v4117_v5 = vadd.f32 %v4061_v49, %v3719_v36 }
 0x282   : > { %v3066_v61 = vadd.f32 %v3011_v21, %v2776_v33 }
 0x283   : > { %5134 = vst [vmem:[%s6552_s22 + $0x38] sm:$0xff] %v5086_v42   ;;  %v4153_v25 = vmul.f32 %v6500_v37, %v4117_v5 }
 0x285   : > { %v4063_v20 = vpop.f32.mrf.mxu0  ;;  %v4189_v18 = vadd.f32 %v6513_v11, %v4153_v25 }
 0x286   : > { %v3665_v6 = vpop.f32.mrf.mxu3  ;;  %v2726_v56 = vpop.f32.mrf.mxu1 }
 0x287   : > { %v3720_v58 = vadd.f32 %v3665_v6, %v3066_v61  ;;  %v4221_v32 = vmax.f32 %v4189_v18, 0.0  ;;  %v2778_v29 = vadd.f32 %v2726_v56, %v6228_v53  ;;  %v6797_v6 = vld [vmem:[%s6879_s3] ss:$0 sm:$0xff] }
 0x289   : > { %v4118_v24 = vadd.f32 %v4063_v20, %v3720_v58  ;;  %v3014_v30 = vpop.f32.mrf.mxu2 }
 0x28a   : > { %v3067_v22 = vadd.f32 %v3014_v30, %v2777_v26 }
 0x28b   : > { %v4154_v35 = vmul.f32 %v6500_v37, %v4118_v24 }
 0x28d   : > { %v4190_v34 = vadd.f32 %v6513_v11, %v4154_v35  ;;  %v4066_v38 = vpop.f32.mrf.mxu0 }
 0x28e   : > { %v3668_v9 = vpop.f32.mrf.mxu3  ;;  %v2729_v48 = vpop.f32.mrf.mxu1 }
 0x28f   : > { %v4222_v14 = vmax.f32 %v4190_v34, 0.0  ;;  %v3721_v59 = vadd.f32 %v3668_v9, %v3067_v22  ;;  %v2779_v31 = vadd.f32 %v2729_v48, %v6247_v2 }
 0x291   : > { %v5091_v17 = vpack.c.bf16 %v4222_v14, %v4221_v32  ;;  %v3016_v41 = vpop.f32.mrf.mxu2  ;;  %v4119_v19 = vadd.f32 %v4066_v38, %v3721_v59 }
 0x292   : > { %v3068_v55 = vadd.f32 %v3016_v41, %v2778_v29 }
 0x293   : > { %5135 = vst [vmem:[%s6552_s22 + $0x40] sm:$0xff] %v5091_v17   ;;  %v4155_v60 = vmul.f32 %v6500_v37, %v4119_v19 }
 0x295   : > { %v4068_v52 = vpop.f32.mrf.mxu0  ;;  %v4191_v1 = vadd.f32 %v6513_v11, %v4155_v60 }
 0x296   : > { %v3670_v54 = vpop.f32.mrf.mxu3  ;;  %v2731_v43 = vpop.f32.mrf.mxu1 }
 0x297   : > { %v3722_v45 = vadd.f32 %v3670_v54, %v3068_v55  ;;  %v4223_v51 = vmax.f32 %v4191_v1, 0.0  ;;  %v2780_v13 = vadd.f32 %v2731_v43, %v6271_v40 }
 0x299   : > { %v4120_v44 = vadd.f32 %v4068_v52, %v3722_v45  ;;  %v3019_v10 = vpop.f32.mrf.mxu2 }
 0x29a   : > { %v3069_v53 = vadd.f32 %v3019_v10, %v2779_v31 }
 0x29b   : > { %v4156_v16 = vmul.f32 %v6500_v37, %v4120_v44  ;;  %v6790_v37 = vld [vmem:[%s6878_s2] ss:$0 sm:$0xff] }
 0x29d   : > { %v4192_v28 = vadd.f32 %v6513_v11, %v4156_v16  ;;  %v4071_v7 = vpop.f32.mrf.mxu0 }
 0x29e   : > { %v3673_v12 = vpop.f32.mrf.mxu3  ;;  %v2734_v0 = vpop.f32.mrf.mxu1 }
 0x29f   : > { %v4224_v49 = vmax.f32 %v4192_v28, 0.0  ;;  %v3723_v57 = vadd.f32 %v3673_v12, %v3069_v53  ;;  %v2781_v20 = vadd.f32 %v2734_v0, %v6290_v8 }
 0x2a1   : > { %v5096_v62 = vpack.c.bf16 %v4224_v49, %v4223_v51  ;;  %v3021_v15 = vpop.f32.mrf.mxu2  ;;  %v4121_v2 = vadd.f32 %v4071_v7, %v3723_v57 }
 0x2a2   : > { %v3070_v36 = vadd.f32 %v3021_v15, %v2780_v13 }
 0x2a3   : > { %5136 = vst [vmem:[%s6552_s22 + $0x48] sm:$0xff] %v5096_v62   ;;  %v4157_v11 = vmul.f32 %v6790_v37, %v4121_v2 }
 0x2a5   : > { %v4073_v42 = vpop.f32.mrf.mxu0  ;;  %v4193_v56 = vadd.f32 %v6797_v6, %v4157_v11 }
 0x2a6   : > { %v3675_v33 = vpop.f32.mrf.mxu3  ;;  %v2736_v21 = vpop.f32.mrf.mxu1 }
 0x2a7   : > { %v3724_v5 = vadd.f32 %v3675_v33, %v3070_v36  ;;  %v4225_v35 = vmax.f32 %v4193_v56, 0.0  ;;  %v2782_v38 = vadd.f32 %v2736_v21, %v6314_v27 }
 0x2a9   : > { %v4122_v61 = vadd.f32 %v4073_v42, %v3724_v5  ;;  %v3024_v40 = vpop.f32.mrf.mxu2 }
 0x2aa   : > { %v3071_v58 = vadd.f32 %v3024_v40, %v2781_v20 }
 0x2ab   : > { %v4158_v25 = vmul.f32 %v6790_v37, %v4122_v61 }
 0x2ad   : > { %v4194_v24 = vadd.f32 %v6797_v6, %v4158_v25  ;;  %v4076_v26 = vpop.f32.mrf.mxu0 }
 0x2ae   : > { %v3678_v30 = vpop.f32.mrf.mxu3  ;;  %v2739_v18 = vpop.f32.mrf.mxu1 }
 0x2af   : > { %v4226_v22 = vmax.f32 %v4194_v24, 0.0  ;;  %v3725_v8 = vadd.f32 %v3678_v30, %v3071_v58  ;;  %v2783_v55 = vadd.f32 %v2739_v18, %v6333_v63 }
 0x2b1   : > { %v5101_v34 = vpack.c.bf16 %v4226_v22, %v4225_v35  ;;  %v3026_v9 = vpop.f32.mrf.mxu2  ;;  %v4123_v48 = vadd.f32 %v4076_v26, %v3725_v8 }
 0x2b2   : > { %v3072_v32 = vadd.f32 %v3026_v9, %v2782_v38 }
 0x2b3   : > { %5137 = vst [vmem:[%s6552_s22 + $0x50] sm:$0xff] %v5101_v34   ;;  %v4159_v29 = vmul.f32 %v6790_v37, %v4123_v48 }
 0x2b5   : > { %v4078_v14 = vpop.f32.mrf.mxu0  ;;  %v4195_v54 = vadd.f32 %v6797_v6, %v4159_v29 }
 0x2b6   : > { %v3680_v59 = vpop.f32.mrf.mxu3  ;;  %v2741_v17 = vpop.f32.mrf.mxu1 }
 0x2b7   : > { %v3726_v41 = vadd.f32 %v3680_v59, %v3072_v32  ;;  %v4227_v10 = vmax.f32 %v4195_v54, 0.0  ;;  %v2784_v28 = vadd.f32 %v2741_v17, %v6357_v39 }
 0x2b9   : > { %v4124_v19 = vadd.f32 %v4078_v14, %v3726_v41  ;;  %v3029_v52 = vpop.f32.mrf.mxu2 }
 0x2ba   : > { %v3073_v27 = vadd.f32 %v3029_v52, %v2783_v55 }
 0x2bb   : > { %v4160_v43 = vmul.f32 %v6790_v37, %v4124_v19 }
 0x2bd   : > { %v4196_v60 = vadd.f32 %v6797_v6, %v4160_v43  ;;  %v4081_v45 = vpop.f32.mrf.mxu0 }
 0x2be   : > { %v3683_v44 = vpop.f32.mrf.mxu3  ;;  %v2744_v31 = vpop.f32.mrf.mxu1 }
 0x2bf   : > { %v4228_v1 = vmax.f32 %v4196_v60, 0.0  ;;  %v3727_v16 = vadd.f32 %v3683_v44, %v3073_v27  ;;  %v2785_v15 = vadd.f32 %v2744_v31, %v6376_v50 }
 0x2c1   : > { %v5106_v53 = vpack.c.bf16 %v4228_v1, %v4227_v10  ;;  %v3031_v7 = vpop.f32.mrf.mxu2  ;;  %v4125_v63 = vadd.f32 %v4081_v45, %v3727_v16 }
 0x2c2   : > { %v3074_v12 = vadd.f32 %v3031_v7, %v2784_v28 }
 0x2c3   : > { %5138 = vst [vmem:[%s6552_s22 + $0x58] sm:$0xff] %v5106_v53   ;;  %v4161_v57 = vmul.f32 %v6790_v37, %v4125_v63 }
 0x2c5   : > { %v4083_v0 = vpop.f32.mrf.mxu0  ;;  %v4197_v36 = vadd.f32 %v6797_v6, %v4161_v57 }
 0x2c6   : > { %v3685_v51 = vpop.f32.mrf.mxu3  ;;  %v2746_v49 = vpop.f32.mrf.mxu1 }
 0x2c7   : > { %v3728_v62 = vadd.f32 %v3685_v51, %v3074_v12  ;;  %v4229_v5 = vmax.f32 %v4197_v36, 0.0  ;;  %v2786_v25 = vadd.f32 %v2746_v49, %v6400_v3 }
 0x2c9   : > { %v4126_v13 = vadd.f32 %v4083_v0, %v3728_v62  ;;  %v3034_v2 = vpop.f32.mrf.mxu2 }
 0x2ca   : > { %v3075_v39 = vadd.f32 %v3034_v2, %v2785_v15 }
 0x2cb   : > { %v4162_v42 = vmul.f32 %v6790_v37, %v4126_v13 }
 0x2cd   : > { %v4198_v33 = vadd.f32 %v6797_v6, %v4162_v42  ;;  %v4086_v21 = vpop.f32.mrf.mxu0 }
 0x2ce   : > { %v3688_v11 = vpop.f32.mrf.mxu3  ;;  %v2749_v40 = vpop.f32.mrf.mxu1 }
 0x2cf   : > { %v4230_v61 = vmax.f32 %v4198_v33, 0.0  ;;  %v3729_v20 = vadd.f32 %v3688_v11, %v3075_v39  ;;  %v2787_v8 = vadd.f32 %v2749_v40, %v6417_v23 }
 0x2d1   : > { %v5111_v56 = vpack.c.bf16 %v4230_v61, %v4229_v5  ;;  %v3036_v58 = vpop.f32.mrf.mxu2  ;;  %v4127_v50 = vadd.f32 %v4086_v21, %v3729_v20 }
 0x2d2   : > { %v3076_v24 = vadd.f32 %v3036_v58, %v2786_v25 }
 0x2d3   : > { %5139 = vst [vmem:[%s6552_s22 + $0x60] sm:$0xff] %v5111_v56   ;;  %v4163_v18 = vmul.f32 %v6790_v37, %v4127_v50 }
 0x2d5   : > { %v4088_v26 = vpop.f32.mrf.mxu0  ;;  %v4199_v9 = vadd.f32 %v6797_v6, %v4163_v18 }
 0x2d6   : > { %v3690_v30 = vpop.f32.mrf.mxu3  ;;  %v2751_v38 = vpop.f32.mrf.mxu1 }
 0x2d7   : > { %v3730_v35 = vadd.f32 %v3690_v30, %v3076_v24  ;;  %v4231_v17 = vmax.f32 %v4199_v9, 0.0  ;;  %v2788_v55 = vadd.f32 %v2751_v38, %v6437_v4 }
 0x2d9   : > { %v4128_v22 = vadd.f32 %v4088_v26, %v3730_v35  ;;  %v3039_v34 = vpop.f32.mrf.mxu2 }
 0x2da   : > { %v3077_v3 = vadd.f32 %v3039_v34, %v2787_v8 }
 0x2db   : > { %v4164_v48 = vmul.f32 %v6790_v37, %v4128_v22 }
 0x2dd   : > { %v4200_v32 = vadd.f32 %v6797_v6, %v4164_v48  ;;  %v4091_v14 = vpop.f32.mrf.mxu0 }
 0x2de   : > { %v3693_v59 = vpop.f32.mrf.mxu3  ;;  %v2754_v43 = vpop.f32.mrf.mxu1 }
 0x2df   : > { %v4232_v29 = vmax.f32 %v4200_v32, 0.0  ;;  %v3731_v41 = vadd.f32 %v3693_v59, %v3077_v3  ;;  %v2789_v10 = vadd.f32 %v2754_v43, %v6456_v47 }
 0x2e1   : > { %v5116_v19 = vpack.c.bf16 %v4232_v29, %v4231_v17  ;;  %v3041_v52 = vpop.f32.mrf.mxu2  ;;  %v4129_v23 = vadd.f32 %v4091_v14, %v3731_v41 }
 0x2e2   : > { %v3078_v54 = vadd.f32 %v3041_v52, %v2788_v55 }
 0x2e3   : > { %5140 = vst [vmem:[%s6552_s22 + $0x68] sm:$0xff] %v5116_v19   ;;  %v4165_v45 = vmul.f32 %v6790_v37, %v4129_v23 }
 0x2e5   : > { %v4093_v27 = vpop.f32.mrf.mxu0  ;;  %v4201_v16 = vadd.f32 %v6797_v6, %v4165_v45 }
 0x2e6   : > { %v3695_v60 = vpop.f32.mrf.mxu3  ;;  %v2756_v7 = vpop.f32.mrf.mxu1 }
 0x2e7   : > { %v3732_v44 = vadd.f32 %v3695_v60, %v3078_v54  ;;  %v4233_v0 = vmax.f32 %v4201_v16, 0.0  ;;  %v2790_v62 = vadd.f32 %v2756_v7, %v6475_v46 }
 0x2e9   : > { %v4130_v31 = vadd.f32 %v4093_v27, %v3732_v44  ;;  %v3044_v1 = vpop.f32.mrf.mxu2 }
 0x2ea   : > { %v3079_v4 = vadd.f32 %v3044_v1, %v2789_v10 }
 0x2eb   : > { %v4166_v53 = vmul.f32 %v6790_v37, %v4130_v31 }
 0x2ed   : > { %v4202_v28 = vadd.f32 %v6797_v6, %v4166_v53  ;;  %v4096_v63 = vpop.f32.mrf.mxu0 }
 0x2ee   : > { %v3698_v12 = vpop.f32.mrf.mxu3 }
 0x2ef   : > { %v4234_v51 = vmax.f32 %v4202_v28, 0.0  ;;  %v3733_v49 = vadd.f32 %v3698_v12, %v3079_v4 }
 0x2f1   : > { %v5121_v57 = vpack.c.bf16 %v4234_v51, %v4233_v0  ;;  %v3046_v47 = vpop.f32.mrf.mxu2  ;;  %v4131_v13 = vadd.f32 %v4096_v63, %v3733_v49 }
 0x2f2   : > { %v3080_v15 = vadd.f32 %v3046_v47, %v2790_v62 }
 0x2f3   : > { %5141 = vst [vmem:[%s6552_s22 + $0x70] sm:$0xff] %v5121_v57   ;;  %v4167_v36 = vmul.f32 %v6790_v37, %v4131_v13 }
 0x2f5   : > { %v4098_v39 = vpop.f32.mrf.mxu0  ;;  %v4203_v21 = vadd.f32 %v6797_v6, %v4167_v36 }
 0x2f6   : > { %v3700_v2 = vpop.f32.mrf.mxu3 }
 0x2f7   : > { %v3734_v42 = vadd.f32 %v3700_v2, %v3080_v15  ;;  %v4235_v5 = vmax.f32 %v4203_v21, 0.0 }
 0x2f9   : > { %v4132_v33 = vadd.f32 %v4098_v39, %v3734_v42 }
 0x2fb   : > { %v4168_v11 = vmul.f32 %v6790_v37, %v4132_v33 }
 0x2fd   : > { %v4204_v46 = vadd.f32 %v6797_v6, %v4168_v11 }
 0x2ff   : > { %v4236_v61 = vmax.f32 %v4204_v46, 0.0 }
 0x301   : > { %v5126_v20 = vpack.c.bf16 %v4236_v61, %v4235_v5 }
 0x303   : > { %5142 = vst [vmem:[%s6552_s22 + $0x78] sm:$0xff] %v5126_v20  }
 0x304   : > { %5285 = shalt.err (!%p5282_p5)
}
 0x305   : > { %s5338_s14 = smov 64   ;;  %s5339_s22 = smov 4  }
 0x306   : > { %5147 = dma.vmem_to_hbm [thread:$0]  (%p5405_p4), %s4318_s9, 2048, %s4320_s10, %s4302_s18, %s5338_s14, %s5338_s14, %s5339_s22  }
 0x307 PF: > { %p5153_p6 = scmp.ge.s32.totalorder %s5336_s20, 2  ;;  %s4334_s30 = sand.u32 1, %s5316_s15  }
 0x308   : > { %s4335_s5 = scalar_lea.sflag [#allocation3], %s4334_s30 }
 0x309   : > { %p5150_p7 = pnand %p5153_p6, %p5412_p8 }
 0x30b   : > { %p5151_p9 = pneg %p5150_p7 }
 0x30d   : > { %5311 = dma.done.wait (%p5151_p9), %s4335_s5, 2048  }
 0x30e   : > { %5313 = vsyncadd (%p5151_p9), %s4335_s5, 4294965248  ;;  %s17_s20 = sadd.s32 1, %s5336_s20   ;;  %s6891_s15 = smov %s5320_s16 }
 0x30f   : > { %p14_p10 = scmp.ge.s32.totalorder %s17_s20, 4   ;;  %s6892_s16 = smov %s5324_s17 }
 0x310   : > { %s6893_s17 = smov %s5418_s28  ;;  %s6894_s18 = smov %s5332_s19 }
 0x311   : > { %s6895_s19 = smov %s6897_s23  ;;  %16 = sbr.rel (!%p14_p10) target bundleno = 4 (0x4), region = 82 }
 0x316   :  { %4341 = vsyncpa [#allocation3], 1 }
 0x317   :  { %4343 = vsyncpa [#allocation3 + $0x1], 1 }

</bundles_post_ra>
